<compile_context>
chip_gen: v6e
topology: v6e:2x2x1
jax: 0.10.0
libtpu: 0.0.40
codegen_flags: <defaults>
</compile_context>

<pallas_src>
import jax
import jax.numpy as jnp
from jax import lax
from jax.experimental import pallas as pl
from jax.experimental.pallas import tpu as pltpu

_LANE = 128


def _ceil_to(n, m):
    return ((n + m - 1) // m) * m


def _make_kernel(W, TW, C8p):
    """Kernel body for one (batch, row-tile) grid step."""
    f32, bf16 = jnp.float32, jnp.bfloat16

    def kernel(x_ref, xt_ref, xb_ref,
               w01_ref, b01_ref,
               w0b_ref, b0b_ref,
               w0c_ref, b0c_ref,
               wr_ref, ws_ref, bc_ref,
               o_ref,
               hbuf_ref):
        C7p = hbuf_ref.shape[-1]

        def mm(a, w):                       # MXU matmul, f32 accumulation
            return jnp.dot(a, w, preferred_element_type=f32)

        def conv_1x1(xin):
            # Fused [branch0-stage-a | branch1] 1x1 conv (BN scales folded into
            # the weights offline) + bias + ReLU.
            return jnp.maximum(mm(xin, w01_ref[...]) + b01_ref[...], 0.0)

        def conv_1x3(ta):
            # (1,3) "same" conv: XLU rolls + row-boundary masks (no padded
            # scratch, no unaligned window slices).  ta: (rows, C8p) f32.
            rows = ta.shape[0]
            col = lax.broadcasted_iota(jnp.int32, ta.shape, 0) % W
            left = jnp.where(col != 0, pltpu.roll(ta, 1, axis=0), 0.0)
            right = jnp.where(col != W - 1, pltpu.roll(ta, rows - 1, axis=0), 0.0)
            acc = (mm(left.astype(bf16), w0b_ref[0])
                   + mm(ta.astype(bf16), w0b_ref[1])
                   + mm(right.astype(bf16), w0b_ref[2]))
            return jnp.maximum(acc + b0b_ref[...], 0.0)

        x = x_ref[0]                                      # (TW, Cin_p) bf16

        # ---- fused 1x1 convs: branch0 stage a + branch1 ----
        ab = conv_1x1(x)                                  # (TW, 2*C8p) f32
        ta = ab[:, :C8p]                                  # branch0 stage-a out
        x1 = ab[:, C8p:]                                  # branch1 out

        # ---- branch0 stage b: (1,3) conv on the tile rows ----
        tb16 = conv_1x3(ta).astype(bf16)                  # (TW, C7p)
        hbuf_ref[W:W + TW, :] = tb16

        # ---- 1-row halos for the (3,1) conv (stage a+b of neighbour rows) ----
        r = pl.program_id(1)
        last = pl.num_programs(1) - 1

        @pl.when(r > 0)
        def _():
            hbuf_ref[0:W, :] = conv_1x3(conv_1x1(xt_ref[0, 0])[:, :C8p]).astype(bf16)

        @pl.when(r == 0)
        def _():
            hbuf_ref[0:W, :] = jnp.zeros((W, C7p), bf16)

        @pl.when(r < last)
        def _():
            hbuf_ref[W + TW:, :] = conv_1x3(conv_1x1(xb_ref[0, 0])[:, :C8p]).astype(bf16)

        @pl.when(r == last)
        def _():
            hbuf_ref[W + TW:, :] = jnp.zeros((W, C7p), bf16)

        # ---- branch0 stage c: (3,1) conv via aligned row-shifted windows ----
        up = hbuf_ref[0:TW, :]                            # value at row h-1
        down = hbuf_ref[2 * W:2 * W + TW, :]              # value at row h+1
        acc = mm(up, w0c_ref[0]) + mm(tb16, w0c_ref[1]) + mm(down, w0c_ref[2])
        x0 = jnp.maximum(acc + b0c_ref[...], 0.0)         # (TW, C6p) f32

        # ---- residual (x0|x1 fused along K) + shortcut + folded final BN + ReLU ----
        xr = jnp.concatenate([x0.astype(bf16), x1.astype(bf16)], axis=-1)
        y = mm(xr, wr_ref[...]) + mm(x, ws_ref[...]) + bc_ref[...]
        o_ref[0] = jnp.maximum(y, 0.0).astype(o_ref.dtype)

    return kernel


def prepare_params(params, cin_p):
    """Fold BN scales, the 0.1 residual scale and the final BN into the weights,
    fuse the 1x1 branches / residual matmuls, zero-pad every channel axis to a
    lane (128) multiple (exact), and cast matmul operands to bf16."""
    (w0a, s0a, b0a, w0b, s0b, b0b, w0c, s0c, b0c,
     w1, s1, b1, wr0, wr1, br, ws, bs, so, bo) = params
    f32, bf16 = jnp.float32, jnp.bfloat16
    C8, C7, C6 = w0a.shape[1], w0b.shape[2], w0c.shape[2]
    C8p, C7p, C6p = _ceil_to(C8, _LANE), _ceil_to(C7, _LANE), _ceil_to(C6, _LANE)

    def padn(a, axis, new):
        pads = [(0, 0)] * a.ndim
        pads[axis] = (0, new - a.shape[axis])
        return jnp.pad(a, pads)

    # Fused [branch0-stage-a | branch1] 1x1 conv with BN scales folded in.
    w0a_f = padn(padn(w0a * s0a, 0, cin_p), 1, C8p)
    w1_f = padn(padn(w1 * s1, 0, cin_p), 1, C8p)
    w01 = jnp.concatenate([w0a_f, w1_f], axis=1)                     # (Cin_p, 2*C8p)
    b01 = jnp.concatenate([padn(b0a, 1, C8p), padn(b1, 1, C8p)], axis=1)

    w0b_f = padn(padn(w0b * s0b.reshape(1, 1, C7), 1, C8p), 2, C7p)  # (3, C8p, C7p)
    b0b_p = padn(b0b, 1, C7p)
    w0c_f = padn(padn(w0c * s0c.reshape(1, 1, C6), 1, C7p), 2, C6p)  # (3, C7p, C6p)
    b0c_p = padn(b0c, 1, C6p)

    # ReLU(((x0@wr0 + x1@wr1 + br)*0.1 + x@ws + bs)*so + bo)
    #   = ReLU([x0|x1] @ [0.1*wr0*so ; 0.1*wr1*so] + x@(ws*so) + bc)
    wr0_f = padn(padn(0.1 * wr0 * so, 0, C6p), 1, cin_p)
    wr1_f = padn(padn(0.1 * wr1 * so, 0, C8p), 1, cin_p)
    wr = jnp.concatenate([wr0_f, wr1_f], axis=0)                     # (C6p+C8p, Cin_p)
    ws_f = padn(padn(ws * so, 0, cin_p), 1, cin_p)
    bc = padn(0.1 * br * so + bs * so + bo, 1, cin_p)

    return (w01.astype(bf16), b01.astype(f32),
            w0b_f.astype(bf16), b0b_p.astype(f32),
            w0c_f.astype(bf16), b0c_p.astype(f32),
            wr.astype(bf16), ws_f.astype(bf16), bc.astype(f32))


def _choose_tile_h(H, W, per_row_bytes, budget_bytes):
    cands = [d for d in range(1, H + 1)
             if H % d == 0 and (d == H or (d * W) % 8 == 0)]
    fits = [d for d in cands if d * per_row_bytes <= budget_bytes]
    return max(fits) if fits else min(cands)


def inception_resnet_c_nhwc(x_nhwc, params, *, tile_h=None, out_dtype=jnp.float32):
    """NHWC in / NHWC out entry point (avoids layout transposes)."""
    N, H, W, Cin = x_nhwc.shape
    Cin_p = _ceil_to(Cin, _LANE)
    kp = prepare_params(params, Cin_p)
    w01, _, w0b, _, w0c, _, _, _, _ = kp
    C8p, C7p, C6p = w01.shape[1] // 2, w0b.shape[2], w0c.shape[2]
    out_isize = jnp.dtype(out_dtype).itemsize

    # Rough per-row VMEM footprint (double-buffered I/O blocks, hbuf scratch and
    # the main compiler temporaries) -> pick the largest row tile that stays
    # well inside v7x's 64 MiB VMEM.
    per_row = W * (2 * Cin_p * 2 + 2 * Cin_p * out_isize + C7p * 2
                   + 2 * C8p * 4 + 3 * C8p * 2 + 2 * C7p * 4 + C7p * 2
                   + C6p * 4 + (C6p + C8p) * 2 + 2 * Cin_p * 4)
    if tile_h is None:
        tile_h = _choose_tile_h(H, W, per_row, budget_bytes=12 << 20)
    if H % tile_h != 0:
        raise ValueError(f"tile_h={tile_h} must divide H={H}")
    R = H // tile_h
    TW = tile_h * W

    # ---- layout plumbing: lane-pad channels (exact), bf16 matmul operands ----
    xp = jnp.pad(x_nhwc.astype(jnp.bfloat16),
                 ((0, 0), (0, 0), (0, 0), (0, Cin_p - Cin)))
    x_flat = xp.reshape(N, H * W, Cin_p)
    zrow = jnp.zeros((N, 1, W, Cin_p), jnp.bfloat16)
    if R > 1:
        halo_top = jnp.concatenate([zrow, xp[:, tile_h - 1:H - 1:tile_h]], axis=1)
        halo_bot = jnp.concatenate([xp[:, tile_h:H:tile_h], zrow], axis=1)
    else:
        halo_top = zrow
        halo_bot = zrow

    in_specs = [
        pl.BlockSpec((1, TW, Cin_p), lambda n, r: (n, r, 0)),
        pl.BlockSpec((1, 1, W, Cin_p), lambda n, r: (n, r, 0, 0)),
        pl.BlockSpec((1, 1, W, Cin_p), lambda n, r: (n, r, 0, 0)),
    ]
    # Constant-index weight blocks (block index never changes across the grid).
    in_specs += [pl.BlockSpec(p.shape, lambda n, r, _nd=p.ndim: (0,) * _nd)
                 for p in kp]
    out_specs = pl.BlockSpec((1, TW, Cin_p), lambda n, r: (n, r, 0))

    weight_bytes = sum(int(p.size) * p.dtype.itemsize for p in kp)
    block_bytes = (2 * TW * Cin_p * 2 + 4 * W * Cin_p * 2
                   + 2 * TW * Cin_p * out_isize)
    scratch_bytes = (tile_h + 2) * W * C7p * 2
    vmem_limit = int(min(64 << 20,
                         max(16 << 20,
                             2 * weight_bytes + block_bytes + scratch_bytes
                             + tile_h * per_row + (4 << 20))))

    flops = 2 * N * H * W * (Cin_p * 2 * C8p + 3 * C8p * C7p + 3 * C7p * C6p
                             + (C6p + C8p) * Cin_p + Cin_p * Cin_p)
    bytes_accessed = (int(x_flat.size) * 2 + N * H * W * Cin_p * out_isize
                      + weight_bytes)

    out = pl.pallas_call(
        _make_kernel(W, TW, C8p),
        out_shape=jax.ShapeDtypeStruct((N, H * W, Cin_p), out_dtype),
        grid=(N, R),
        in_specs=in_specs,
        out_specs=out_specs,
        scratch_shapes=[pltpu.VMEM(((tile_h + 2) * W, C7p), jnp.bfloat16)],
        compiler_params=pltpu.CompilerParams(
            dimension_semantics=("parallel", "parallel"),
            vmem_limit_bytes=vmem_limit),
        cost_estimate=pl.CostEstimate(flops=int(flops), transcendentals=0,
                                      bytes_accessed=int(bytes_accessed)),
    )(x_flat, halo_top, halo_bot, *kp)

    return out.reshape(N, H, W, Cin_p)[..., :Cin]


def inception_resnet_c(x_nchw, params, *, tile_h=None, out_dtype=jnp.float32):
    """PyTorch-layout (NCHW) compatibility wrapper."""
    x_nhwc = jnp.transpose(x_nchw, (0, 2, 3, 1))
    y_nhwc = inception_resnet_c_nhwc(x_nhwc, params, tile_h=tile_h, out_dtype=out_dtype)
    return jnp.transpose(y_nhwc, (0, 3, 1, 2))


def init_params(key, inCh):
    """Deterministic synthetic parameters; BN folded into per-channel scale/bias.
    Note: real PyTorch Conv2d weights (O, I, kH, kW) must be permuted to the
    (tap, Cin, Cout) layout used here before calling the wrapper."""
    C8, C7, C6 = inCh // 8, inCh // 7, inCh // 6
    eps = 1e-5
    keys = iter(jax.random.split(key, 40))

    def w(shape, scale=0.1):
        return scale * jax.random.normal(next(keys), shape, jnp.float32)

    def bn(c):
        gamma = 1.0 + 0.1 * jax.random.normal(next(keys), (c,), jnp.float32)
        beta = 0.1 * jax.random.normal(next(keys), (c,), jnp.float32)
        mean = 0.1 * jax.random.normal(next(keys), (c,), jnp.float32)
        var = jnp.abs(jax.random.normal(next(keys), (c,), jnp.float32)) + 0.5
        scale = gamma / jnp.sqrt(var + eps)
        bias = beta - mean * scale
        return scale.reshape(1, c), bias.reshape(1, c)

    w0a = w((inCh, C8)); s0a, b0a = bn(C8)
    w0b = w((3, C8, C7)); s0b, b0b = bn(C7)
    w0c = w((3, C7, C6)); s0c, b0c = bn(C6)
    w1 = w((inCh, C8)); s1, b1 = bn(C8)
    wr0 = w((C6, inCh)); wr1 = w((C8, inCh)); br = w((1, inCh))
    ws = w((inCh, inCh)); bs = w((1, inCh))
    so, bo = bn(inCh)
    return (w0a, s0a, b0a, w0b, s0b, b0b, w0c, s0c, b0c,
            w1, s1, b1, wr0, wr1, br, ws, bs, so, bo)


def reference(x_nchw, params):
    """Pure-JAX f32 reference of the same forward (NCHW in / NCHW out)."""
    (w0a, s0a, b0a, w0b, s0b, b0b, w0c, s0c, b0c,
     w1, s1, b1, wr0, wr1, br, ws, bs, so, bo) = params
    x = jnp.transpose(x_nchw, (0, 2, 3, 1)).astype(jnp.float32)
    N, H, W, _ = x.shape

    def mm(a, wmat):
        return jnp.einsum('nhwc,co->nhwo', a, wmat, preferred_element_type=jnp.float32)

    t = jnp.maximum(mm(x, w0a) * s0a + b0a, 0.0)
    tp = jnp.pad(t, ((0, 0), (0, 0), (1, 1), (0, 0)))
    acc = mm(tp[:, :, 0:W, :], w0b[0]) + mm(tp[:, :, 1:W + 1, :], w0b[1]) + mm(tp[:, :, 2:W + 2, :], w0b[2])
    t = jnp.maximum(acc * s0b + b0b, 0.0)
    tp = jnp.pad(t, ((0, 0), (1, 1), (0, 0), (0, 0)))
    acc = mm(tp[:, 0:H, :, :], w0c[0]) + mm(tp[:, 1:H + 1, :, :], w0c[1]) + mm(tp[:, 2:H + 2, :, :], w0c[2])
    x0 = jnp.maximum(acc * s0c + b0c, 0.0)
    x1 = jnp.maximum(mm(x, w1) * s1 + b1, 0.0)
    residual = (mm(x0, wr0) + mm(x1, wr1) + br) * 0.1
    shortcut = mm(x, ws) + bs
    y = jnp.maximum((residual + shortcut) * so + bo, 0.0)
    return jnp.transpose(y, (0, 3, 1, 2))


if __name__ == "__main__":
    key = jax.random.PRNGKey(0)
    kx, kparam = jax.random.split(key)

    N, Cin, H, W = 2, 16, 16, 16            # inCh=16 -> C8=C7=C6=2 (lane-padded to 128)
    x = jax.random.normal(kx, (N, Cin, H, W), jnp.float32)
    params = init_params(kparam, Cin)
    y_ref = reference(x, params)

    # 1) default tiling (whole image fits one row tile at this size)
    y = jax.block_until_ready(inception_resnet_c(x, params))
    assert y.shape == (N, Cin, H, W), y.shape
    if not bool(jnp.allclose(y, y_ref, atol=3e-2, rtol=3e-2)):
        err = float(jnp.max(jnp.abs(y - y_ref)))
        raise AssertionError(f"kernel/reference mismatch (auto tile), max abs err = {err}")

    # 2) explicit row tiling (tile_h=8 -> 2 row tiles: exercises the cross-tile halo)
    y2 = jax.block_until_ready(inception_resnet_c(x, params, tile_h=8))
    if not bool(jnp.allclose(y2, y_ref, atol=3e-2, rtol=3e-2)):
        err2 = float(jnp.max(jnp.abs(y2 - y_ref)))
        raise AssertionError(f"kernel/reference mismatch (tile_h=8), max abs err = {err2}")

    print("KERNEL_OK")
</pallas_src>

<mosaic_0001>
module attributes {stable_mosaic.version = 11 : i64} {
  func.func @kernel(%arg0: i32, %arg1: i32, %arg2: memref<1x256x128xbf16, #tpu.memory_space<vmem>>, %arg3: memref<1x1x16x128xbf16, #tpu.memory_space<vmem>>, %arg4: memref<1x1x16x128xbf16, #tpu.memory_space<vmem>>, %arg5: memref<128x256xbf16, #tpu.memory_space<vmem>>, %arg6: memref<1x256xf32, #tpu.memory_space<vmem>>, %arg7: memref<3x128x128xbf16, #tpu.memory_space<vmem>>, %arg8: memref<1x128xf32, #tpu.memory_space<vmem>>, %arg9: memref<3x128x128xbf16, #tpu.memory_space<vmem>>, %arg10: memref<1x128xf32, #tpu.memory_space<vmem>>, %arg11: memref<256x128xbf16, #tpu.memory_space<vmem>>, %arg12: memref<128x128xbf16, #tpu.memory_space<vmem>>, %arg13: memref<1x128xf32, #tpu.memory_space<vmem>>, %arg14: memref<1x256x128xf32, #tpu.memory_space<vmem>>, %arg15: memref<288x128xbf16, #tpu.memory_space<vmem>>) attributes {dimension_semantics = [#tpu.dimension_semantics<parallel>, #tpu.dimension_semantics<parallel>], iteration_bounds = array<i64: 2, 1>, scalar_prefetch = 0 : i64, scratch_operands = 1 : i64, tpu.core_type = #tpu.core_type<tc>, window_params = [{transform_indices = @transform_0, window_bounds = array<i64: 1, 256, 128>}, {transform_indices = @transform_1, window_bounds = array<i64: 1, 1, 16, 128>}, {transform_indices = @transform_2, window_bounds = array<i64: 1, 1, 16, 128>}, {pipeline_mode = #tpu.pipeline_mode<synchronous>, transform_indices = @transform_3, window_bounds = array<i64: 128, 256>}, {pipeline_mode = #tpu.pipeline_mode<synchronous>, transform_indices = @transform_4, window_bounds = array<i64: 1, 256>}, {pipeline_mode = #tpu.pipeline_mode<synchronous>, transform_indices = @transform_5, window_bounds = array<i64: 3, 128, 128>}, {pipeline_mode = #tpu.pipeline_mode<synchronous>, transform_indices = @transform_6, window_bounds = array<i64: 1, 128>}, {pipeline_mode = #tpu.pipeline_mode<synchronous>, transform_indices = @transform_7, window_bounds = array<i64: 3, 128, 128>}, {pipeline_mode = #tpu.pipeline_mode<synchronous>, transform_indices = @transform_8, window_bounds = array<i64: 1, 128>}, {pipeline_mode = #tpu.pipeline_mode<synchronous>, transform_indices = @transform_9, window_bounds = array<i64: 256, 128>}, {pipeline_mode = #tpu.pipeline_mode<synchronous>, transform_indices = @transform_10, window_bounds = array<i64: 128, 128>}, {pipeline_mode = #tpu.pipeline_mode<synchronous>, transform_indices = @transform_11, window_bounds = array<i64: 1, 128>}, {transform_indices = @transform_12, window_bounds = array<i64: 1, 256, 128>}]} {
    %c0 = arith.constant 0 : index
    %c0_0 = arith.constant 0 : index
    %c0_1 = arith.constant 0 : index
    %0 = vector.load %arg2[%c0, %c0_0, %c0_1] : memref<1x256x128xbf16, #tpu.memory_space<vmem>>, vector<1x256x128xbf16>
    %1 = vector.shape_cast %0 : vector<1x256x128xbf16> to vector<256x128xbf16>
    %c0_2 = arith.constant 0 : index
    %c0_3 = arith.constant 0 : index
    %2 = vector.load %arg5[%c0_2, %c0_3] : memref<128x256xbf16, #tpu.memory_space<vmem>>, vector<128x256xbf16>
    %cst = arith.constant dense<0.000000e+00> : vector<256x256xf32>
    %3 = tpu.matmul %1, %2, %cst {dimension_numbers = #tpu.dot_dimension_numbers<[1], [0], [0], [1], [0, 0, 1, 1], [], []>} : vector<256x128xbf16>, vector<128x256xbf16>, vector<256x256xf32> -> vector<256x256xf32>
    %c0_4 = arith.constant 0 : index
    %c0_5 = arith.constant 0 : index
    %4 = vector.load %arg6[%c0_4, %c0_5] : memref<1x256xf32, #tpu.memory_space<vmem>>, vector<1x256xf32>
    %5 = vector.broadcast %4 : vector<1x256xf32> to vector<256x256xf32>
    %6 = arith.addf %3, %5 : vector<256x256xf32>
    %cst_6 = arith.constant 0.000000e+00 : f32
    %7 = vector.broadcast %cst_6 : f32 to vector<256x256xf32>
    %8 = arith.maximumf %6, %7 : vector<256x256xf32>
    %9 = vector.extract_strided_slice %8 {offsets = [0, 0], sizes = [256, 128], strides = [1, 1]} : vector<256x256xf32> to vector<256x128xf32>
    %10 = vector.extract_strided_slice %8 {offsets = [0, 128], sizes = [256, 128], strides = [1, 1]} : vector<256x256xf32> to vector<256x128xf32>
    %11 = tpu.iota {dimensions = array<i32: 0>} : vector<256x128xi32>
    %c16_i32 = arith.constant 16 : i32
    %c0_i32 = arith.constant 0 : i32
    %12 = arith.cmpi eq, %c16_i32, %c0_i32 : i32
    %c1_i32 = arith.constant 1 : i32
    %13 = arith.select %12, %c1_i32, %c16_i32 : i32
    %14 = vector.broadcast %13 : i32 to vector<256x128xi32>
    %15 = arith.remsi %11, %14 : vector<256x128xi32>
    %c0_i32_7 = arith.constant 0 : i32
    %16 = vector.broadcast %c0_i32_7 : i32 to vector<256x128xi32>
    %17 = arith.cmpi ne, %15, %16 : vector<256x128xi32>
    %c0_i32_8 = arith.constant 0 : i32
    %18 = vector.broadcast %c0_i32_8 : i32 to vector<256x128xi32>
    %19 = arith.cmpi slt, %15, %18 : vector<256x128xi32>
    %c0_i32_9 = arith.constant 0 : i32
    %20 = arith.cmpi slt, %13, %c0_i32_9 : i32
    %21 = vector.broadcast %20 : i1 to vector<256x128xi1>
    %22 = vector.broadcast %21 : vector<256x128xi1> to vector<256x128xi1>
    %23 = arith.xori %19, %22 : vector<256x128xi1>
    %24 = arith.andi %23, %17 : vector<256x128xi1>
    %25 = vector.broadcast %13 : i32 to vector<256x128xi32>
    %26 = arith.addi %15, %25 : vector<256x128xi32>
    %27 = arith.select %24, %26, %15 : vector<256x128xi1>, vector<256x128xi32>
    %c0_i32_10 = arith.constant 0 : i32
    %28 = vector.broadcast %c0_i32_10 : i32 to vector<256x128xi32>
    %29 = arith.cmpi ne, %27, %28 : vector<256x128xi32>
    %c1_i32_11 = arith.constant 1 : i32
    %30 = tpu.dynamic_rotate %9 by %c1_i32_11 dim 0 : vector<256x128xf32>, i32 -> vector<256x128xf32>
    %cst_12 = arith.constant 0.000000e+00 : f32
    %31 = vector.broadcast %cst_12 : f32 to vector<256x128xf32>
    %32 = arith.select %29, %30, %31 : vector<256x128xi1>, vector<256x128xf32>
    %c15_i32 = arith.constant 15 : i32
    %33 = vector.broadcast %c15_i32 : i32 to vector<256x128xi32>
    %34 = arith.cmpi ne, %27, %33 : vector<256x128xi32>
    %c255_i32 = arith.constant 255 : i32
    %35 = tpu.dynamic_rotate %9 by %c255_i32 dim 0 : vector<256x128xf32>, i32 -> vector<256x128xf32>
    %cst_13 = arith.constant 0.000000e+00 : f32
    %36 = vector.broadcast %cst_13 : f32 to vector<256x128xf32>
    %37 = arith.select %34, %35, %36 : vector<256x128xi1>, vector<256x128xf32>
    %38 = arith.truncf %32 : vector<256x128xf32> to vector<256x128xbf16>
    %c0_14 = arith.constant 0 : index
    %c0_15 = arith.constant 0 : index
    %c0_16 = arith.constant 0 : index
    %39 = vector.load %arg7[%c0_14, %c0_15, %c0_16] : memref<3x128x128xbf16, #tpu.memory_space<vmem>>, vector<1x128x128xbf16>
    %40 = vector.shape_cast %39 : vector<1x128x128xbf16> to vector<128x128xbf16>
    %cst_17 = arith.constant dense<0.000000e+00> : vector<256x128xf32>
    %41 = tpu.matmul %38, %40, %cst_17 {dimension_numbers = #tpu.dot_dimension_numbers<[1], [0], [0], [1], [0, 0, 1, 1], [], []>} : vector<256x128xbf16>, vector<128x128xbf16>, vector<256x128xf32> -> vector<256x128xf32>
    %42 = arith.truncf %9 : vector<256x128xf32> to vector<256x128xbf16>
    %c1 = arith.constant 1 : index
    %c0_18 = arith.constant 0 : index
    %c0_19 = arith.constant 0 : index
    %43 = vector.load %arg7[%c1, %c0_18, %c0_19] : memref<3x128x128xbf16, #tpu.memory_space<vmem>>, vector<1x128x128xbf16>
    %44 = vector.shape_cast %43 : vector<1x128x128xbf16> to vector<128x128xbf16>
    %cst_20 = arith.constant dense<0.000000e+00> : vector<256x128xf32>
    %45 = tpu.matmul %42, %44, %cst_20 {dimension_numbers = #tpu.dot_dimension_numbers<[1], [0], [0], [1], [0, 0, 1, 1], [], []>} : vector<256x128xbf16>, vector<128x128xbf16>, vector<256x128xf32> -> vector<256x128xf32>
    %46 = arith.addf %41, %45 : vector<256x128xf32>
    %47 = arith.truncf %37 : vector<256x128xf32> to vector<256x128xbf16>
    %c2 = arith.constant 2 : index
    %c0_21 = arith.constant 0 : index
    %c0_22 = arith.constant 0 : index
    %48 = vector.load %arg7[%c2, %c0_21, %c0_22] : memref<3x128x128xbf16, #tpu.memory_space<vmem>>, vector<1x128x128xbf16>
    %49 = vector.shape_cast %48 : vector<1x128x128xbf16> to vector<128x128xbf16>
    %cst_23 = arith.constant dense<0.000000e+00> : vector<256x128xf32>
    %50 = tpu.matmul %47, %49, %cst_23 {dimension_numbers = #tpu.dot_dimension_numbers<[1], [0], [0], [1], [0, 0, 1, 1], [], []>} : vector<256x128xbf16>, vector<128x128xbf16>, vector<256x128xf32> -> vector<256x128xf32>
    %51 = arith.addf %46, %50 : vector<256x128xf32>
    %c0_24 = arith.constant 0 : index
    %c0_25 = arith.constant 0 : index
    %52 = vector.load %arg8[%c0_24, %c0_25] : memref<1x128xf32, #tpu.memory_space<vmem>>, vector<1x128xf32>
    %53 = vector.broadcast %52 : vector<1x128xf32> to vector<256x128xf32>
    %54 = arith.addf %51, %53 : vector<256x128xf32>
    %cst_26 = arith.constant 0.000000e+00 : f32
    %55 = vector.broadcast %cst_26 : f32 to vector<256x128xf32>
    %56 = arith.maximumf %54, %55 : vector<256x128xf32>
    %57 = arith.truncf %56 : vector<256x128xf32> to vector<256x128xbf16>
    %c16 = arith.constant 16 : index
    %c0_27 = arith.constant 0 : index
    %58 = vector.load %arg15[%c16, %c0_27] : memref<288x128xbf16, #tpu.memory_space<vmem>>, vector<256x128xbf16>
    tpu.vector_store %arg15[%c16, %c0_27], %57 {strides = array<i32>} : memref<288x128xbf16, #tpu.memory_space<vmem>>, vector<256x128xbf16>,
    %c0_i32_28 = arith.constant 0 : i32
    %59 = arith.cmpi sgt, %arg1, %c0_i32_28 : i32
    %60 = arith.extui %59 : i1 to i32
    %c0_i32_29 = arith.constant 0 : i32
    %61 = arith.cmpi ne, %60, %c0_i32_29 : i32
    scf.if %61 {
      %c0_66 = arith.constant 0 : index
      %c0_67 = arith.constant 0 : index
      %c0_68 = arith.constant 0 : index
      %c0_69 = arith.constant 0 : index
      %105 = vector.load %arg3[%c0_66, %c0_67, %c0_68, %c0_69] : memref<1x1x16x128xbf16, #tpu.memory_space<vmem>>, vector<1x1x16x128xbf16>
      %106 = vector.shape_cast %105 : vector<1x1x16x128xbf16> to vector<16x128xbf16>
      %c0_70 = arith.constant 0 : index
      %c0_71 = arith.constant 0 : index
      %107 = vector.load %arg5[%c0_70, %c0_71] : memref<128x256xbf16, #tpu.memory_space<vmem>>, vector<128x256xbf16>
      %cst_72 = arith.constant dense<0.000000e+00> : vector<16x256xf32>
      %108 = tpu.matmul %106, %107, %cst_72 {dimension_numbers = #tpu.dot_dimension_numbers<[1], [0], [0], [1], [0, 0, 1, 1], [], []>} : vector<16x128xbf16>, vector<128x256xbf16>, vector<16x256xf32> -> vector<16x256xf32>
      %c0_73 = arith.constant 0 : index
      %c0_74 = arith.constant 0 : index
      %109 = vector.load %arg6[%c0_73, %c0_74] : memref<1x256xf32, #tpu.memory_space<vmem>>, vector<1x256xf32>
      %110 = vector.broadcast %109 : vector<1x256xf32> to vector<16x256xf32>
      %111 = arith.addf %108, %110 : vector<16x256xf32>
      %cst_75 = arith.constant 0.000000e+00 : f32
      %112 = vector.broadcast %cst_75 : f32 to vector<16x256xf32>
      %113 = arith.maximumf %111, %112 : vector<16x256xf32>
      %114 = vector.extract_strided_slice %113 {offsets = [0, 0], sizes = [16, 128], strides = [1, 1]} : vector<16x256xf32> to vector<16x128xf32>
      %115 = tpu.iota {dimensions = array<i32: 0>} : vector<16x128xi32>
      %c16_i32_76 = arith.constant 16 : i32
      %c0_i32_77 = arith.constant 0 : i32
      %116 = arith.cmpi eq, %c16_i32_76, %c0_i32_77 : i32
      %c1_i32_78 = arith.constant 1 : i32
      %117 = arith.select %116, %c1_i32_78, %c16_i32_76 : i32
      %118 = vector.broadcast %117 : i32 to vector<16x128xi32>
      %119 = arith.remsi %115, %118 : vector<16x128xi32>
      %c0_i32_79 = arith.constant 0 : i32
      %120 = vector.broadcast %c0_i32_79 : i32 to vector<16x128xi32>
      %121 = arith.cmpi ne, %119, %120 : vector<16x128xi32>
      %c0_i32_80 = arith.constant 0 : i32
      %122 = vector.broadcast %c0_i32_80 : i32 to vector<16x128xi32>
      %123 = arith.cmpi slt, %119, %122 : vector<16x128xi32>
      %c0_i32_81 = arith.constant 0 : i32
      %124 = arith.cmpi slt, %117, %c0_i32_81 : i32
      %125 = vector.broadcast %124 : i1 to vector<16x128xi1>
      %126 = vector.broadcast %125 : vector<16x128xi1> to vector<16x128xi1>
      %127 = arith.xori %123, %126 : vector<16x128xi1>
      %128 = arith.andi %127, %121 : vector<16x128xi1>
      %129 = vector.broadcast %117 : i32 to vector<16x128xi32>
      %130 = arith.addi %119, %129 : vector<16x128xi32>
      %131 = arith.select %128, %130, %119 : vector<16x128xi1>, vector<16x128xi32>
      %c0_i32_82 = arith.constant 0 : i32
      %132 = vector.broadcast %c0_i32_82 : i32 to vector<16x128xi32>
      %133 = arith.cmpi ne, %131, %132 : vector<16x128xi32>
      %c1_i32_83 = arith.constant 1 : i32
      %134 = tpu.dynamic_rotate %114 by %c1_i32_83 dim 0 : vector<16x128xf32>, i32 -> vector<16x128xf32>
      %cst_84 = arith.constant 0.000000e+00 : f32
      %135 = vector.broadcast %cst_84 : f32 to vector<16x128xf32>
      %136 = arith.select %133, %134, %135 : vector<16x128xi1>, vector<16x128xf32>
      %c15_i32_85 = arith.constant 15 : i32
      %137 = vector.broadcast %c15_i32_85 : i32 to vector<16x128xi32>
      %138 = arith.cmpi ne, %131, %137 : vector<16x128xi32>
      %c15_i32_86 = arith.constant 15 : i32
      %139 = tpu.dynamic_rotate %114 by %c15_i32_86 dim 0 : vector<16x128xf32>, i32 -> vector<16x128xf32>
      %cst_87 = arith.constant 0.000000e+00 : f32
      %140 = vector.broadcast %cst_87 : f32 to vector<16x128xf32>
      %141 = arith.select %138, %139, %140 : vector<16x128xi1>, vector<16x128xf32>
      %142 = arith.truncf %136 : vector<16x128xf32> to vector<16x128xbf16>
      %c0_88 = arith.constant 0 : index
      %c0_89 = arith.constant 0 : index
      %c0_90 = arith.constant 0 : index
      %143 = vector.load %arg7[%c0_88, %c0_89, %c0_90] : memref<3x128x128xbf16, #tpu.memory_space<vmem>>, vector<1x128x128xbf16>
      %144 = vector.shape_cast %143 : vector<1x128x128xbf16> to vector<128x128xbf16>
      %cst_91 = arith.constant dense<0.000000e+00> : vector<16x128xf32>
      %145 = tpu.matmul %142, %144, %cst_91 {dimension_numbers = #tpu.dot_dimension_numbers<[1], [0], [0], [1], [0, 0, 1, 1], [], []>} : vector<16x128xbf16>, vector<128x128xbf16>, vector<16x128xf32> -> vector<16x128xf32>
      %146 = arith.truncf %114 : vector<16x128xf32> to vector<16x128xbf16>
      %c1_92 = arith.constant 1 : index
      %c0_93 = arith.constant 0 : index
      %c0_94 = arith.constant 0 : index
      %147 = vector.load %arg7[%c1_92, %c0_93, %c0_94] : memref<3x128x128xbf16, #tpu.memory_space<vmem>>, vector<1x128x128xbf16>
      %148 = vector.shape_cast %147 : vector<1x128x128xbf16> to vector<128x128xbf16>
      %cst_95 = arith.constant dense<0.000000e+00> : vector<16x128xf32>
      %149 = tpu.matmul %146, %148, %cst_95 {dimension_numbers = #tpu.dot_dimension_numbers<[1], [0], [0], [1], [0, 0, 1, 1], [], []>} : vector<16x128xbf16>, vector<128x128xbf16>, vector<16x128xf32> -> vector<16x128xf32>
      %150 = arith.addf %145, %149 : vector<16x128xf32>
      %151 = arith.truncf %141 : vector<16x128xf32> to vector<16x128xbf16>
      %c2_96 = arith.constant 2 : index
      %c0_97 = arith.constant 0 : index
      %c0_98 = arith.constant 0 : index
      %152 = vector.load %arg7[%c2_96, %c0_97, %c0_98] : memref<3x128x128xbf16, #tpu.memory_space<vmem>>, vector<1x128x128xbf16>
      %153 = vector.shape_cast %152 : vector<1x128x128xbf16> to vector<128x128xbf16>
      %cst_99 = arith.constant dense<0.000000e+00> : vector<16x128xf32>
      %154 = tpu.matmul %151, %153, %cst_99 {dimension_numbers = #tpu.dot_dimension_numbers<[1], [0], [0], [1], [0, 0, 1, 1], [], []>} : vector<16x128xbf16>, vector<128x128xbf16>, vector<16x128xf32> -> vector<16x128xf32>
      %155 = arith.addf %150, %154 : vector<16x128xf32>
      %c0_100 = arith.constant 0 : index
      %c0_101 = arith.constant 0 : index
      %156 = vector.load %arg8[%c0_100, %c0_101] : memref<1x128xf32, #tpu.memory_space<vmem>>, vector<1x128xf32>
      %157 = vector.broadcast %156 : vector<1x128xf32> to vector<16x128xf32>
      %158 = arith.addf %155, %157 : vector<16x128xf32>
      %cst_102 = arith.constant 0.000000e+00 : f32
      %159 = vector.broadcast %cst_102 : f32 to vector<16x128xf32>
      %160 = arith.maximumf %158, %159 : vector<16x128xf32>
      %161 = arith.truncf %160 : vector<16x128xf32> to vector<16x128xbf16>
      %c0_103 = arith.constant 0 : index
      %c0_104 = arith.constant 0 : index
      %162 = vector.load %arg15[%c0_103, %c0_104] : memref<288x128xbf16, #tpu.memory_space<vmem>>, vector<16x128xbf16>
      tpu.vector_store %arg15[%c0_103, %c0_104], %161 {strides = array<i32>} : memref<288x128xbf16, #tpu.memory_space<vmem>>, vector<16x128xbf16>,
    } else {
    }
    %c0_i32_30 = arith.constant 0 : i32
    %62 = arith.cmpi eq, %arg1, %c0_i32_30 : i32
    %63 = arith.extui %62 : i1 to i32
    %c0_i32_31 = arith.constant 0 : i32
    %64 = arith.cmpi ne, %63, %c0_i32_31 : i32
    scf.if %64 {
      %cst_66 = arith.constant 0.000000e+00 : bf16
      %105 = vector.broadcast %cst_66 : bf16 to vector<16x128xbf16>
      %c0_67 = arith.constant 0 : index
      %c0_68 = arith.constant 0 : index
      %106 = vector.load %arg15[%c0_67, %c0_68] : memref<288x128xbf16, #tpu.memory_space<vmem>>, vector<16x128xbf16>
      tpu.vector_store %arg15[%c0_67, %c0_68], %105 {strides = array<i32>} : memref<288x128xbf16, #tpu.memory_space<vmem>>, vector<16x128xbf16>,
    } else {
    }
    %c0_i32_32 = arith.constant 0 : i32
    %65 = arith.cmpi slt, %arg1, %c0_i32_32 : i32
    %66 = arith.extui %65 : i1 to i32
    %c0_i32_33 = arith.constant 0 : i32
    %67 = arith.cmpi ne, %66, %c0_i32_33 : i32
    scf.if %67 {
      %c0_66 = arith.constant 0 : index
      %c0_67 = arith.constant 0 : index
      %c0_68 = arith.constant 0 : index
      %c0_69 = arith.constant 0 : index
      %105 = vector.load %arg4[%c0_66, %c0_67, %c0_68, %c0_69] : memref<1x1x16x128xbf16, #tpu.memory_space<vmem>>, vector<1x1x16x128xbf16>
      %106 = vector.shape_cast %105 : vector<1x1x16x128xbf16> to vector<16x128xbf16>
      %c0_70 = arith.constant 0 : index
      %c0_71 = arith.constant 0 : index
      %107 = vector.load %arg5[%c0_70, %c0_71] : memref<128x256xbf16, #tpu.memory_space<vmem>>, vector<128x256xbf16>
      %cst_72 = arith.constant dense<0.000000e+00> : vector<16x256xf32>
      %108 = tpu.matmul %106, %107, %cst_72 {dimension_numbers = #tpu.dot_dimension_numbers<[1], [0], [0], [1], [0, 0, 1, 1], [], []>} : vector<16x128xbf16>, vector<128x256xbf16>, vector<16x256xf32> -> vector<16x256xf32>
      %c0_73 = arith.constant 0 : index
      %c0_74 = arith.constant 0 : index
      %109 = vector.load %arg6[%c0_73, %c0_74] : memref<1x256xf32, #tpu.memory_space<vmem>>, vector<1x256xf32>
      %110 = vector.broadcast %109 : vector<1x256xf32> to vector<16x256xf32>
      %111 = arith.addf %108, %110 : vector<16x256xf32>
      %cst_75 = arith.constant 0.000000e+00 : f32
      %112 = vector.broadcast %cst_75 : f32 to vector<16x256xf32>
      %113 = arith.maximumf %111, %112 : vector<16x256xf32>
      %114 = vector.extract_strided_slice %113 {offsets = [0, 0], sizes = [16, 128], strides = [1, 1]} : vector<16x256xf32> to vector<16x128xf32>
      %115 = tpu.iota {dimensions = array<i32: 0>} : vector<16x128xi32>
      %c16_i32_76 = arith.constant 16 : i32
      %c0_i32_77 = arith.constant 0 : i32
      %116 = arith.cmpi eq, %c16_i32_76, %c0_i32_77 : i32
      %c1_i32_78 = arith.constant 1 : i32
      %117 = arith.select %116, %c1_i32_78, %c16_i32_76 : i32
      %118 = vector.broadcast %117 : i32 to vector<16x128xi32>
      %119 = arith.remsi %115, %118 : vector<16x128xi32>
      %c0_i32_79 = arith.constant 0 : i32
      %120 = vector.broadcast %c0_i32_79 : i32 to vector<16x128xi32>
      %121 = arith.cmpi ne, %119, %120 : vector<16x128xi32>
      %c0_i32_80 = arith.constant 0 : i32
      %122 = vector.broadcast %c0_i32_80 : i32 to vector<16x128xi32>
      %123 = arith.cmpi slt, %119, %122 : vector<16x128xi32>
      %c0_i32_81 = arith.constant 0 : i32
      %124 = arith.cmpi slt, %117, %c0_i32_81 : i32
      %125 = vector.broadcast %124 : i1 to vector<16x128xi1>
      %126 = vector.broadcast %125 : vector<16x128xi1> to vector<16x128xi1>
      %127 = arith.xori %123, %126 : vector<16x128xi1>
      %128 = arith.andi %127, %121 : vector<16x128xi1>
      %129 = vector.broadcast %117 : i32 to vector<16x128xi32>
      %130 = arith.addi %119, %129 : vector<16x128xi32>
      %131 = arith.select %128, %130, %119 : vector<16x128xi1>, vector<16x128xi32>
      %c0_i32_82 = arith.constant 0 : i32
      %132 = vector.broadcast %c0_i32_82 : i32 to vector<16x128xi32>
      %133 = arith.cmpi ne, %131, %132 : vector<16x128xi32>
      %c1_i32_83 = arith.constant 1 : i32
      %134 = tpu.dynamic_rotate %114 by %c1_i32_83 dim 0 : vector<16x128xf32>, i32 -> vector<16x128xf32>
      %cst_84 = arith.constant 0.000000e+00 : f32
      %135 = vector.broadcast %cst_84 : f32 to vector<16x128xf32>
      %136 = arith.select %133, %134, %135 : vector<16x128xi1>, vector<16x128xf32>
      %c15_i32_85 = arith.constant 15 : i32
      %137 = vector.broadcast %c15_i32_85 : i32 to vector<16x128xi32>
      %138 = arith.cmpi ne, %131, %137 : vector<16x128xi32>
      %c15_i32_86 = arith.constant 15 : i32
      %139 = tpu.dynamic_rotate %114 by %c15_i32_86 dim 0 : vector<16x128xf32>, i32 -> vector<16x128xf32>
      %cst_87 = arith.constant 0.000000e+00 : f32
      %140 = vector.broadcast %cst_87 : f32 to vector<16x128xf32>
      %141 = arith.select %138, %139, %140 : vector<16x128xi1>, vector<16x128xf32>
      %142 = arith.truncf %136 : vector<16x128xf32> to vector<16x128xbf16>
      %c0_88 = arith.constant 0 : index
      %c0_89 = arith.constant 0 : index
      %c0_90 = arith.constant 0 : index
      %143 = vector.load %arg7[%c0_88, %c0_89, %c0_90] : memref<3x128x128xbf16, #tpu.memory_space<vmem>>, vector<1x128x128xbf16>
      %144 = vector.shape_cast %143 : vector<1x128x128xbf16> to vector<128x128xbf16>
      %cst_91 = arith.constant dense<0.000000e+00> : vector<16x128xf32>
      %145 = tpu.matmul %142, %144, %cst_91 {dimension_numbers = #tpu.dot_dimension_numbers<[1], [0], [0], [1], [0, 0, 1, 1], [], []>} : vector<16x128xbf16>, vector<128x128xbf16>, vector<16x128xf32> -> vector<16x128xf32>
      %146 = arith.truncf %114 : vector<16x128xf32> to vector<16x128xbf16>
      %c1_92 = arith.constant 1 : index
      %c0_93 = arith.constant 0 : index
      %c0_94 = arith.constant 0 : index
      %147 = vector.load %arg7[%c1_92, %c0_93, %c0_94] : memref<3x128x128xbf16, #tpu.memory_space<vmem>>, vector<1x128x128xbf16>
      %148 = vector.shape_cast %147 : vector<1x128x128xbf16> to vector<128x128xbf16>
      %cst_95 = arith.constant dense<0.000000e+00> : vector<16x128xf32>
      %149 = tpu.matmul %146, %148, %cst_95 {dimension_numbers = #tpu.dot_dimension_numbers<[1], [0], [0], [1], [0, 0, 1, 1], [], []>} : vector<16x128xbf16>, vector<128x128xbf16>, vector<16x128xf32> -> vector<16x128xf32>
      %150 = arith.addf %145, %149 : vector<16x128xf32>
      %151 = arith.truncf %141 : vector<16x128xf32> to vector<16x128xbf16>
      %c2_96 = arith.constant 2 : index
      %c0_97 = arith.constant 0 : index
      %c0_98 = arith.constant 0 : index
      %152 = vector.load %arg7[%c2_96, %c0_97, %c0_98] : memref<3x128x128xbf16, #tpu.memory_space<vmem>>, vector<1x128x128xbf16>
      %153 = vector.shape_cast %152 : vector<1x128x128xbf16> to vector<128x128xbf16>
      %cst_99 = arith.constant dense<0.000000e+00> : vector<16x128xf32>
      %154 = tpu.matmul %151, %153, %cst_99 {dimension_numbers = #tpu.dot_dimension_numbers<[1], [0], [0], [1], [0, 0, 1, 1], [], []>} : vector<16x128xbf16>, vector<128x128xbf16>, vector<16x128xf32> -> vector<16x128xf32>
      %155 = arith.addf %150, %154 : vector<16x128xf32>
      %c0_100 = arith.constant 0 : index
      %c0_101 = arith.constant 0 : index
      %156 = vector.load %arg8[%c0_100, %c0_101] : memref<1x128xf32, #tpu.memory_space<vmem>>, vector<1x128xf32>
      %157 = vector.broadcast %156 : vector<1x128xf32> to vector<16x128xf32>
      %158 = arith.addf %155, %157 : vector<16x128xf32>
      %cst_102 = arith.constant 0.000000e+00 : f32
      %159 = vector.broadcast %cst_102 : f32 to vector<16x128xf32>
      %160 = arith.maximumf %158, %159 : vector<16x128xf32>
      %161 = arith.truncf %160 : vector<16x128xf32> to vector<16x128xbf16>
      %c272 = arith.constant 272 : index
      %c0_103 = arith.constant 0 : index
      %162 = vector.load %arg15[%c272, %c0_103] : memref<288x128xbf16, #tpu.memory_space<vmem>>, vector<16x128xbf16>
      tpu.vector_store %arg15[%c272, %c0_103], %161 {strides = array<i32>} : memref<288x128xbf16, #tpu.memory_space<vmem>>, vector<16x128xbf16>,
    } else {
    }
    %c0_i32_34 = arith.constant 0 : i32
    %68 = arith.cmpi eq, %arg1, %c0_i32_34 : i32
    %69 = arith.extui %68 : i1 to i32
    %c0_i32_35 = arith.constant 0 : i32
    %70 = arith.cmpi ne, %69, %c0_i32_35 : i32
    scf.if %70 {
      %cst_66 = arith.constant 0.000000e+00 : bf16
      %105 = vector.broadcast %cst_66 : bf16 to vector<16x128xbf16>
      %c272 = arith.constant 272 : index
      %c0_67 = arith.constant 0 : index
      %106 = vector.load %arg15[%c272, %c0_67] : memref<288x128xbf16, #tpu.memory_space<vmem>>, vector<16x128xbf16>
      tpu.vector_store %arg15[%c272, %c0_67], %105 {strides = array<i32>} : memref<288x128xbf16, #tpu.memory_space<vmem>>, vector<16x128xbf16>,
    } else {
    }
    %c0_36 = arith.constant 0 : index
    %c0_37 = arith.constant 0 : index
    %71 = vector.load %arg15[%c0_36, %c0_37] : memref<288x128xbf16, #tpu.memory_space<vmem>>, vector<256x128xbf16>
    %c32 = arith.constant 32 : index
    %c0_38 = arith.constant 0 : index
    %72 = vector.load %arg15[%c32, %c0_38] : memref<288x128xbf16, #tpu.memory_space<vmem>>, vector<256x128xbf16>
    %c0_39 = arith.constant 0 : index
    %c0_40 = arith.constant 0 : index
    %c0_41 = arith.constant 0 : index
    %73 = vector.load %arg9[%c0_39, %c0_40, %c0_41] : memref<3x128x128xbf16, #tpu.memory_space<vmem>>, vector<1x128x128xbf16>
    %74 = vector.shape_cast %73 : vector<1x128x128xbf16> to vector<128x128xbf16>
    %cst_42 = arith.constant dense<0.000000e+00> : vector<256x128xf32>
    %75 = tpu.matmul %71, %74, %cst_42 {dimension_numbers = #tpu.dot_dimension_numbers<[1], [0], [0], [1], [0, 0, 1, 1], [], []>} : vector<256x128xbf16>, vector<128x128xbf16>, vector<256x128xf32> -> vector<256x128xf32>
    %c1_43 = arith.constant 1 : index
    %c0_44 = arith.constant 0 : index
    %c0_45 = arith.constant 0 : index
    %76 = vector.load %arg9[%c1_43, %c0_44, %c0_45] : memref<3x128x128xbf16, #tpu.memory_space<vmem>>, vector<1x128x128xbf16>
    %77 = vector.shape_cast %76 : vector<1x128x128xbf16> to vector<128x128xbf16>
    %cst_46 = arith.constant dense<0.000000e+00> : vector<256x128xf32>
    %78 = tpu.matmul %57, %77, %cst_46 {dimension_numbers = #tpu.dot_dimension_numbers<[1], [0], [0], [1], [0, 0, 1, 1], [], []>} : vector<256x128xbf16>, vector<128x128xbf16>, vector<256x128xf32> -> vector<256x128xf32>
    %79 = arith.addf %75, %78 : vector<256x128xf32>
    %c2_47 = arith.constant 2 : index
    %c0_48 = arith.constant 0 : index
    %c0_49 = arith.constant 0 : index
    %80 = vector.load %arg9[%c2_47, %c0_48, %c0_49] : memref<3x128x128xbf16, #tpu.memory_space<vmem>>, vector<1x128x128xbf16>
    %81 = vector.shape_cast %80 : vector<1x128x128xbf16> to vector<128x128xbf16>
    %cst_50 = arith.constant dense<0.000000e+00> : vector<256x128xf32>
    %82 = tpu.matmul %72, %81, %cst_50 {dimension_numbers = #tpu.dot_dimension_numbers<[1], [0], [0], [1], [0, 0, 1, 1], [], []>} : vector<256x128xbf16>, vector<128x128xbf16>, vector<256x128xf32> -> vector<256x128xf32>
    %83 = arith.addf %79, %82 : vector<256x128xf32>
    %c0_51 = arith.constant 0 : index
    %c0_52 = arith.constant 0 : index
    %84 = vector.load %arg10[%c0_51, %c0_52] : memref<1x128xf32, #tpu.memory_space<vmem>>, vector<1x128xf32>
    %85 = vector.broadcast %84 : vector<1x128xf32> to vector<256x128xf32>
    %86 = arith.addf %83, %85 : vector<256x128xf32>
    %cst_53 = arith.constant 0.000000e+00 : f32
    %87 = vector.broadcast %cst_53 : f32 to vector<256x128xf32>
    %88 = arith.maximumf %86, %87 : vector<256x128xf32>
    %89 = arith.truncf %88 : vector<256x128xf32> to vector<256x128xbf16>
    %90 = arith.truncf %10 : vector<256x128xf32> to vector<256x128xbf16>
    %91 = tpu.concatenate %89, %90 in 1 : vector<256x128xbf16>, vector<256x128xbf16> -> vector<256x256xbf16>
    %c0_54 = arith.constant 0 : index
    %c0_55 = arith.constant 0 : index
    %92 = vector.load %arg11[%c0_54, %c0_55] : memref<256x128xbf16, #tpu.memory_space<vmem>>, vector<256x128xbf16>
    %cst_56 = arith.constant dense<0.000000e+00> : vector<256x128xf32>
    %93 = tpu.matmul %91, %92, %cst_56 {dimension_numbers = #tpu.dot_dimension_numbers<[1], [0], [0], [1], [0, 0, 1, 1], [], []>} : vector<256x256xbf16>, vector<256x128xbf16>, vector<256x128xf32> -> vector<256x128xf32>
    %c0_57 = arith.constant 0 : index
    %c0_58 = arith.constant 0 : index
    %94 = vector.load %arg12[%c0_57, %c0_58] : memref<128x128xbf16, #tpu.memory_space<vmem>>, vector<128x128xbf16>
    %cst_59 = arith.constant dense<0.000000e+00> : vector<256x128xf32>
    %95 = tpu.matmul %1, %94, %cst_59 {dimension_numbers = #tpu.dot_dimension_numbers<[1], [0], [0], [1], [0, 0, 1, 1], [], []>} : vector<256x128xbf16>, vector<128x128xbf16>, vector<256x128xf32> -> vector<256x128xf32>
    %96 = arith.addf %93, %95 : vector<256x128xf32>
    %c0_60 = arith.constant 0 : index
    %c0_61 = arith.constant 0 : index
    %97 = vector.load %arg13[%c0_60, %c0_61] : memref<1x128xf32, #tpu.memory_space<vmem>>, vector<1x128xf32>
    %98 = vector.broadcast %97 : vector<1x128xf32> to vector<256x128xf32>
    %99 = arith.addf %96, %98 : vector<256x128xf32>
    %cst_62 = arith.constant 0.000000e+00 : f32
    %100 = vector.broadcast %cst_62 : f32 to vector<256x128xf32>
    %101 = arith.maximumf %99, %100 : vector<256x128xf32>
    %c0_63 = arith.constant 0 : index
    %c0_64 = arith.constant 0 : index
    %c0_65 = arith.constant 0 : index
    %102 = vector.load %arg14[%c0_63, %c0_64, %c0_65] : memref<1x256x128xf32, #tpu.memory_space<vmem>>, vector<1x256x128xf32>
    %103 = vector.shape_cast %102 : vector<1x256x128xf32> to vector<256x128xf32>
    %104 = vector.shape_cast %101 : vector<256x128xf32> to vector<1x256x128xf32>
    tpu.vector_store %arg14[%c0_63, %c0_64, %c0_65], %104 {strides = array<i32>} : memref<1x256x128xf32, #tpu.memory_space<vmem>>, vector<1x256x128xf32>,
    return
  }
  func.func @transform_0(%arg0: i32, %arg1: i32) -> (i32, i32, i32) {
    %c0_i32 = arith.constant 0 : i32
    %c0_i32_0 = arith.constant 0 : i32
    return %arg0, %arg1, %c0_i32 : i32, i32, i32
  }
  func.func @transform_1(%arg0: i32, %arg1: i32) -> (i32, i32, i32, i32) {
    %c0_i32 = arith.constant 0 : i32
    %c0_i32_0 = arith.constant 0 : i32
    %c0_i32_1 = arith.constant 0 : i32
    return %arg0, %arg1, %c0_i32, %c0_i32_0 : i32, i32, i32, i32
  }
  func.func @transform_2(%arg0: i32, %arg1: i32) -> (i32, i32, i32, i32) {
    %c0_i32 = arith.constant 0 : i32
    %c0_i32_0 = arith.constant 0 : i32
    %c0_i32_1 = arith.constant 0 : i32
    return %arg0, %arg1, %c0_i32, %c0_i32_0 : i32, i32, i32, i32
  }
  func.func @transform_3(%arg0: i32, %arg1: i32) -> (i32, i32) {
    %c0_i32 = arith.constant 0 : i32
    %c0_i32_0 = arith.constant 0 : i32
    %c0_i32_1 = arith.constant 0 : i32
    return %c0_i32, %c0_i32_0 : i32, i32
  }
  func.func @transform_4(%arg0: i32, %arg1: i32) -> (i32, i32) {
    %c0_i32 = arith.constant 0 : i32
    %c0_i32_0 = arith.constant 0 : i32
    %c0_i32_1 = arith.constant 0 : i32
    return %c0_i32, %c0_i32_0 : i32, i32
  }
  func.func @transform_5(%arg0: i32, %arg1: i32) -> (i32, i32, i32) {
    %c0_i32 = arith.constant 0 : i32
    %c0_i32_0 = arith.constant 0 : i32
    %c0_i32_1 = arith.constant 0 : i32
    %c0_i32_2 = arith.constant 0 : i32
    return %c0_i32, %c0_i32_0, %c0_i32_1 : i32, i32, i32
  }
  func.func @transform_6(%arg0: i32, %arg1: i32) -> (i32, i32) {
    %c0_i32 = arith.constant 0 : i32
    %c0_i32_0 = arith.constant 0 : i32
    %c0_i32_1 = arith.constant 0 : i32
    return %c0_i32, %c0_i32_0 : i32, i32
  }
  func.func @transform_7(%arg0: i32, %arg1: i32) -> (i32, i32, i32) {
    %c0_i32 = arith.constant 0 : i32
    %c0_i32_0 = arith.constant 0 : i32
    %c0_i32_1 = arith.constant 0 : i32
    %c0_i32_2 = arith.constant 0 : i32
    return %c0_i32, %c0_i32_0, %c0_i32_1 : i32, i32, i32
  }
  func.func @transform_8(%arg0: i32, %arg1: i32) -> (i32, i32) {
    %c0_i32 = arith.constant 0 : i32
    %c0_i32_0 = arith.constant 0 : i32
    %c0_i32_1 = arith.constant 0 : i32
    return %c0_i32, %c0_i32_0 : i32, i32
  }
  func.func @transform_9(%arg0: i32, %arg1: i32) -> (i32, i32) {
    %c0_i32 = arith.constant 0 : i32
    %c0_i32_0 = arith.constant 0 : i32
    %c0_i32_1 = arith.constant 0 : i32
    return %c0_i32, %c0_i32_0 : i32, i32
  }
  func.func @transform_10(%arg0: i32, %arg1: i32) -> (i32, i32) {
    %c0_i32 = arith.constant 0 : i32
    %c0_i32_0 = arith.constant 0 : i32
    %c0_i32_1 = arith.constant 0 : i32
    return %c0_i32, %c0_i32_0 : i32, i32
  }
  func.func @transform_11(%arg0: i32, %arg1: i32) -> (i32, i32) {
    %c0_i32 = arith.constant 0 : i32
    %c0_i32_0 = arith.constant 0 : i32
    %c0_i32_1 = arith.constant 0 : i32
    return %c0_i32, %c0_i32_0 : i32, i32
  }
  func.func @transform_12(%arg0: i32, %arg1: i32) -> (i32, i32, i32) {
    %c0_i32 = arith.constant 0 : i32
    %c0_i32_0 = arith.constant 0 : i32
    return %arg0, %arg1, %c0_i32 : i32, i32, i32
  }
}

</mosaic_0001>

<bundles_post_ra>
// kernel: tpu_custom_call.1
= control target key start
LH: loop header
LB: loop body
LE: loop exit
PB: predicated region body
PF: predicated region fallthrough
CT: control target
= control target key end

     0   :  { %s9033_s0 = inlined_call_operand.hbm [shape: bf16[2,256,128], index: 0, kind: input, shape index: {}]   ;;  %s9034_s1 = inlined_call_operand.hbm [shape: bf16[2,1,16,128], index: 1, kind: input, shape index: {}]   ;;  %s9035_s2 = inlined_call_operand.hbm [shape: bf16[2,1,16,128], index: 2, kind: input, shape index: {}]   ;;  %s9036_s3 = inlined_call_operand.hbm [shape: bf16[128,256], index: 3, kind: input, shape index: {}]   ;;  %s9037_s4 = inlined_call_operand.vmem [shape: f32[1,256], index: 4, kind: input, shape index: {}]   ;;  %s9038_s5 = inlined_call_operand.hbm [shape: bf16[3,128,128], index: 5, kind: input, shape index: {}]   ;;  %s9039_s6 = inlined_call_operand.vmem [shape: f32[1,128], index: 6, kind: input, shape index: {}]   ;;  %s9040_s7 = inlined_call_operand.hbm [shape: bf16[3,128,128], index: 7, kind: input, shape index: {}]   ;;  %s9041_s8 = inlined_call_operand.vmem [shape: f32[1,128], index: 8, kind: input, shape index: {}]   ;;  %s9042_s9 = inlined_call_operand.hbm [shape: bf16[256,128], index: 9, kind: input, shape index: {}]   ;;  %s9043_s10 = inlined_call_operand.hbm [shape: bf16[128,128], index: 10, kind: input, shape index: {}]   ;;  %s9044_s11 = inlined_call_operand.vmem [shape: f32[1,128], index: 11, kind: input, shape index: {}]   ;;  %s9045_s12 = inlined_call_operand.hbm [shape: f32[2,256,128], index: 12, kind: output, shape index: {}]  }
   0x1   :  { %9069 = sst [smem:[#allocation66_spill]] %s9034_s1 }
   0x2   :  { %9070 = sst [smem:[#allocation67_spill]] %s9036_s3 }
   0x3   :  { %9071 = sst [smem:[#allocation68_spill]] %s9037_s4 }
   0x4   :  { %9072 = sst [smem:[#allocation69_spill]] %s9039_s6 }
   0x5   :  { %9073 = sst [smem:[#allocation70_spill]] %s9040_s7 }
   0x6   :  { %9074 = sst [smem:[#allocation71_spill]] %s9041_s8 }
   0x7   :  { %9075 = sst [smem:[#allocation72_spill]] %s9044_s11 }
   0x8   :  { %9076 = sst [smem:[#allocation73_spill]] %s9045_s12 }
   0x9   :  { %17 = vsyncpa [#allocation4], 0 }
   0xa   :  { %19 = vsyncpa [#allocation4 + $0x1], 0 }
   0xb   :  { %20 = vsyncpa [#allocation7], 0 }
   0xc   :  { %22 = vsyncpa [#allocation7 + $0x1], 0 }
   0xd   :  { %23 = vsyncpa [#allocation10], 0 }
   0xe   :  { %24 = vsyncpa [#allocation13], 0 }
   0xf   :  { %25 = vsyncpa [#allocation16], 0 }
  0x10   :  { %26 = vsyncpa [#allocation5], 0 }
  0x11   :  { %28 = vsyncpa [#allocation5 + $0x1], 0  ;;  %s7539_s21 = smov 0   ;;  %s7541_s22 = smov 0  }
  0x12   :  { %s7543_s23 = smov 0   ;;  %s7545_s24 = smov 0  }
  0x13   :  { %s7547_s25 = smov 0   ;;  %s7549_s26 = smov 0  }
  0x14 LB: > { %9077 = sst [smem:[#allocation24_spill]] %s7435_s21  ;;  %s7570_s27 = sadd.s32 4294967295, %s7455_s26   ;;  %s7455_s26 = sphi %s7549_s26, %s34_s26   ;;  %s7451_s25 = sphi %s7547_s25, %s9232_s25   ;;  %s7447_s24 = sphi %s7545_s24, %s9231_s24   ;;  %s7443_s23 = sphi %s7543_s23, %s9227_s23   ;;  %s7439_s22 = sphi %s7541_s22, %s9230_s22   ;;  %s7435_s21 = sphi %s7539_s21, %s9229_s21  }
  0x15   : > { %9078 = sst [smem:[#allocation25_spill]] %s7443_s23  ;;  %p5687_p0 = scmp.ge.s32.totalorder %s7455_s26, 1 }
  0x16   : > { %9079 = sst [smem:[#allocation26_spill]] %s7447_s24  ;;  %p9046_p1 = scmp.eq.s32.totalorder %s7570_s27, 0 }
  0x17   : > { %9080 = sst [smem:[#allocation27_spill]] %s7455_s26  ;;  %p352_p3 = scmp.lt.s32.totalorder %s7455_s26, 3 }
  0x18   : > { %s7457_s29 = smov [#allocation9]   ;;  %s7458_s14 = smov [#allocation12]  }
  0x19   : > { %p7576_p4 = pnand %p5687_p0, %p352_p3  ;;  %s364_s30 = sshll.u32 %s7457_s29, 4  ;;  %s365_s30 = int_to_ptr.vmem [resolvable:$true] %s364_s30 }
  0x1a   : > { %s396_s15 = sshll.u32 %s7458_s14, 4  ;;  %s7156_s17 = scalar_lea.vmem %s365_s30, 2048  ;;  %s397_s15 = int_to_ptr.vmem [resolvable:$true] %s396_s15 }
  0x1b   : > { %s9081_s28 = scalar_select %p7576_p4, 1, 0 }
  0x1c   : > { %p6881_p5 = pneg %p7576_p4  ;;  %p7157_p9 = scmp.ne.s32.totalorder %s365_s30, %s7156_s17 }
  0x1d   : > { %p7164_p12 = scmp.lt.s32.totalorder %s365_s30, %s365_s30  ;;  %p7165_p13 = scmp.lt.s32.totalorder %s7156_s17, %s7156_s17 }
  0x1e   : > { %p7585_p7 = pnand %p6881_p5, %p9046_p1 }
  0x1f   : > { %p7166_p0 = por %p7165_p13, %p7164_p12 }
  0x20   : > { %p7591_p8 = pneg %p7585_p7 }
  0x22   : > { %p7159_p10 = pnand %p7157_p9, %p7591_p8 }
  0x24   : > { %p7160_p11 = pneg %p7159_p10 }
  0x26   : > { %p7167_p3 = pnand %p7166_p0, %p7160_p11 }
  0x28   : > { %7170 = shalt.err (!%p7167_p3)
}
  0x29   : > { %s7459_s18 = smov 128   ;;  %s7460_s19 = smov 8  }
  0x2a   : > { %s9084_s3 = sld [smem:[#allocation67_spill]]  ;;  %s7182_s14 = scalar_lea.vmem %s397_s15, 3072 }
  0x2b   : > { %p7183_p5 = scmp.ne.s32.totalorder %s397_s15, %s7182_s14  ;;  %p7190_p10 = scmp.lt.s32.totalorder %s397_s15, %s397_s15 }
  0x2c   : > { %p7191_p2 = scmp.lt.s32.totalorder %s7182_s14, %s7182_s14 }
  0x2d   : > { %p7185_p6 = pnand %p7183_p5, %p7591_p8 }
  0x2e   : > { %p7192_p1 = por %p7191_p2, %p7190_p10 }
  0x2f   : > { %p7186_p9 = pneg %p7185_p6 }
  0x30   : > { %6884 = dma.hbm_to_vmem [thread:$0]  (!%p7585_p7), %s9084_s3, 2048, %s365_s30, [#allocation10], %s7459_s18, %s7459_s18, %s7460_s19  }
  0x31   : > { %p7193_p12 = pnand %p7192_p1, %p7186_p9 }
  0x33   : > { %7196 = shalt.err (!%p7193_p12)
}
  0x34   : > { %s9048_s17 = smov 64   ;;  %s9050_s30 = smov 4  }
  0x35   : > { %s9085_s7 = sld [smem:[#allocation70_spill]]  ;;  %s5686_s20 = sadd.s32 4294967294, %s7455_s26  }
  0x36   : > { %s46_s29 = sadd.s32 1, %s7451_s25  ;;  %s55_s14 = sadd.s32 1, %s7443_s23 }
  0x37   : > { %p48_p1 = scmp.ge.s32.totalorder %s46_s29, 2  ;;  %p62_p2 = scmp.ne.s32.totalorder %s7443_s23, %s7439_s22 }
  0x38   : > { %p63_p6 = scmp.eq.s32.totalorder %s7455_s26, 0  ;;  %p68_p11 = scmp.ne.s32.totalorder %s7439_s22, %s7435_s21 }
  0x39   : > { %s9234_s29 = smov (%p48_p1, %s46_s29), 0  ;;  %p9087_p0 = scmp.eq.s32.totalorder %s7570_s27, 0 }
  0x3a   : > { %9086 = sst [smem:[#allocation28_spill]] %s9234_s29  ;;  %p64_p13 = por %p63_p6, %p62_p2 }
  0x3b   : > { %6890 = dma.hbm_to_vmem [thread:$0]  (!%p7585_p7), %s9085_s7, 3072, %s397_s15, [#allocation13], %s9048_s17, %s9048_s17, %s9050_s30  }
  0x3c   : > { %p7624_p3 = por %p9087_p0, %p68_p11  ;;  %s50_s15 = ssub.s32 %s7451_s25, %s9234_s29 }
  0x3d   : > { %p9089_p5 = scmp.eq.s32.totalorder %s7570_s27, 1  ;;  %p53_p10 = scmp.eq.s32.totalorder %s50_s15, 0 }
  0x3e   : > { %p345_p12 = scmp.eq.s32.totalorder %s5686_s20, 1  ;;  %p6916_p4 = scmp.lt.s32.totalorder %s7455_s26, 2 }
  0x3f   : > { %p7632_p9 = por %p9089_p5, %p62_p2  ;;  %s7638_s17 = sand.u32 1, %s7443_s23  }
  0x40   : > { %s7641_s30 = scalar_select %p53_p10, %s7443_s23, %s55_s14  }
  0x41   : > { %s9090_s19 = scalar_select %p7632_p9, 1, 0 }
  0x42   : > { %9092 = sst [smem:[#allocation30_spill]] %s7641_s30  ;;  %p7643_p1 = por %p345_p12, %p68_p11 }
  0x43   : > { %9091 = sst [smem:[#allocation29_spill]] %s9090_s19  ;;  %p7647_p6 = pnand %p6916_p4, %p64_p13 }
  0x44   : > { %s9093_s3 = scalar_select %p7643_p1, 1, 0 }
  0x45   : > { %s465_s29 = sand.u32 1, %s7455_s26   ;;  %s5697_s21 = sshll.u32 %s7638_s17, 3 }
  0x46   : > { %9094 = sst [smem:[#allocation31_spill]] %s9093_s3  ;;  %s6086_s15 = sshll.u32 %s7451_s25, 7 }
  0x47   : > { %s9096_s1 = sld [smem:[#allocation66_spill]]  ;;  %s469_s24 = scalar_lea.vmem [#allocation6], %s5697_s21 }
  0x48   : > { %s478_s14 = sshll.u32 %s469_s24, 4  ;;  %s7657_s30 = scalar_lea.sflag [#allocation7], %s465_s29  ;;  %s479_s14 = int_to_ptr.vmem [resolvable:$true] %s478_s14 }
  0x49   : > { %p9062_p2 = pneg %p7647_p6  ;;  %s7210_s23 = scalar_lea.vmem %s479_s14, 128 }
  0x4a   : > { %p7211_p4 = scmp.ne.s32.totalorder %s479_s14, %s7210_s23  ;;  %s7463_s26 = smov [#allocation6]  }
  0x4b   : > { %s7215_s3 = sshll.u32 %s7463_s26, 4  ;;  %s7216_s3 = int_to_ptr.vmem [resolvable:$false] %s7215_s3 }
  0x4c   : > { %p7213_p11 = pnand %p7211_p4, %p9062_p2  ;;  %s7217_s11 = scalar_lea.vmem %s7216_s3, 256 }
  0x4d   : > { %s477_s19 = scalar_lea.hbm %s9096_s1, %s6086_s15  ;;  %p7218_p0 = scmp.lt.s32.totalorder %s479_s14, %s7216_s3 }
  0x4e   : > { %p7214_p13 = pneg %p7213_p11  ;;  %p7219_p5 = scmp.lt.s32.totalorder %s7217_s11, %s7210_s23 }
  0x50   : > { %p7220_p10 = por %p7219_p5, %p7218_p0 }
  0x52   : > { %p7221_p12 = pnand %p7220_p10, %p7214_p13 }
  0x54   : > { %7224 = shalt.err (!%p7221_p12)
}
  0x55   : > { %s9097_s12 = smov 4   ;;  %s9098_s24 = smov 64  }
  0x56   : > { %6903 = dma.hbm_to_vmem [thread:$0]  (!%p7647_p6), %s477_s19, 128, %s479_s14, %s7657_s30, %s9098_s24, %s9098_s24, %s9097_s12  }
  0x57   : > { %s7673_s1 = scalar_lea.hbm %s9035_s2, %s6086_s15  ;;  %s492_s26 = scalar_lea.vmem [#allocation8], %s5697_s21 }
  0x58   : > { %s501_s8 = sshll.u32 %s492_s26, 4  ;;  %s7464_s3 = smov [#allocation11]   ;;  %s7675_s8 = int_to_ptr.vmem [resolvable:$true] %s501_s8 }
  0x59   : > { %s380_s11 = sshll.u32 %s7464_s3, 4  ;;  %s7465_s23 = smov [#allocation14]   ;;  %s381_s11 = int_to_ptr.vmem [resolvable:$true] %s380_s11 }
  0x5a   : > { %s412_s6 = sshll.u32 %s7465_s23, 4  ;;  %s7236_s4 = scalar_lea.vmem %s381_s11, 3072  ;;  %s413_s6 = int_to_ptr.vmem [resolvable:$true] %s412_s6 }
  0x5b   : > { %p7237_p4 = scmp.ne.s32.totalorder %s381_s11, %s7236_s4  ;;  %p7244_p0 = scmp.lt.s32.totalorder %s381_s11, %s381_s11 }
  0x5c   : > { %p7245_p5 = scmp.lt.s32.totalorder %s7236_s4, %s7236_s4 }
  0x5d   : > { %p7239_p11 = pnand %p7237_p4, %p7591_p8 }
  0x5e   : > { %p7246_p10 = por %p7245_p5, %p7244_p0 }
  0x5f   : > { %p7240_p13 = pneg %p7239_p11 }
  0x61   : > { %p7247_p12 = pnand %p7246_p10, %p7240_p13 }
  0x63   : > { %7250 = shalt.err (!%p7247_p12)
}
  0x64   : > { %6887 = dma.hbm_to_vmem [thread:$0]  (!%p7585_p7), %s9038_s5, 3072, %s381_s11, [#allocation10], %s9098_s24, %s9098_s24, %s9097_s12  }
  0x65   : > { %s7262_s15 = scalar_lea.vmem %s413_s6, 2048  ;;  %p7270_p1 = scmp.lt.s32.totalorder %s413_s6, %s413_s6 }
  0x66   : > { %p7263_p2 = scmp.ne.s32.totalorder %s413_s6, %s7262_s15  ;;  %p7271_p0 = scmp.lt.s32.totalorder %s7262_s15, %s7262_s15 }
  0x68   : > { %p7265_p4 = pnand %p7263_p2, %p7591_p8  ;;  %p7272_p13 = por %p7271_p0, %p7270_p1 }
  0x6a   : > { %p7266_p11 = pneg %p7265_p4 }
  0x6c   : > { %p7273_p5 = pnand %p7272_p13, %p7266_p11 }
  0x6e   : > { %7276 = shalt.err (!%p7273_p5)
}
  0x6f   : > { %6893 = dma.hbm_to_vmem [thread:$0]  (!%p7585_p7), %s9042_s9, 2048, %s413_s6, [#allocation13], %s9098_s24, %s9098_s24, %s9097_s12  }
  0x70   : > { %s7466_s29 = smov [#allocation15]   ;;  %s5694_s26 = sshll.u32 %s7638_s17, 7 }
  0x71   : > { %s425_s20 = sshll.u32 %s7466_s29, 4  ;;  %s426_s20 = int_to_ptr.vmem [resolvable:$true] %s425_s20 }
  0x72   : > { %s7288_s3 = scalar_lea.vmem %s426_s20, 1024  ;;  %p7296_p12 = scmp.lt.s32.totalorder %s426_s20, %s426_s20 }
  0x73   : > { %p7289_p2 = scmp.ne.s32.totalorder %s426_s20, %s7288_s3  ;;  %p7297_p4 = scmp.lt.s32.totalorder %s7288_s3, %s7288_s3 }
  0x75   : > { %p7291_p1 = pnand %p7289_p2, %p7591_p8  ;;  %p7298_p11 = por %p7297_p4, %p7296_p12 }
  0x77   : > { %p7292_p10 = pneg %p7291_p1 }
  0x79   : > { %p7299_p0 = pnand %p7298_p11, %p7292_p10 }
  0x7b   : > { %7302 = shalt.err (!%p7299_p0)
}
  0x7c   : > { %6896 = dma.hbm_to_vmem [thread:$0]  (!%p7585_p7), %s9043_s10, 1024, %s426_s20, [#allocation16], %s9098_s24, %s9098_s24, %s9097_s12  }
  0x7d   : > { %s6085_s16 = sshll.u32 %s7451_s25, 11  ;;  %s446_s15 = scalar_lea.vmem [#allocation3], %s5694_s26 }
  0x7e   : > { %s454_s19 = scalar_lea.hbm %s9033_s0, %s6085_s16  ;;  %s455_s4 = sshll.u32 %s446_s15, 4  ;;  %s456_s4 = int_to_ptr.vmem [resolvable:$true] %s455_s4 }
  0x7f   : > { %s443_s14 = scalar_lea.sflag [#allocation4], %s7638_s17  ;;  %s7316_s13 = scalar_lea.vmem %s456_s4, 2048 }
  0x80   : > { %p7317_p8 = scmp.ne.s32.totalorder %s456_s4, %s7316_s13  ;;  %p9099_p13 = pneg %p7647_p6 }
  0x81   : > { %s7467_s29 = smov [#allocation3]  }
  0x82   : > { %p7319_p5 = pnand %p7317_p8, %p9099_p13  ;;  %s7321_s3 = sshll.u32 %s7467_s29, 4  ;;  %s7322_s3 = int_to_ptr.vmem [resolvable:$false] %s7321_s3 }
  0x83   : > { %s7323_s6 = scalar_lea.vmem %s7322_s3, 4096  ;;  %p7324_p7 = scmp.lt.s32.totalorder %s456_s4, %s7322_s3 }
  0x84   : > { %p7320_p2 = pneg %p7319_p5  ;;  %p7325_p1 = scmp.lt.s32.totalorder %s7323_s6, %s7316_s13 }
  0x86   : > { %p7326_p10 = por %p7325_p1, %p7324_p7 }
  0x88   : > { %p7327_p12 = pnand %p7326_p10, %p7320_p2 }
  0x8a   : > { %7330 = shalt.err (!%p7327_p12)
}
  0x8b   : > { %6900 = dma.hbm_to_vmem [thread:$0]  (!%p7647_p6), %s454_s19, 2048, %s456_s4, %s443_s14, %s9098_s24, %s9098_s24, %s9097_s12  }
  0x8c   : > { %s7344_s17 = scalar_lea.vmem %s7675_s8, 128  ;;  %p9100_p11 = pmov %p9099_p13 }
  0x8d   : > { %p7345_p4 = scmp.ne.s32.totalorder %s7675_s8, %s7344_s17  ;;  %s7468_s20 = smov [#allocation8]  }
  0x8e   : > { %s7349_s26 = sshll.u32 %s7468_s20, 4  ;;  %s7350_s26 = int_to_ptr.vmem [resolvable:$false] %s7349_s26 }
  0x8f   : > { %p7347_p0 = pnand %p7345_p4, %p9100_p11  ;;  %s7351_s11 = scalar_lea.vmem %s7350_s26, 256 }
  0x90   : > { %p7352_p13 = scmp.lt.s32.totalorder %s7675_s8, %s7350_s26  ;;  %p7353_p5 = scmp.lt.s32.totalorder %s7351_s11, %s7344_s17 }
  0x91   : > { %p7348_p8 = pneg %p7347_p0 }
  0x92   : > { %p7354_p2 = por %p7353_p5, %p7352_p13 }
  0x94   : > { %p7355_p7 = pnand %p7354_p2, %p7348_p8 }
  0x96   : > { %7358 = shalt.err (!%p7355_p7)
}
  0x97   : > { %6906 = dma.hbm_to_vmem [thread:$0]  (!%p7647_p6), %s7673_s1, 128, %s7675_s8, %s7657_s30, %s9098_s24, %s9098_s24, %s9097_s12  }
  0x98   : > { %p9101_p1 = scmp.ne.s32.totalorder %s9081_s28, 0 }
  0x9a   : > { %513 = sbr.rel (%p9101_p1) target bundleno = 1362 (0x552), region = 68 }
  0x9f   : > { %s7738_s16 = sand.u32 1, %s7439_s22  }
  0xa0   : > { %s5704_s23 = sshll.u32 %s7738_s16, 7  ;;  %s516_s21 = scalar_lea.sflag [#allocation4], %s7738_s16 }
  0xa1   : > { %s7742_s19 = scalar_lea.vmem [#allocation3], %s5704_s23 }
  0xa2   : > { %7410 = dma.done.wait (%p7624_p3), %s516_s21, 2048  }
  0xa3   : > { %7412 = vsyncadd (%p7624_p3), %s516_s21, 4294965248  ;;  %s524_s1 = sand.u32 1, %s7570_s27  }
  0xa4   : > { %s525_s7 = scalar_lea.sflag [#allocation7], %s524_s1 }
  0xa5   : > { %7414 = dma.done.wait (%p7624_p3), %s525_s7, 256  }
  0xa6   : > { %7416 = vsyncadd (%p7624_p3), %s525_s7, 4294967040  ;;  %p9102_p6 = scmp.eq.s32.totalorder %s7570_s27, 0 }
  0xa8   : > { %7418 = dma.done.wait (%p9102_p6), [#allocation10], 5120   ;;  %p9103_p10 = pmov %p9102_p6 }
  0xa9   : > { %p9104_p12 = pmov %p9102_p6 }
  0xaa   : > { %7420 = vsyncadd (%p9103_p10), [#allocation10], 4294962176 }
  0xab   : > { %7422 = dma.done.wait (%p9104_p12), [#allocation13], 5120   ;;  %p9105_p4 = pmov %p9102_p6 }
  0xad   : > { %7424 = vsyncadd (%p9105_p4), [#allocation13], 4294962176  ;;  %p9106_p11 = pmov %p9105_p4 }
  0xae   : > { %p9107_p0 = pmov %p9105_p4 }
  0xaf   : > { %7426 = dma.done.wait (%p9106_p11), [#allocation16], 1024  }
  0xb0   : > { %7428 = vsyncadd (%p9107_p0), [#allocation16], 4294966272  ;;  %v7469_v0 = vmov 0   ;;  %v6984_v1 = vld [vmem:[#allocation9 + $0x74] ss:$8 sps:$4 sm:$0xff]   ;;  %v7008_v19 = vld [vmem:[%s7742_s19] sm:$0xff]   ;;  %v661_v43 = vlaneseq }
  0xb1   : > { %879 = vmatprep.mubr.bf16.mxu0 %v7469_v0  ;;  %3282 = vst [vmem:[#allocation2] sm:$0xf] %v7469_v0  ;;  %3283 = vst [vmem:[#allocation2 + $0x4] sm:$0xf] %v7469_v0  ;;  %v6986_v2 = vld [vmem:[#allocation9 + $0x70] ss:$8 sps:$4 sm:$0xff]   ;;  %847 = vmatprep.subr.bf16.mxu0 %v6984_v1 }
  0xb2   : > { %3798 = vst [vmem:[#allocation2 + $0x88] sm:$0xf] %v7469_v0  ;;  %3799 = vst [vmem:[#allocation2 + $0x8c] sm:$0xf] %v7469_v0  ;;  %v6987_v3 = vld [vmem:[#allocation9 + $0x64] ss:$8 sps:$4 sm:$0xff]   ;;  %848 = vmatpush1.bf16.msra.mxu0 %v6986_v2 }
  0xb3   : > { %v6989_v4 = vld [vmem:[#allocation9 + $0x60] ss:$8 sps:$4 sm:$0xff]   ;;  %849 = vmatprep.subr.bf16.mxu0 %v6987_v3  ;;  %v6990_v5 = vld [vmem:[#allocation9 + $0x54] ss:$8 sps:$4 sm:$0xff]   ;;  %v6992_v6 = vld [vmem:[#allocation9 + $0x50] ss:$8 sps:$4 sm:$0xff]  }
  0xb4   : > { %v6993_v7 = vld [vmem:[#allocation9 + $0x44] ss:$8 sps:$4 sm:$0xff]   ;;  %v6995_v8 = vld [vmem:[#allocation9 + $0x40] ss:$8 sps:$4 sm:$0xff]   ;;  %v6996_v9 = vld [vmem:[#allocation9 + $0x34] ss:$8 sps:$4 sm:$0xff]  }
  0xb5   : > { %v6998_v10 = vld [vmem:[#allocation9 + $0x30] ss:$8 sps:$4 sm:$0xff]   ;;  %v6999_v11 = vld [vmem:[#allocation9 + $0x24] ss:$8 sps:$4 sm:$0xff]   ;;  %v7001_v12 = vld [vmem:[#allocation9 + $0x20] ss:$8 sps:$4 sm:$0xff]  }
  0xb6   : > { %850 = vmatpush1.bf16.msra.mxu0 %v6989_v4  ;;  %v7002_v13 = vld [vmem:[#allocation9 + $0x14] ss:$8 sps:$4 sm:$0xff]   ;;  %v7004_v14 = vld [vmem:[#allocation9 + $0x10] ss:$8 sps:$4 sm:$0xff]   ;;  %v7005_v15 = vld [vmem:[#allocation9 + $0x4] ss:$8 sps:$4 sm:$0xff]  }
  0xb7   : > { %851 = vmatprep.subr.bf16.mxu0 %v6990_v5  ;;  %v7007_v16 = vld [vmem:[#allocation9] ss:$8 sps:$4 sm:$0xff]   ;;  %v7024_v17 = vld [vmem:[#allocation11 + $0x78] sm:$0xff]   ;;  %v7025_v18 = vld [vmem:[#allocation11 + $0x70] sm:$0xff]   ;;  %v7804_v44 = vshrl.u32 %v661_v43, 7  ;;  %s9109_s28 = sld [smem:[#allocation68_spill]] }
  0xb8   : > { %6837 = vmatprep.subr.bf16.mxu1 %v7024_v17  ;;  %v7026_v20 = vld [vmem:[#allocation11 + $0x68] sm:$0xff]   ;;  %v7027_v21 = vld [vmem:[#allocation11 + $0x60] sm:$0xff]   ;;  %v7010_v23 = vld [vmem:[%s7742_s19 + $0x10] sm:$0xff]   ;;  %vm7470_vm3 = vmmov 1   ;;  %s9173_s12 = sld [smem:[#allocation69_spill]]  ;;  %s5712_s17 = sshll.u32 %s7738_s16, 8 }
  0xb9   : > { %6845 = vmatpush3.bf16.msra.mxu1 %v7024_v17  ;;  %v7009_v22 = vld [vmem:[%s7742_s19 + $0x8] sm:$0xff]   ;;  %v7011_v24 = vld [vmem:[%s7742_s19 + $0x18] sm:$0xff]   ;;  %v7012_v25 = vld [vmem:[%s7742_s19 + $0x20] sm:$0xff]   ;;  %9108 = vst [vmem:[#allocation32_spill] sm:$0xff] %v7804_v44  ;;  %v663_v45 = vsub.s32 0, %v7804_v44  ;;  %vm1585_vm0 = vcmp.lt.s32.totalorder %v7804_v44, 1 }
  0xba   : > { %852 = vmatpush1.bf16.msra.mxu0 %v6992_v6  ;;  %6838 = vmatprep.subr.bf16.mxu1 %v7025_v18  ;;  %v7013_v26 = vld [vmem:[%s7742_s19 + $0x28] sm:$0xff]   ;;  %v7014_v27 = vld [vmem:[%s7742_s19 + $0x30] sm:$0xff]   ;;  %v7015_v28 = vld [vmem:[%s7742_s19 + $0x38] sm:$0xff]   ;;  %vm1714_vm1 = vcmp.lt.s32.totalorder %v7804_v44, 7  ;;  %s9182_s13 = sld [smem:[#allocation71_spill]]  ;;  %s8913_s20 = scalar_lea.vmem [#allocation17], %s5712_s17 }
  0xbb   : > { %853 = vmatprep.subr.bf16.mxu0 %v6993_v7  ;;  %v7016_v29 = vld [vmem:[%s7742_s19 + $0x40] sm:$0xff]   ;;  %v7028_v30 = vld [vmem:[#allocation11 + $0x58] sm:$0xff]   ;;  %v7017_v31 = vld [vmem:[%s7742_s19 + $0x48] sm:$0xff]   ;;  %s9217_s6 = sld [smem:[#allocation72_spill]]  ;;  %s5501_s21 = sshll.u32 %s8913_s20, 4  ;;  %s8984_s21 = int_to_ptr.vmem [resolvable:$true] %s5501_s21 }
  0xbc   : > { %v7029_v32 = vld [vmem:[#allocation11 + $0x50] sm:$0xff]   ;;  %v7030_v33 = vld [vmem:[#allocation11 + $0x48] sm:$0xff]   ;;  %v7031_v35 = vld [vmem:[#allocation11 + $0x40] sm:$0xff]   ;;  %s9218_s26 = sld [smem:[#allocation26_spill]]  ;;  %s5486_s27 = scalar_lea.sflag [#allocation5], %s7738_s16 }
  0xbd   : > { %6846 = vmatpush3.bf16.msra.mxu1 %v7025_v18  ;;  %v7018_v34 = vld [vmem:[%s7742_s19 + $0x50] sm:$0xff]   ;;  %v7019_v36 = vld [vmem:[%s7742_s19 + $0x58] sm:$0xff]   ;;  %v7020_v37 = vld [vmem:[%s7742_s19 + $0x60] sm:$0xff]   ;;  %s9220_s7 = sld [smem:[#allocation73_spill]]  ;;  %s7359_s30 = scalar_lea.vmem %s8984_s21, 4096 }
  0xbe   : > { %854 = vmatpush1.bf16.msra.mxu0 %v6995_v8  ;;  %6839 = vmatprep.subr.bf16.mxu1 %v7026_v20  ;;  %v7021_v38 = vld [vmem:[%s7742_s19 + $0x68] sm:$0xff]   ;;  %v7032_v39 = vld [vmem:[#allocation11 + $0xb8] sm:$0xff]   ;;  %v7022_v40 = vld [vmem:[%s7742_s19 + $0x70] sm:$0xff]   ;;  %p7360_p3 = scmp.ne.s32.totalorder %s8984_s21, %s7359_s30  ;;  %s7471_s18 = smov [#allocation17]  }
  0xbf   : > { %855 = vmatprep.subr.bf16.mxu0 %v6996_v9  ;;  %v7023_v41 = vld [vmem:[%s7742_s19 + $0x78] sm:$0xff]   ;;  %v659_v46 = vld [vmem:[%s9109_s28] sm:$0x3] }
  0xc0   : > { %v7801_v42 = vld [vmem:[#allocation11 + $0x38] sm:$0xff]   ;;  %v7810_v47 = vrot.slane %v659_v46, %v663_v45  ;;  %v7033_v9 = vld [vmem:[#allocation11 + $0xb0] sm:$0xff]   ;;  %p7361_p8 = pnand %p7360_p3, %p7632_p9 }
  0xc1   : > { %6847 = vmatpush3.bf16.msra.mxu1 %v7026_v20  ;;  %v7037_v45 = vld [vmem:[#allocation11 + $0x90] sm:$0xff]  }
  0xc2   : > { %856 = vmatpush1.bf16.msra.mxu0 %v6998_v10  ;;  %6840 = vmatprep.subr.bf16.mxu1 %v7027_v21  ;;  %s6124_s23 = sshll.u32 %s9218_s26, 12  ;;  %p7362_p13 = pneg %p7361_p8 }
  0xc3   : > { %857 = vmatprep.subr.bf16.mxu0 %v6999_v11  ;;  %s8982_s8 = scalar_lea.hbm %s9220_s7, %s6124_s23 }
  0xc5   : > { %6848 = vmatpush3.bf16.msra.mxu1 %v7027_v21 }
  0xc6   : > { %858 = vmatpush1.bf16.msra.mxu0 %v7001_v12  ;;  %6841 = vmatprep.subr.bf16.mxu1 %v7028_v30 }
  0xc7   : > { %859 = vmatprep.subr.bf16.mxu0 %v7002_v13 }
  0xc9   : > { %6849 = vmatpush3.bf16.msra.mxu1 %v7028_v30 }
  0xca   : > { %860 = vmatpush1.bf16.msra.mxu0 %v7004_v14  ;;  %6842 = vmatprep.subr.bf16.mxu1 %v7029_v32 }
  0xcb   : > { %861 = vmatprep.subr.bf16.mxu0 %v7005_v15 }
  0xcd   : > { %6850 = vmatpush3.bf16.msra.mxu1 %v7029_v32 }
  0xce   : > { %862 = vmatpush1.bf16.msra.mxu0 %v7007_v16  ;;  %6843 = vmatprep.subr.bf16.mxu1 %v7030_v33 }
  0xcf   : > { %6501 = vmatprep.subr.bf16.mxu0 %v7024_v17 }
  0xd1   : > { %880 = vmatmul.mubr.bf16.vlgmr.msra.gmra.mxu0 %v7008_v19  ;;  %6851 = vmatpush3.bf16.msra.mxu1 %v7030_v33 }
  0xd2   : > { %889 = vmatprep.mubr.bf16.mxu0 %v7469_v0  ;;  %6502 = vmatpush3.bf16.msra.mxu0 %v7024_v17  ;;  %v7034_v17 = vld [vmem:[#allocation11 + $0xa8] sm:$0xff]  }
  0xd3   : > { %6503 = vmatprep.subr.bf16.mxu0 %v7025_v18  ;;  %6844 = vmatprep.subr.bf16.mxu1 %v7031_v35 }
  0xd5   : > { %6852 = vmatpush3.bf16.msra.mxu1 %v7031_v35 }
  0xd6   : > { %6504 = vmatpush3.bf16.msra.mxu0 %v7025_v18  ;;  %6549 = vmatprep.subr.bf16.mxu1 %v7801_v42 }
  0xd7   : > { %6505 = vmatprep.subr.bf16.mxu0 %v7026_v20 }
  0xd9   : > { %890 = vmatmul.mubr.bf16.gmra.mxu0 %v7009_v22 }
  0xda   : > { %899 = vmatprep.mubr.bf16.mxu0 %v7469_v0  ;;  %6506 = vmatpush3.bf16.msra.mxu0 %v7026_v20 }
  0xdb   : > { %6507 = vmatprep.subr.bf16.mxu0 %v7027_v21 }
  0xde   : > { %6508 = vmatpush3.bf16.msra.mxu0 %v7027_v21 }
  0xdf   : > { %6509 = vmatprep.subr.bf16.mxu0 %v7028_v30 }
  0xe1   : > { %900 = vmatmul.mubr.bf16.gmra.mxu0 %v7010_v23 }
  0xe2   : > { %909 = vmatprep.mubr.bf16.mxu0 %v7469_v0  ;;  %6510 = vmatpush3.bf16.msra.mxu0 %v7028_v30 }
  0xe3   : > { %6511 = vmatprep.subr.bf16.mxu0 %v7029_v32 }
  0xe6   : > { %6512 = vmatpush3.bf16.msra.mxu0 %v7029_v32 }
  0xe7   : > { %6513 = vmatprep.subr.bf16.mxu0 %v7030_v33 }
  0xe9   : > { %910 = vmatmul.mubr.bf16.gmra.mxu0 %v7011_v24  ;;  %v7035_v24 = vld [vmem:[#allocation11 + $0xa0] sm:$0xff]  }
  0xea   : > { %919 = vmatprep.mubr.bf16.mxu0 %v7469_v0  ;;  %6514 = vmatpush3.bf16.msra.mxu0 %v7030_v33  ;;  %v7036_v33 = vld [vmem:[#allocation11 + $0x98] sm:$0xff]  }
  0xeb   : > { %6515 = vmatprep.subr.bf16.mxu0 %v7031_v35 }
  0xee   : > { %6516 = vmatpush3.bf16.msra.mxu0 %v7031_v35 }
  0xef   : > { %6597 = vmatprep.subr.bf16.mxu0 %v7032_v39 }
  0xf1   : > { %920 = vmatmul.mubr.bf16.gmra.mxu0 %v7012_v25 }
  0xf2   : > { %929 = vmatprep.mubr.bf16.mxu0 %v7469_v0 }
  0xf9   : > { %930 = vmatmul.mubr.bf16.gmra.mxu0 %v7013_v26 }
  0xfa   : > { %939 = vmatprep.mubr.bf16.mxu0 %v7469_v0 }
 0x101   : > { %940 = vmatmul.mubr.bf16.gmra.mxu0 %v7014_v27 }
 0x102   : > { %949 = vmatprep.mubr.bf16.mxu0 %v7469_v0 }
 0x109   : > { %950 = vmatmul.mubr.bf16.gmra.mxu0 %v7015_v28 }
 0x10a   : > { %959 = vmatprep.mubr.bf16.mxu0 %v7469_v0 }
 0x111   : > { %960 = vmatmul.mubr.bf16.gmra.mxu0 %v7016_v29 }
 0x112   : > { %969 = vmatprep.mubr.bf16.mxu0 %v7469_v0 }
 0x119   : > { %970 = vmatmul.mubr.bf16.gmra.mxu0 %v7017_v31 }
 0x11a   : > { %979 = vmatprep.mubr.bf16.mxu0 %v7469_v0 }
 0x121   : > { %980 = vmatmul.mubr.bf16.gmra.mxu0 %v7018_v34 }
 0x122   : > { %989 = vmatprep.mubr.bf16.mxu0 %v7469_v0 }
 0x129   : > { %990 = vmatmul.mubr.bf16.gmra.mxu0 %v7019_v36 }
 0x12a   : > { %999 = vmatprep.mubr.bf16.mxu0 %v7469_v0 }
 0x131   : > { %1000 = vmatmul.mubr.bf16.gmra.mxu0 %v7020_v37 }
 0x132   : > { %1009 = vmatprep.mubr.bf16.mxu0 %v7469_v0 }
 0x139   : > { %1010 = vmatmul.mubr.bf16.gmra.mxu0 %v7021_v38 }
 0x13a   : > { %1019 = vmatprep.mubr.bf16.mxu0 %v7469_v0 }
 0x141   : > { %1020 = vmatmul.mubr.bf16.gmra.mxu0 %v7022_v40 }
 0x142   : > { %1029 = vmatprep.mubr.bf16.mxu0 %v7469_v0 }
 0x149   : > { %1030 = vmatmul.mubr.bf16.gmra.mxu0 %v7023_v41 }
 0x191   : > { %v881_v48 = vpop.f32.mrf.mxu0 }
 0x192   : > { %v882_v49 = vadd.f32 %v881_v48, %v7810_v47 }
 0x193   : > { %v7813_v50 = vpop.f32.mrf.mxu0 }
 0x194   : > { %9110 = vst [vmem:[#allocation33_spill] sm:$0xff] %v7813_v50  ;;  %v7815_v52 = vmax.f32 %v882_v49, 0.0 }
 0x195   : > { %v885_v51 = vpop.f32.mrf.mxu0 }
 0x196   : > { %v886_v53 = vadd.f32 %v885_v51, %v7810_v47  ;;  %v9063_v57 = vrot.slane %v7815_v52, 7 }
 0x197   : > { %v7818_v54 = vpop.f32.mrf.mxu0 }
 0x198   : > { %9111 = vst [vmem:[#allocation34_spill] sm:$0xff] %v7818_v54  ;;  %v7820_v55 = vmax.f32 %v886_v53, 0.0 }
 0x199   : > { %v891_v56 = vpop.f32.mrf.mxu0 }
 0x19a   : > { %v1554_v58 = vrot.slane %v7820_v55, 7  ;;  %v892_v59 = vadd.f32 %v891_v56, %v7810_v47  ;;  %v1811_v61 = vpack.c.bf16 %v7820_v55, %v7815_v52 }
 0x19b   : > { %v7826_v60 = vpop.f32.mrf.mxu0 }
 0x19c   : > { %9112 = vst [vmem:[#allocation35_spill] sm:$0xff] %v7826_v60  ;;  %v7830_v62 = vmax.f32 %v892_v59, 0.0  ;;  %v7836_v63 = vsel %vm1585_vm0, %v9063_v57, %v1554_v58  ;;  %6517 = vmatprep.mubr.bf16.mxu0 %v1811_v61  ;;  %v7038_v59 = vld [vmem:[#allocation11 + $0x88] sm:$0xff]  }
 0x19d   : > { %v895_v0 = vpop.f32.mrf.mxu0 }
 0x19e   : > { %v1555_v1 = vrot.slane %v7830_v62, 7  ;;  %v896_v2 = vadd.f32 %v895_v0, %v7810_v47 }
 0x19f   : > { %v7840_v3 = vpop.f32.mrf.mxu0 }
 0x1a0   : > { %9113 = vst [vmem:[#allocation36_spill] sm:$0xff] %v7840_v3  ;;  %v7844_v4 = vsel %vm1585_vm0, %v1554_v58, %v1555_v1  ;;  %v7846_v5 = vmax.f32 %v896_v2, 0.0 }
 0x1a1   : > { %v901_v6 = vpop.f32.mrf.mxu0 }
 0x1a2   : > { %v1556_v7 = vrot.slane %v7846_v5, 7  ;;  %v1812_v8 = vpack.c.bf16 %v7846_v5, %v7830_v62  ;;  %v902_v10 = vadd.f32 %v901_v6, %v7810_v47 }
 0x1a3   : > { %v7852_v11 = vpop.f32.mrf.mxu0 }
 0x1a4   : > { %9114 = vst [vmem:[#allocation37_spill] sm:$0xff] %v7852_v11  ;;  %v7856_v12 = vsel %vm1585_vm0, %v1555_v1, %v1556_v7  ;;  %6518 = vmatmul.mubr.bf16.vlgmr.msra.gmra.mxu0 %v1812_v8  ;;  %v7860_v14 = vmax.f32 %v902_v10, 0.0 }
 0x1a5   : > { %v905_v15 = vpop.f32.mrf.mxu0  ;;  %6598 = vmatpush3.bf16.msra.mxu0 %v7032_v39 }
 0x1a6   : > { %v906_v16 = vadd.f32 %v905_v15, %v7810_v47  ;;  %6599 = vmatprep.subr.bf16.mxu0 %v7033_v9  ;;  %v1557_v18 = vrot.slane %v7860_v14, 7  ;;  %v1686_v13 = vrot.slane %v7860_v14, 1 }
 0x1a7   : > { %v7864_v19 = vpop.f32.mrf.mxu0 }
 0x1a8   : > { %9115 = vst [vmem:[#allocation38_spill] sm:$0xff] %v7864_v19  ;;  %v7866_v20 = vmax.f32 %v906_v16, 0.0  ;;  %v7870_v22 = vsel %vm1585_vm0, %v1556_v7, %v1557_v18 }
 0x1a9   : > { %v911_v21 = vpop.f32.mrf.mxu0  ;;  %6600 = vmatpush3.bf16.msra.mxu0 %v7033_v9  ;;  %v7039_v9 = vld [vmem:[#allocation11 + $0x80] sm:$0xff]  }
 0x1aa   : > { %v1558_v23 = vrot.slane %v7866_v20, 7  ;;  %6601 = vmatprep.subr.bf16.mxu0 %v7034_v17  ;;  %v912_v25 = vadd.f32 %v911_v21, %v7810_v47  ;;  %v1813_v27 = vpack.c.bf16 %v7866_v20, %v7860_v14 }
 0x1ab   : > { %v7874_v26 = vpop.f32.mrf.mxu0 }
 0x1ac   : > { %9116 = vst [vmem:[#allocation39_spill] sm:$0xff] %v7874_v26  ;;  %v7880_v28 = vsel %vm1585_vm0, %v1557_v18, %v1558_v23  ;;  %v7882_v29 = vmax.f32 %v912_v25, 0.0  ;;  %6521 = vmatprep.mubr.bf16.mxu0 %v1813_v27 }
 0x1ad   : > { %v915_v30 = vpop.f32.mrf.mxu0  ;;  %6602 = vmatpush3.bf16.msra.mxu0 %v7034_v17 }
 0x1ae   : > { %v916_v32 = vadd.f32 %v915_v30, %v7810_v47  ;;  %6603 = vmatprep.subr.bf16.mxu0 %v7035_v24  ;;  %v1559_v34 = vrot.slane %v7882_v29, 7 }
 0x1af   : > { %v7888_v35 = vpop.f32.mrf.mxu0 }
 0x1b0   : > { %9117 = vst [vmem:[#allocation40_spill] sm:$0xff] %v7888_v35  ;;  %v7890_v36 = vmax.f32 %v916_v32, 0.0  ;;  %v7894_v38 = vsel %vm1585_vm0, %v1558_v23, %v1559_v34 }
 0x1b1   : > { %v921_v37 = vpop.f32.mrf.mxu0  ;;  %6604 = vmatpush3.bf16.msra.mxu0 %v7035_v24 }
 0x1b2   : > { %v1560_v39 = vrot.slane %v7890_v36, 7  ;;  %v922_v40 = vadd.f32 %v921_v37, %v7810_v47  ;;  %6605 = vmatprep.subr.bf16.mxu0 %v7036_v33  ;;  %v1814_v43 = vpack.c.bf16 %v7890_v36, %v7882_v29 }
 0x1b3   : > { %v7898_v41 = vpop.f32.mrf.mxu0 }
 0x1b4   : > { %9118 = vst [vmem:[#allocation41_spill] sm:$0xff] %v7898_v41  ;;  %v7902_v46 = vmax.f32 %v922_v40, 0.0  ;;  %v7906_v48 = vsel %vm1585_vm0, %v1559_v34, %v1560_v39  ;;  %6522 = vmatmul.mubr.bf16.gmra.mxu0 %v1814_v43 }
 0x1b5   : > { %v925_v49 = vpop.f32.mrf.mxu0  ;;  %6606 = vmatpush3.bf16.msra.mxu0 %v7036_v33 }
 0x1b6   : > { %v1561_v53 = vrot.slane %v7902_v46, 7  ;;  %v926_v56 = vadd.f32 %v925_v49, %v7810_v47  ;;  %6607 = vmatprep.subr.bf16.mxu0 %v7037_v45 }
 0x1b7   : > { %v7912_v58 = vpop.f32.mrf.mxu0 }
 0x1b8   : > { %9119 = vst [vmem:[#allocation42_spill] sm:$0xff] %v7912_v58  ;;  %v7914_v61 = vmax.f32 %v926_v56, 0.0  ;;  %v7918_v0 = vsel %vm1585_vm0, %v1560_v39, %v1561_v53  ;;  %v8512_v58 = vld [vmem:[%s9173_s12] ss:$0 sm:$0xff]  ;;  %s7363_s12 = sshll.u32 %s7471_s18, 4  ;;  %s7364_s12 = int_to_ptr.vmem [resolvable:$false] %s7363_s12 }
 0x1b9   : > { %v931_v1 = vpop.f32.mrf.mxu0  ;;  %6608 = vmatpush3.bf16.msra.mxu0 %v7037_v45  ;;  %s7365_s24 = scalar_lea.vmem %s7364_s12, 8192  ;;  %p7366_p5 = scmp.lt.s32.totalorder %s8984_s21, %s7364_s12 }
 0x1ba   : > { %v1562_v2 = vrot.slane %v7914_v61, 7  ;;  %v932_v6 = vadd.f32 %v931_v1, %v7810_v47  ;;  %v1815_v8 = vpack.c.bf16 %v7914_v61, %v7902_v46  ;;  %6609 = vmatprep.subr.bf16.mxu0 %v7038_v59  ;;  %p7367_p2 = scmp.lt.s32.totalorder %s7365_s24, %s7359_s30 }
 0x1bb   : > { %v7922_v7 = vpop.f32.mrf.mxu0 }
 0x1bc   : > { %9120 = vst [vmem:[#allocation43_spill] sm:$0xff] %v7922_v7  ;;  %v7926_v10 = vmax.f32 %v932_v6, 0.0  ;;  %v7930_v15 = vsel %vm1585_vm0, %v1561_v53, %v1562_v2  ;;  %6525 = vmatprep.mubr.bf16.mxu0 %v1815_v8  ;;  %p7368_p7 = por %p7367_p2, %p7366_p5 }
 0x1bd   : > { %v935_v16 = vpop.f32.mrf.mxu0  ;;  %6610 = vmatpush3.bf16.msra.mxu0 %v7038_v59  ;;  %v1106_v59 = vadd.s32 8, %v7804_v44 }
 0x1be   : > { %v1563_v18 = vrot.slane %v7926_v10, 7  ;;  %v936_v21 = vadd.f32 %v935_v16, %v7810_v47  ;;  %6611 = vmatprep.subr.bf16.mxu0 %v7039_v9  ;;  %p7369_p1 = pnand %p7368_p7, %p7362_p13 }
 0x1bf   : > { %v7936_v23 = vpop.f32.mrf.mxu0 }
 0x1c0   : > { %9121 = vst [vmem:[#allocation44_spill] sm:$0xff] %v7936_v23  ;;  %v7938_v24 = vmax.f32 %v936_v21, 0.0  ;;  %v7942_v25 = vsel %vm1585_vm0, %v1562_v2, %v1563_v18  ;;  %v1148_v21 = vand.u32 15, %v1106_v59 }
 0x1c1   : > { %v941_v27 = vpop.f32.mrf.mxu0  ;;  %6612 = vmatpush3.bf16.msra.mxu0 %v7039_v9 }
 0x1c2   : > { %v1564_v30 = vrot.slane %v7938_v24, 7  ;;  %v942_v32 = vadd.f32 %v941_v27, %v7810_v47  ;;  %v1816_v34 = vpack.c.bf16 %v7938_v24, %v7926_v10  ;;  %vm1651_vm2 = vcmp.ne.s32.totalorder %v1148_v21, 15 }
 0x1c3   : > { %v7946_v33 = vpop.f32.mrf.mxu0  ;;  %vm5817_vm4 = vmpackc.low %vm1651_vm2, %vm7470_vm3 }
 0x1c4   : > { %9122 = vst [vmem:[#allocation45_spill] sm:$0xff] %v7946_v33  ;;  %v7950_v37 = vmax.f32 %v942_v32, 0.0  ;;  %v7954_v39 = vsel %vm1585_vm0, %v1563_v18, %v1564_v30  ;;  %6526 = vmatmul.mubr.bf16.gmra.mxu0 %v1816_v34  ;;  %v9064_v34 = vrot.slane %v7815_v52, 1 }
 0x1c5   : > { %v945_v40 = vpop.f32.mrf.mxu0 }
 0x1c6   : > { %v1565_v45 = vrot.slane %v7950_v37, 7  ;;  %v946_v49 = vadd.f32 %v945_v40, %v7810_v47 }
 0x1c7   : > { %v7960_v53 = vpop.f32.mrf.mxu0 }
 0x1c8   : > { %9123 = vst [vmem:[#allocation46_spill] sm:$0xff] %v7960_v53  ;;  %v7962_v56 = vmax.f32 %v946_v49, 0.0  ;;  %v7967_v1 = vsel %vm1585_vm0, %v1564_v30, %v1565_v45  ;;  %v1684_v30 = vrot.slane %v7830_v62, 1  ;;  %v7041_v53 = vld [vmem:[#allocation11 + $0x30] sm:$0xff]  }
 0x1c9   : > { %v951_v2 = vpop.f32.mrf.mxu0 }
 0x1ca   : > { %v1566_v6 = vrot.slane %v7962_v56, 7  ;;  %v952_v8 = vadd.f32 %v951_v2, %v7810_v47  ;;  %v1817_v16 = vpack.c.bf16 %v7962_v56, %v7950_v37  ;;  %v1683_v2 = vrot.slane %v7820_v55, 1 }
 0x1cb   : > { %v7971_v9 = vpop.f32.mrf.mxu0 }
 0x1cc   : > { %9124 = vst [vmem:[#allocation47_spill] sm:$0xff] %v7971_v9  ;;  %v7975_v18 = vmax.f32 %v952_v8, 0.0  ;;  %v7979_v27 = vsel %vm1585_vm0, %v1565_v45, %v1566_v6  ;;  %6529 = vmatprep.mubr.bf16.mxu0 %v1817_v16  ;;  %v1108_v45 = vadd.s32 24, %v7804_v44  ;;  %v1110_v8 = vadd.s32 40, %v7804_v44 }
 0x1cd   : > { %v955_v32 = vpop.f32.mrf.mxu0  ;;  %v1744_v55 = vsel %vm1714_vm1, %v1683_v2, %v1684_v30  ;;  %v1688_v9 = vrot.slane %v7882_v29, 1  ;;  %v1114_v29 = vadd.s32 72, %v7804_v44 }
 0x1ce   : > { %v1567_v40 = vrot.slane %v7975_v18, 7  ;;  %v956_v49 = vadd.f32 %v955_v32, %v7810_v47  ;;  %v1162_v21 = vand.u32 15, %v1108_v45  ;;  %v1176_v31 = vand.u32 15, %v1110_v8 }
 0x1cf   : > { %v7988_v59 = vpop.f32.mrf.mxu0  ;;  %v1687_v8 = vrot.slane %v7866_v20, 1  ;;  %v1204_v33 = vand.u32 15, %v1114_v29 }
 0x1d0   : > { %9125 = vst [vmem:[#allocation48_spill] sm:$0xff] %v7988_v59  ;;  %v7992_v62 = vmax.f32 %v956_v49, 0.0  ;;  %v7996_v16 = vsel %vm1585_vm0, %v1566_v6, %v1567_v40  ;;  %v1745_v6 = vsel %vm1714_vm1, %v9064_v34, %v1683_v2  ;;  %v1685_v34 = vrot.slane %v7846_v5, 1 }
 0x1d1   : > { %v961_v32 = vpop.f32.mrf.mxu0  ;;  %vm1653_vm5 = vcmp.ne.s32.totalorder %v1162_v21, 15  ;;  %vm1655_vm6 = vcmp.ne.s32.totalorder %v1176_v31, 15  ;;  %vm1659_vm10 = vcmp.ne.s32.totalorder %v1204_v33, 15 }
 0x1d2   : > { %v1568_v43 = vrot.slane %v7992_v62, 7  ;;  %v962_v17 = vadd.f32 %v961_v32, %v7810_v47  ;;  %v1818_v49 = vpack.c.bf16 %v7992_v62, %v7975_v18  ;;  %v5818_v32 = vpack.c.bf16 %v1744_v55, %v1745_v6  ;;  %vm5820_vm7 = vmpackc.low %vm1653_vm5, %vm7470_vm3 }
 0x1d3   : > { %v8003_v51 = vpop.f32.mrf.mxu0  ;;  %v1742_v55 = vsel %vm1714_vm1, %v1685_v34, %v1686_v13  ;;  %v1740_v6 = vsel %vm1714_vm1, %v1687_v8, %v1688_v9  ;;  %v1743_v20 = vsel %vm1714_vm1, %v1684_v30, %v1685_v34  ;;  %vm5823_vm8 = vmpackc.low %vm1655_vm6, %vm7470_vm3  ;;  %v1690_v30 = vrot.slane %v7902_v46, 1 }
 0x1d4   : > { %9126 = vst [vmem:[#allocation49_spill] sm:$0xff] %v8003_v51  ;;  %v8013_v57 = vmax.f32 %v962_v17, 0.0  ;;  %v8017_v51 = vsel %vm1585_vm0, %v1567_v40, %v1568_v43  ;;  %6530 = vmatmul.mubr.bf16.gmra.mxu0 %v1818_v49  ;;  %v1112_v17 = vadd.s32 56, %v7804_v44  ;;  %v5821_v2 = vpack.c.bf16 %v1742_v55, %v1743_v20  ;;  %vm5829_vm12 = vmpackc.low %vm1659_vm10, %vm7470_vm3 }
 0x1d5   : > { %v965_v59 = vpop.f32.mrf.mxu0  ;;  %6613 = vmatprep.mubr.msk.bf16.mxu0 %vm5817_vm4, %v5818_v32  ;;  %v1692_v55 = vrot.slane %v7926_v10, 1  ;;  %v1118_v10 = vadd.s32 104, %v7804_v44 }
 0x1d6   : > { %v1569_v45 = vrot.slane %v8013_v57, 7  ;;  %v966_v14 = vadd.f32 %v965_v59, %v7810_v47 }
 0x1d7   : > { %v8027_v40 = vpop.f32.mrf.mxu0 }
 0x1d8   : > { %9127 = vst [vmem:[#allocation50_spill] sm:$0xff] %v8027_v40  ;;  %v8032_v49 = vmax.f32 %v966_v14, 0.0  ;;  %v8036_v5 = vsel %vm1585_vm0, %v1568_v43, %v1569_v45  ;;  %v1190_v14 = vand.u32 15, %v1112_v17  ;;  %v1741_v40 = vsel %vm1714_vm1, %v1686_v13, %v1687_v8 }
 0x1d9   : > { %v971_v59 = vpop.f32.mrf.mxu0  ;;  %v1689_v8 = vrot.slane %v7890_v36, 1 }
 0x1da   : > { %v1570_v21 = vrot.slane %v8032_v49, 7  ;;  %v972_v32 = vadd.f32 %v971_v59, %v7810_v47  ;;  %v1819_v43 = vpack.c.bf16 %v8032_v49, %v8013_v57  ;;  %v5824_v59 = vpack.c.bf16 %v1740_v6, %v1741_v40 }
 0x1db   : > { %v8045_v31 = vpop.f32.mrf.mxu0  ;;  %v1116_v40 = vadd.s32 88, %v7804_v44  ;;  %vm1657_vm9 = vcmp.ne.s32.totalorder %v1190_v14, 15 }
 0x1dc   : > { %9128 = vst [vmem:[#allocation51_spill] sm:$0xff] %v8045_v31  ;;  %v8053_v34 = vmax.f32 %v972_v32, 0.0  ;;  %v8057_v17 = vsel %vm1585_vm0, %v1569_v45, %v1570_v21  ;;  %6533 = vmatprep.mubr.bf16.mxu1 %v1819_v43  ;;  %6614 = vmatmul.mubr.msk.bf16.vlgmr.msra.gmra.mxu0 %vm5820_vm7, %v5821_v2  ;;  %v1691_v45 = vrot.slane %v7914_v61, 1  ;;  %v1738_v32 = vsel %vm1714_vm1, %v1689_v8, %v1690_v30  ;;  %vm5826_vm11 = vmpackc.low %vm1657_vm9, %vm7470_vm3 }
 0x1dd   : > { %v975_v20 = vpop.f32.mrf.mxu0  ;;  %6617 = vmatprep.mubr.msk.bf16.mxu0 %vm5823_vm8, %v5824_v59 }
 0x1de   : > { %v1571_v29 = vrot.slane %v8053_v34, 7  ;;  %v976_v46 = vadd.f32 %v975_v20, %v7810_v47  ;;  %v1736_v59 = vsel %vm1714_vm1, %v1691_v45, %v1692_v55  ;;  %v1739_v20 = vsel %vm1714_vm1, %v1688_v9, %v1689_v8 }
 0x1df   : > { %v8067_v6 = vpop.f32.mrf.mxu0  ;;  %v1737_v31 = vsel %vm1714_vm1, %v1690_v30, %v1691_v45  ;;  %v1693_v45 = vrot.slane %v7938_v24, 1 }
 0x1e0   : > { %9129 = vst [vmem:[#allocation52_spill] sm:$0xff] %v8067_v6  ;;  %v8070_v2 = vmax.f32 %v976_v46, 0.0  ;;  %v8076_v36 = vsel %vm1585_vm0, %v1570_v21, %v1571_v29  ;;  %v1218_v46 = vand.u32 15, %v1116_v40  ;;  %v5827_v21 = vpack.c.bf16 %v1738_v32, %v1739_v20  ;;  %v7042_v20 = vld [vmem:[#allocation11 + $0x28] sm:$0xff]  }
 0x1e1   : > { %v981_v43 = vpop.f32.mrf.mxu0  ;;  %v1232_v6 = vand.u32 15, %v1118_v10  ;;  %v5830_v9 = vpack.c.bf16 %v1736_v59, %v1737_v31  ;;  %v9065_v40 = vrot.slane %v7975_v18, 1  ;;  %v1120_v31 = vadd.s32 120, %v7804_v44 }
 0x1e2   : > { %v1572_v61 = vrot.slane %v8070_v2, 7  ;;  %v982_v14 = vadd.f32 %v981_v43, %v7810_v47  ;;  %v1820_v33 = vpack.c.bf16 %v8070_v2, %v8053_v34  ;;  %v1694_v43 = vrot.slane %v7950_v37, 1 }
 0x1e3   : > { %v8085_v13 = vpop.f32.mrf.mxu0  ;;  %vm1661_vm13 = vcmp.ne.s32.totalorder %v1218_v46, 15  ;;  %vm1663_vm14 = vcmp.ne.s32.totalorder %v1232_v6, 15 }
 0x1e4   : > { %9130 = vst [vmem:[#allocation53_spill] sm:$0xff] %v8085_v13  ;;  %v8093_v7 = vmax.f32 %v982_v14, 0.0  ;;  %v8097_v8 = vsel %vm1585_vm0, %v1571_v29, %v1572_v61  ;;  %6534 = vmatmul.mubr.bf16.vlgmr.msra.gmra.mxu1 %v1820_v33  ;;  %6618 = vmatmul.mubr.msk.bf16.gmra.mxu0 %vm5826_vm11, %v5827_v21  ;;  %v1695_v29 = vrot.slane %v7962_v56, 1  ;;  %v1122_v14 = vadd.s32 136, %v7804_v44  ;;  %vm8128_vm15 = vmpackc.low %vm1661_vm13, %vm7470_vm3 }
 0x1e5   : > { %v985_v32 = vpop.f32.mrf.mxu0  ;;  %6621 = vmatprep.mubr.msk.bf16.mxu0 %vm5829_vm12, %v5830_v9  ;;  %6550 = vmatpush3.bf16.msra.mxu1 %v7801_v42  ;;  %v1734_v24 = vsel %vm1714_vm1, %v1693_v45, %v1694_v43  ;;  %vm8139_vm2 = vmpackc.low %vm1663_vm14, %vm7470_vm3 }
 0x1e6   : > { %v1573_v10 = vrot.slane %v8093_v7, 7  ;;  %v986_v37 = vadd.f32 %v985_v32, %v7810_v47  ;;  %6551 = vmatprep.subr.bf16.mxu1 %v7041_v53  ;;  %v1732_v56 = vsel %vm1714_vm1, %v1695_v29, %v9065_v40  ;;  %v1735_v32 = vsel %vm1714_vm1, %v1692_v55, %v1693_v45  ;;  %v7043_v45 = vld [vmem:[#allocation11 + $0x20] sm:$0xff]  }
 0x1e7   : > { %v8108_v59 = vpop.f32.mrf.mxu0  ;;  %v5833_v40 = vpack.c.bf16 %v1734_v24, %v1735_v32  ;;  %v1733_v13 = vsel %vm1714_vm1, %v1694_v43, %v1695_v29  ;;  %v1260_v55 = vand.u32 15, %v1122_v14  ;;  %v9066_v24 = vrot.slane %v8053_v34, 1 }
 0x1e8   : > { %9131 = vst [vmem:[#allocation54_spill] sm:$0xff] %v8108_v59  ;;  %v8111_v33 = vmax.f32 %v986_v37, 0.0  ;;  %v8117_v21 = vsel %vm1585_vm0, %v1572_v61, %v1573_v10  ;;  %v1246_v61 = vand.u32 15, %v1120_v31  ;;  %v1698_v31 = vrot.slane %v8013_v57, 1 }
 0x1e9   : > { %v991_v42 = vpop.f32.mrf.mxu0  ;;  %6552 = vmatpush3.bf16.msra.mxu1 %v7041_v53  ;;  %v1697_v14 = vrot.slane %v7992_v62, 1  ;;  %vm1667_vm5 = vcmp.ne.s32.totalorder %v1260_v55, 15 }
 0x1ea   : > { %v1574_v46 = vrot.slane %v8111_v33, 7  ;;  %v992_v9 = vadd.f32 %v991_v42, %v7810_v47  ;;  %v1821_v30 = vpack.c.bf16 %v8111_v33, %v8093_v7  ;;  %6553 = vmatprep.subr.bf16.mxu1 %v7042_v20  ;;  %vm1665_vm4 = vcmp.ne.s32.totalorder %v1246_v61, 15  ;;  %vm8195_vm7 = vmpackc.low %vm1667_vm5, %vm7470_vm3 }
 0x1eb   : > { %v8132_v37 = vpop.f32.mrf.mxu0  ;;  %v1730_v32 = vsel %vm1714_vm1, %v1697_v14, %v1698_v31  ;;  %v9138_v42 = vrot.slane %v7975_v18, 1  ;;  %vm8184_vm6 = vmpackc.low %vm1665_vm4, %vm7470_vm3  ;;  %v9145_v18 = vrot.slane %v8053_v34, 1 }
 0x1ec   : > { %9134 = vst [vmem:[#allocation55_spill] sm:$0xff] %v8132_v37  ;;  %v8144_v53 = vmax.f32 %v992_v9, 0.0  ;;  %v5836_v37 = vpack.c.bf16 %v1732_v56, %v1733_v13  ;;  %v8148_v59 = vsel %vm1585_vm0, %v1573_v10, %v1574_v46  ;;  %6537 = vmatprep.mubr.bf16.mxu1 %v1821_v30  ;;  %6622 = vmatmul.mubr.msk.bf16.gmra.mxu0 %vm8128_vm15, %v5833_v40  ;;  %v1124_v10 = vadd.s32 152, %v7804_v44  ;;  %v7044_v9 = vld [vmem:[#allocation11 + $0x18] sm:$0xff]  }
 0x1ed   : > { %v995_v43 = vpop.f32.mrf.mxu0  ;;  %6554 = vmatpush3.bf16.msra.mxu1 %v7042_v20  ;;  %v1699_v30 = vrot.slane %v8032_v49, 1  ;;  %v1126_v40 = vadd.s32 168, %v7804_v44 }
 0x1ee   : > { %v1575_v57 = vrot.slane %v8144_v53, 7  ;;  %v996_v13 = vadd.f32 %v995_v43, %v7810_v47  ;;  %6625 = vmatprep.mubr.msk.bf16.mxu0 %vm8139_vm2, %v5836_v37  ;;  %6555 = vmatprep.subr.bf16.mxu1 %v7043_v45  ;;  %v1731_v43 = vsel %vm1714_vm1, %v9138_v42, %v1697_v14  ;;  %v7045_v42 = vld [vmem:[#allocation11 + $0x10] sm:$0xff]  }
 0x1ef   : > { %v8162_v56 = vpop.f32.mrf.mxu0  ;;  %v1728_v49 = vsel %vm1714_vm1, %v1699_v30, %v9066_v24  ;;  %v5839_v24 = vpack.c.bf16 %v1730_v32, %v1731_v43  ;;  %v1288_v14 = vand.u32 15, %v1126_v40  ;;  %v9067_v32 = vrot.slane %v8144_v53, 1  ;;  %v7046_v43 = vld [vmem:[#allocation11 + $0x8] sm:$0xff]  }
 0x1f0   : > { %9137 = vst [vmem:[#allocation56_spill] sm:$0xff] %v8162_v56  ;;  %v8165_v62 = vmax.f32 %v996_v13, 0.0  ;;  %v8171_v6 = vsel %vm1585_vm0, %v1574_v46, %v1575_v57  ;;  %v1274_v46 = vand.u32 15, %v1124_v10  ;;  %v1702_v10 = vrot.slane %v8093_v7, 1 }
 0x1f1   : > { %v1001_v20 = vpop.f32.mrf.mxu0  ;;  %6556 = vmatpush3.bf16.msra.mxu1 %v7043_v45  ;;  %v1701_v40 = vrot.slane %v8070_v2, 1  ;;  %vm1671_vm9 = vcmp.ne.s32.totalorder %v1288_v14, 15 }
 0x1f2   : > { %v1576_v61 = vrot.slane %v8165_v62, 7  ;;  %v1002_v37 = vadd.f32 %v1001_v20, %v7810_v47  ;;  %v1822_v29 = vpack.c.bf16 %v8165_v62, %v8144_v53  ;;  %v1729_v20 = vsel %vm1714_vm1, %v1698_v31, %v1699_v30  ;;  %6557 = vmatprep.subr.bf16.mxu1 %v7044_v9  ;;  %vm8247_vm11 = vmpackc.low %vm1671_vm9, %vm7470_vm3 }
 0x1f3   : > { %v8188_v13 = vpop.f32.mrf.mxu0  ;;  %vm1669_vm8 = vcmp.ne.s32.totalorder %v1274_v46, 15  ;;  %v1726_v55 = vsel %vm1714_vm1, %v1701_v40, %v1702_v10 }
 0x1f4   : > { %9141 = vst [vmem:[#allocation57_spill] sm:$0xff] %v8188_v13  ;;  %v8200_v45 = vmax.f32 %v1002_v37, 0.0  ;;  %v5842_v13 = vpack.c.bf16 %v1728_v49, %v1729_v20  ;;  %v8204_v56 = vsel %vm1585_vm0, %v1575_v57, %v1576_v61  ;;  %6538 = vmatmul.mubr.bf16.gmra.mxu1 %v1822_v29  ;;  %6626 = vmatmul.mubr.msk.bf16.gmra.mxu0 %vm8184_vm6, %v5839_v24  ;;  %v1128_v57 = vadd.s32 184, %v7804_v44  ;;  %vm8237_vm10 = vmpackc.low %vm1669_vm8, %vm7470_vm3 }
 0x1f5   : > { %v1005_v31 = vpop.f32.mrf.mxu0  ;;  %6558 = vmatpush3.bf16.msra.mxu1 %v7044_v9  ;;  %v1703_v29 = vrot.slane %v8111_v33, 1  ;;  %v1130_v24 = vadd.s32 200, %v7804_v44 }
 0x1f6   : > { %v1577_v7 = vrot.slane %v8200_v45, 7  ;;  %v1006_v49 = vadd.f32 %v1005_v31, %v7810_v47  ;;  %6629 = vmatprep.mubr.msk.bf16.mxu0 %vm8195_vm7, %v5842_v13  ;;  %6559 = vmatprep.subr.bf16.mxu1 %v7045_v42  ;;  %v1727_v31 = vsel %vm1714_vm1, %v9145_v18, %v1701_v40  ;;  %v7047_v18 = vld [vmem:[#allocation11] sm:$0xff]  }
 0x1f7   : > { %v8218_v37 = vpop.f32.mrf.mxu0  ;;  %v1724_v33 = vsel %vm1714_vm1, %v1703_v29, %v9067_v32  ;;  %v5845_v32 = vpack.c.bf16 %v1726_v55, %v1727_v31  ;;  %v1316_v40 = vand.u32 15, %v1130_v24  ;;  %v1705_v24 = vrot.slane %v8165_v62, 1 }
 0x1f8   : > { %9144 = vst [vmem:[#allocation58_spill] sm:$0xff] %v8218_v37  ;;  %v1090_v2 = vmax.f32 %v1006_v49, 0.0  ;;  %v8225_v13 = vsel %vm1585_vm0, %v1576_v61, %v1577_v7  ;;  %v1302_v61 = vand.u32 15, %v1128_v57  ;;  %v1706_v37 = vrot.slane %v8200_v45, 1 }
 0x1f9   : > { %v1011_v20 = vpop.f32.mrf.mxu0  ;;  %6560 = vmatpush3.bf16.msra.mxu1 %v7045_v42  ;;  %vm1675_vm13 = vcmp.ne.s32.totalorder %v1316_v40, 15 }
 0x1fa   : > { %v1578_v9 = vrot.slane %v1090_v2, 7  ;;  %v1012_v46 = vadd.f32 %v1011_v20, %v7810_v47  ;;  %v1823_v30 = vpack.c.bf16 %v1090_v2, %v8200_v45  ;;  %v1725_v20 = vsel %vm1714_vm1, %v1702_v10, %v1703_v29  ;;  %6561 = vmatprep.subr.bf16.mxu1 %v7046_v43  ;;  %vm5853_vm15 = vmpackc.low %vm1675_vm13, %vm7470_vm3 }
 0x1fb   : > { %v8241_v49 = vpop.f32.mrf.mxu0  ;;  %v5848_v42 = vpack.c.bf16 %v1724_v33, %v1725_v20  ;;  %vm1673_vm12 = vcmp.ne.s32.totalorder %v1302_v61, 15  ;;  %v9152_v61 = vrot.slane %v8144_v53, 1 }
 0x1fc   : > { %9148 = vst [vmem:[#allocation59_spill] sm:$0xff] %v8241_v49  ;;  %v1092_v57 = vmax.f32 %v1012_v46, 0.0  ;;  %v8254_v49 = vsel %vm1585_vm0, %v1577_v7, %v1578_v9  ;;  %6541 = vmatprep.mubr.bf16.mxu1 %v1823_v30  ;;  %6630 = vmatmul.mubr.msk.bf16.gmra.mxu0 %vm8237_vm10, %v5845_v32  ;;  %v1707_v7 = vrot.slane %v1090_v2, 1  ;;  %v1132_v32 = vadd.s32 216, %v7804_v44  ;;  %vm5850_vm14 = vmpackc.low %vm1673_vm12, %vm7470_vm3 }
 0x1fd   : > { %v1015_v10 = vpop.f32.mrf.mxu0  ;;  %6633 = vmatprep.mubr.msk.bf16.mxu0 %vm8247_vm11, %v5848_v42  ;;  %6562 = vmatpush3.bf16.msra.mxu1 %v7046_v43  ;;  %v1722_v46 = vsel %vm1714_vm1, %v1705_v24, %v1706_v37  ;;  %v1723_v34 = vsel %vm1714_vm1, %v9152_v61, %v1705_v24  ;;  %v1134_v24 = vadd.s32 232, %v7804_v44 }
 0x1fe   : > { %v1579_v55 = vrot.slane %v1092_v57, 7  ;;  %v1708_v31 = vrot.slane %v1092_v57, 1  ;;  %v1016_v45 = vadd.f32 %v1015_v10, %v7810_v47  ;;  %6563 = vmatprep.subr.bf16.mxu1 %v7047_v18  ;;  %v1721_v10 = vsel %vm1714_vm1, %v1706_v37, %v1707_v7 }
 0x1ff   : > { %v8264_v33 = vpop.f32.mrf.mxu0 }
 0x200   : > { %9151 = vst [vmem:[#allocation60_spill] sm:$0xff] %v8264_v33  ;;  %v1094_v30 = vmax.f32 %v1016_v45, 0.0  ;;  %v8271_v62 = vsel %vm1585_vm0, %v1578_v9, %v1579_v55  ;;  %v1720_v43 = vsel %vm1714_vm1, %v1707_v7, %v1708_v31  ;;  %v5851_v9 = vpack.c.bf16 %v1722_v46, %v1723_v34 }
 0x201   : > { %v1021_v14 = vpop.f32.mrf.mxu0  ;;  %6564 = vmatpush3.bf16.msra.mxu1 %v7047_v18  ;;  %v1330_v45 = vand.u32 15, %v1132_v32  ;;  %v5854_v33 = vpack.c.bf16 %v1720_v43, %v1721_v10 }
 0x202   : > { %v1580_v2 = vrot.slane %v1094_v30, 7  ;;  %v1022_v20 = vadd.f32 %v1021_v14, %v7810_v47  ;;  %v1824_v42 = vpack.c.bf16 %v1094_v30, %v1092_v57  ;;  %v1709_v29 = vrot.slane %v1094_v30, 1 }
 0x203   : > { %v8281_v40 = vpop.f32.mrf.mxu0  ;;  %vm1677_vm2 = vcmp.ne.s32.totalorder %v1330_v45, 15  ;;  %v1109_v57 = vadd.s32 32, %v7804_v44 }
 0x204   : > { %9153 = vst [vmem:[#allocation61_spill] sm:$0xff] %v8281_v40  ;;  %v1096_v14 = vmax.f32 %v1022_v20, 0.0  ;;  %v8288_v53 = vsel %vm1585_vm0, %v1579_v55, %v1580_v2  ;;  %6542 = vmatmul.mubr.bf16.gmra.mxu1 %v1824_v42  ;;  %6634 = vmatmul.mubr.msk.bf16.gmra.mxu0 %vm5850_vm14, %v5851_v9  ;;  %v1719_v43 = vsel %vm1714_vm1, %v1708_v31, %v1709_v29  ;;  %v1344_v42 = vand.u32 15, %v1134_v24  ;;  %vm5856_vm4 = vmpackc.low %vm1677_vm2, %vm7470_vm3 }
 0x205   : > { %v1025_v18 = vpop.f32.mrf.mxu0  ;;  %6637 = vmatprep.mubr.msk.bf16.mxu0 %vm5853_vm15, %v5854_v33  ;;  %v1136_v33 = vadd.s32 248, %v7804_v44 }
 0x206   : > { %v1581_v46 = vrot.slane %v1096_v14, 7  ;;  %v1710_v37 = vrot.slane %v1096_v14, 1  ;;  %v1026_v7 = vadd.f32 %v1025_v18, %v7810_v47  ;;  %vm1679_vm5 = vcmp.ne.s32.totalorder %v1344_v42, 15 }
 0x207   : > { %v8294_v32 = vpop.f32.mrf.mxu0  ;;  %vm5859_vm6 = vmpackc.low %vm1679_vm5, %vm7470_vm3 }
 0x208   : > { %9154 = vst [vmem:[#allocation62_spill] sm:$0xff] %v8294_v32  ;;  %v8296_v30 = vmax.f32 %v1026_v7, 0.0  ;;  %v1718_v55 = vsel %vm1714_vm1, %v1709_v29, %v1710_v37  ;;  %v8304_v20 = vsel %vm1585_vm0, %v1580_v2, %v1581_v46  ;;  %v1141_v2 = vand.u32 15, %v7804_v44 }
 0x209   : > { %v1031_v61 = vpop.f32.mrf.mxu0  ;;  %v5857_v34 = vpack.c.bf16 %v1718_v55, %v1719_v43  ;;  %v1358_v55 = vand.u32 15, %v1136_v33 }
 0x20a   : > { %v1582_v9 = vrot.slane %v8296_v30, 7  ;;  %v1032_v10 = vadd.f32 %v1031_v61, %v7810_v47  ;;  %v1825_v18 = vpack.c.bf16 %v8296_v30, %v1096_v14  ;;  %v1711_v29 = vrot.slane %v8296_v30, 1  ;;  %v7058_v30 = vld [vmem:[#allocation12 + $0x20] sm:$0xff]  }
 0x20b   : > { %v8310_v45 = vpop.f32.mrf.mxu0  ;;  %vm1521_vm7 = vcmp.ne.s32.totalorder %v1141_v2, 0  ;;  %vm1681_vm8 = vcmp.ne.s32.totalorder %v1358_v55, 15  ;;  %v9157_v55 = vrot.slane %v7815_v52, 1 }
 0x20c   : > { %9155 = vst [vmem:[#allocation63_spill] sm:$0xff] %v8310_v45  ;;  %v8314_v31 = vmax.f32 %v1032_v10, 0.0  ;;  %v8321_v24 = vsel %vm1585_vm0, %v1581_v46, %v1582_v9  ;;  %6545 = vmatprep.mubr.bf16.mxu1 %v1825_v18  ;;  %6638 = vmatmul.mubr.msk.bf16.gmra.mxu0 %vm5856_vm4, %v5857_v34  ;;  %v1107_v10 = vadd.s32 16, %v7804_v44  ;;  %v1717_v34 = vsel %vm1714_vm1, %v1710_v37, %v1711_v29  ;;  %vm5761_vm9 = vmpackc.low %vm7470_vm3, %vm1521_vm7 }
 0x20d   : > { %v1035_v7 = vpop.f32.mrf.mxu0  ;;  %v5804_v14 = vpack.c.bf16 %v8321_v24, %v8304_v20  ;;  %v9156_v37 = vrot.slane %v7815_v52, 7  ;;  %vm5862_vm10 = vmpackc.low %vm1681_vm8, %vm7470_vm3  ;;  %v7053_v20 = vld [vmem:[#allocation12 + $0x50] sm:$0xff]   ;;  %v7057_v24 = vld [vmem:[#allocation12 + $0x28] sm:$0xff]  }
 0x20e   : > { %v1712_v43 = vrot.slane %v8314_v31, 1  ;;  %v1036_v61 = vadd.f32 %v1035_v7, %v7810_v47  ;;  %v1155_v7 = vand.u32 15, %v1107_v10 }
 0x210   : > { %v8329_v45 = vmax.f32 %v1036_v61, 0.0  ;;  %v1716_v46 = vsel %vm1714_vm1, %v1711_v29, %v1712_v43  ;;  %v1169_v61 = vand.u32 15, %v1109_v57  ;;  %vm1523_vm11 = vcmp.ne.s32.totalorder %v1155_v7, 0 }
 0x211   : > { %v5860_v42 = vpack.c.bf16 %v1716_v46, %v1717_v34  ;;  %v1111_v34 = vadd.s32 48, %v7804_v44  ;;  %vm5764_vm13 = vmpackc.low %vm7470_vm3, %vm1523_vm11  ;;  %v1117_v7 = vadd.s32 96, %v7804_v44 }
 0x212   : > { %v1584_v33 = vrot.slane %v8329_v45, 7  ;;  %v1713_v47 = vrot.slane %v8329_v45, 1  ;;  %v1826_v18 = vpack.c.bf16 %v8329_v45, %v8314_v31  ;;  %vm1525_vm12 = vcmp.ne.s32.totalorder %v1169_v61, 0  ;;  %v7055_v45 = vld [vmem:[#allocation12 + $0x30] sm:$0xff]  }
 0x213   : > { %6641 = vmatprep.mubr.msk.bf16.mxu0 %vm5859_vm6, %v5860_v42  ;;  %v1113_v42 = vadd.s32 64, %v7804_v44  ;;  %vm5767_vm14 = vmpackc.low %vm7470_vm3, %vm1525_vm12  ;;  %v1183_v52 = vand.u32 15, %v1111_v34 }
 0x214   : > { %6546 = vmatmul.mubr.bf16.gmra.mxu1 %v1826_v18  ;;  %v1617_v29 = vsel %vm1585_vm0, %v1584_v33, %v9156_v37  ;;  %v1715_v2 = vsel %vm1714_vm1, %v1712_v43, %v1713_v47  ;;  %v1746_v10 = vsel %vm1714_vm1, %v1713_v47, %v9157_v55  ;;  %v9158_v47 = vpack.c.bf16 %v7856_v12, %v7844_v4 }
 0x215   : > { %v5762_v57 = vpack.c.bf16 %v7836_v63, %v1617_v29  ;;  %v5863_v46 = vpack.c.bf16 %v1746_v10, %v1715_v2  ;;  %v1197_v43 = vand.u32 15, %v1113_v42  ;;  %v9159_v63 = vpack.c.bf16 %v7880_v28, %v7870_v22 }
 0x216   : > { %vm1527_vm1 = vcmp.ne.s32.totalorder %v1183_v52, 0  ;;  %v1115_v18 = vadd.s32 80, %v7804_v44  ;;  %v1225_v37 = vand.u32 15, %v1117_v7  ;;  %v9160_v4 = vpack.c.bf16 %v7906_v48, %v7894_v38  ;;  %v7061_v7 = vld [vmem:[#allocation12 + $0x10] sm:$0xff]  }
 0x217   : > { %6565 = vmatprep.mubr.msk.bf16.mxu1 %vm5761_vm9, %v5762_v57  ;;  %6642 = vmatmul.mubr.msk.bf16.gmra.mxu0 %vm5862_vm10, %v5863_v46  ;;  %vm1529_vm15 = vcmp.ne.s32.totalorder %v1197_v43, 0  ;;  %vm5770_vm2 = vmpackc.low %vm7470_vm3, %vm1527_vm1  ;;  %v9161_v12 = vpack.c.bf16 %v7930_v15, %v7918_v0  ;;  %v1119_v22 = vadd.s32 112, %v7804_v44  ;;  %v1121_v28 = vadd.s32 128, %v7804_v44  ;;  %v7048_v0 = vld [vmem:[#allocation12 + $0x78] sm:$0xff]  }
 0x218   : > { %vm5773_vm4 = vmpackc.low %vm7470_vm3, %vm1529_vm15  ;;  %v1211_v61 = vand.u32 15, %v1115_v18  ;;  %vm1533_vm6 = vcmp.ne.s32.totalorder %v1225_v37, 0  ;;  %v9162_v38 = vpack.c.bf16 %v7954_v39, %v7942_v25  ;;  %v9163_v48 = vpack.c.bf16 %v7979_v27, %v7967_v1  ;;  %6645 = vmatprep.subr.bf16.mxu1 %v7048_v0  ;;  %v7049_v27 = vld [vmem:[#allocation12 + $0x70] sm:$0xff]   ;;  %v7059_v18 = vld [vmem:[#allocation12 + $0x40] sm:$0xff]  }
 0x219   : > { %vm5779_vm8 = vmpackc.low %vm7470_vm3, %vm1533_vm6  ;;  %v1239_v29 = vand.u32 15, %v1119_v22  ;;  %v1253_v2 = vand.u32 15, %v1121_v28  ;;  %v1123_v15 = vadd.s32 144, %v7804_v44  ;;  %v1125_v55 = vadd.s32 160, %v7804_v44  ;;  %v7063_v37 = vld [vmem:[#allocation12 + $0x8] sm:$0xff]   ;;  %v8436_v28 = vld [vmem:[#allocation12 + $0xb8] sm:$0xff]  }
 0x21a   : > { %vm1531_vm5 = vcmp.ne.s32.totalorder %v1211_v61, 0  ;;  %v9164_v39 = vpack.c.bf16 %v8017_v51, %v7996_v16  ;;  %v9165_v1 = vpack.c.bf16 %v8057_v17, %v8036_v5  ;;  %v1127_v57 = vadd.s32 176, %v7804_v44  ;;  %v7050_v17 = vld [vmem:[#allocation12 + $0x68] sm:$0xff]  }
 0x21b   : > { %vm5776_vm7 = vmpackc.low %vm7470_vm3, %vm1531_vm5  ;;  %vm1535_vm9 = vcmp.ne.s32.totalorder %v1239_v29, 0  ;;  %vm1537_vm10 = vcmp.ne.s32.totalorder %v1253_v2, 0  ;;  %v1267_v10 = vand.u32 15, %v1123_v15  ;;  %v1281_v25 = vand.u32 15, %v1125_v55  ;;  %v7066_v29 = vld [vmem:[#allocation2] sm:$0xff]  }
 0x21c   : > { %6566 = vmatmul.mubr.msk.bf16.vlgmr.msra.gmra.mxu1 %vm5764_vm13, %v9158_v47  ;;  %vm5782_vm11 = vmpackc.low %vm7470_vm3, %vm1535_vm9  ;;  %v1129_v46 = vadd.s32 192, %v7804_v44  ;;  %v1295_v34 = vand.u32 15, %v1127_v57  ;;  %v9166_v16 = vpack.c.bf16 %v8097_v8, %v8076_v36  ;;  %v9167_v5 = vpack.c.bf16 %v8148_v59, %v8117_v21  ;;  %v7051_v21 = vld [vmem:[#allocation12 + $0x60] sm:$0xff]   ;;  %6709 = vmatprep.mubr.bf16.mxu0 %v7066_v29 }
 0x21d   : > { %6569 = vmatprep.mubr.msk.bf16.mxu1 %vm5767_vm14, %v9159_v63  ;;  %6646 = vmatpush3.bf16.msra.mxu1 %v7048_v0  ;;  %vm5785_vm12 = vmpackc.low %vm7470_vm3, %vm1537_vm10  ;;  %vm1539_vm13 = vcmp.ne.s32.totalorder %v1267_v10, 0  ;;  %vm1541_vm14 = vcmp.ne.s32.totalorder %v1281_v25, 0  ;;  %v1131_v42 = vadd.s32 208, %v7804_v44  ;;  %v1133_v52 = vadd.s32 224, %v7804_v44 }
 0x21e   : > { %6647 = vmatprep.subr.bf16.mxu1 %v7049_v27  ;;  %vm5788_vm1 = vmpackc.low %vm7470_vm3, %vm1539_vm13  ;;  %v1309_v51 = vand.u32 15, %v1129_v46  ;;  %v9168_v8 = vpack.c.bf16 %v8204_v56, %v8171_v6  ;;  %v9169_v59 = vpack.c.bf16 %v8254_v49, %v8225_v13  ;;  %v1135_v47 = vadd.s32 240, %v7804_v44  ;;  %v7052_v13 = vld [vmem:[#allocation12 + $0x58] sm:$0xff]  }
 0x21f   : > { %vm5791_vm15 = vmpackc.low %vm7470_vm3, %vm1541_vm14  ;;  %v1323_v43 = vand.u32 15, %v1131_v42  ;;  %v1337_v36 = vand.u32 15, %v1133_v52  ;;  %v9170_v56 = vpack.c.bf16 %v8288_v53, %v8271_v62  ;;  %v1583_v6 = vrot.slane %v8314_v31, 7  ;;  %v7054_v31 = vld [vmem:[#allocation12 + $0x38] sm:$0xff]  }
 0x220   : > { %v1351_v63 = vand.u32 15, %v1135_v47  ;;  %6693 = vmatprep.subr.bf16.mxu0 %v7054_v31 }
 0x221   : > { %6648 = vmatpush3.bf16.msra.mxu1 %v7049_v27  ;;  %v1586_v49 = vsel %vm1585_vm0, %v1583_v6, %v1584_v33  ;;  %v1587_v62 = vsel %vm1585_vm0, %v1582_v9, %v1583_v6  ;;  %6694 = vmatpush3.bf16.msra.mxu0 %v7054_v31  ;;  %v7060_v9 = vld [vmem:[#allocation12 + $0x18] sm:$0xff]   ;;  %v8434_v33 = vpop.f32.mrf.mxu0 }
 0x222   : > { %6649 = vmatprep.subr.bf16.mxu1 %v7050_v17  ;;  %v5807_v53 = vpack.c.bf16 %v1586_v49, %v1587_v62  ;;  %6695 = vmatprep.subr.bf16.mxu0 %v7055_v45  ;;  %9171 = vst [vmem:[#allocation64_spill] sm:$0xff] %v8434_v33 }
 0x224   : > { %6570 = vmatmul.mubr.msk.bf16.gmra.mxu1 %vm5770_vm2, %v9160_v4  ;;  %vm1543_vm2 = vcmp.ne.s32.totalorder %v1295_v34, 0 }
 0x225   : > { %6573 = vmatprep.mubr.msk.bf16.mxu1 %vm5773_vm4, %v9161_v12  ;;  %vm1545_vm4 = vcmp.ne.s32.totalorder %v1309_v51, 0  ;;  %6650 = vmatpush3.bf16.msra.mxu1 %v7050_v17  ;;  %vm5794_vm5 = vmpackc.low %vm7470_vm3, %vm1543_vm2  ;;  %v7064_v12 = vld [vmem:[#allocation12] sm:$0xff]  }
 0x226   : > { %vm5797_vm6 = vmpackc.low %vm7470_vm3, %vm1545_vm4  ;;  %6651 = vmatprep.subr.bf16.mxu1 %v7051_v21  ;;  %6696 = vmatpush3.bf16.msra.mxu0 %v7055_v45 }
 0x227   : > { %6697 = vmatprep.subr.bf16.mxu0 %v7057_v24 }
 0x229   : > { %6652 = vmatpush3.bf16.msra.mxu1 %v7051_v21 }
 0x22a   : > { %6653 = vmatprep.subr.bf16.mxu1 %v7052_v13  ;;  %6698 = vmatpush3.bf16.msra.mxu0 %v7057_v24 }
 0x22b   : > { %6699 = vmatprep.subr.bf16.mxu0 %v7058_v30 }
 0x22c   : > { %6574 = vmatmul.mubr.msk.bf16.gmra.mxu1 %vm5776_vm7, %v9162_v38  ;;  %vm1547_vm7 = vcmp.ne.s32.totalorder %v1323_v43, 0 }
 0x22d   : > { %6577 = vmatprep.mubr.msk.bf16.mxu1 %vm5779_vm8, %v9163_v48  ;;  %vm1549_vm8 = vcmp.ne.s32.totalorder %v1337_v36, 0  ;;  %vm5800_vm9 = vmpackc.low %vm7470_vm3, %vm1547_vm7  ;;  %6654 = vmatpush3.bf16.msra.mxu1 %v7052_v13 }
 0x22e   : > { %vm5803_vm10 = vmpackc.low %vm7470_vm3, %vm1549_vm8  ;;  %6655 = vmatprep.subr.bf16.mxu1 %v7053_v20  ;;  %6700 = vmatpush3.bf16.msra.mxu0 %v7058_v30 }
 0x22f   : > { %6701 = vmatprep.subr.bf16.mxu0 %v7060_v9 }
 0x231   : > { %6656 = vmatpush3.bf16.msra.mxu1 %v7053_v20 }
 0x232   : > { %6702 = vmatpush3.bf16.msra.mxu0 %v7060_v9 }
 0x233   : > { %6703 = vmatprep.subr.bf16.mxu0 %v7061_v7 }
 0x234   : > { %6578 = vmatmul.mubr.msk.bf16.gmra.mxu1 %vm5782_vm11, %v9164_v39  ;;  %vm1551_vm11 = vcmp.ne.s32.totalorder %v1351_v63, 0 }
 0x235   : > { %6581 = vmatprep.mubr.msk.bf16.mxu1 %vm5785_vm12, %v9165_v1  ;;  %vm5806_vm12 = vmpackc.low %vm7470_vm3, %vm1551_vm11 }
 0x236   : > { %6704 = vmatpush3.bf16.msra.mxu0 %v7061_v7 }
 0x237   : > { %6705 = vmatprep.subr.bf16.mxu0 %v7063_v37 }
 0x23a   : > { %6706 = vmatpush3.bf16.msra.mxu0 %v7063_v37 }
 0x23b   : > { %6707 = vmatprep.subr.bf16.mxu0 %v7064_v12 }
 0x23c   : > { %6582 = vmatmul.mubr.msk.bf16.gmra.mxu1 %vm5788_vm1, %v9166_v16 }
 0x23d   : > { %6585 = vmatprep.mubr.msk.bf16.mxu1 %vm5791_vm15, %v9167_v5 }
 0x23e   : > { %6708 = vmatpush3.bf16.msra.mxu0 %v7064_v12 }
 0x244   : > { %6586 = vmatmul.mubr.msk.bf16.gmra.mxu1 %vm5794_vm5, %v9168_v8 }
 0x245   : > { %6589 = vmatprep.mubr.msk.bf16.mxu1 %vm5797_vm6, %v9169_v59 }
 0x24c   : > { %6590 = vmatmul.mubr.msk.bf16.gmra.mxu1 %vm5800_vm9, %v9170_v56 }
 0x24d   : > { %6593 = vmatprep.mubr.msk.bf16.mxu1 %vm5803_vm10, %v5804_v14  ;;  %v7056_v14 = vld [vmem:[#allocation12 + $0x48] sm:$0xff]  }
 0x24e   : > { %6657 = vmatprep.subr.bf16.mxu1 %v7056_v14 }
 0x24f   : > { %6658 = vmatpush3.bf16.msra.mxu1 %v7056_v14 }
 0x250   : > { %6659 = vmatprep.subr.bf16.mxu1 %v7059_v18 }
 0x253   : > { %6660 = vmatpush3.bf16.msra.mxu1 %v7059_v18 }
 0x254   : > { %6594 = vmatmul.mubr.msk.bf16.gmra.mxu1 %vm5806_vm12, %v5807_v53  ;;  %6741 = vmatprep.subr.bf16.mxu1 %v8436_v28 }
 0x264   : > { %v6519_v61 = vpop.f32.mrf.mxu0 }
 0x266   : > { %v1926_v4 = vpop.f32.mrf.mxu0 }
 0x268   : > { %v6520_v22 = vpop.f32.mrf.mxu0 }
 0x26a   : > { %v1929_v2 = vpop.f32.mrf.mxu0 }
 0x274   : > { %v6523_v38 = vpop.f32.mrf.mxu0 }
 0x276   : > { %v8439_v48 = vpop.f32.mrf.mxu0 }
 0x278   : > { %v8441_v0 = vpop.f32.mrf.mxu0 }
 0x27a   : > { %v8443_v15 = vpop.f32.mrf.mxu0 }
 0x284   : > { %v8445_v55 = vpop.f32.mrf.mxu0 }
 0x286   : > { %v8447_v10 = vpop.f32.mrf.mxu0 }
 0x288   : > { %v8449_v25 = vpop.f32.mrf.mxu0 }
 0x28a   : > { %v8451_v39 = vpop.f32.mrf.mxu0 }
 0x294   : > { %v8453_v1 = vpop.f32.mrf.mxu0 }
 0x296   : > { %v8455_v27 = vpop.f32.mrf.mxu0 }
 0x298   : > { %v8457_v57 = vpop.f32.mrf.mxu0 }
 0x29a   : > { %v8459_v46 = vpop.f32.mrf.mxu0 }
 0x29c   : > { %v6615_v34 = vpop.f32.mrf.mxu0 }
 0x29e   : > { %v2377_v51 = vpop.f32.mrf.mxu0 }
 0x2a0   : > { %v6616_v16 = vpop.f32.mrf.mxu0 }
 0x2a2   : > { %v2380_v17 = vpop.f32.mrf.mxu0 }
 0x2a4   : > { %v8461_v5 = vpop.f32.mrf.mxu1  ;;  %v6619_v52 = vpop.f32.mrf.mxu0 }
 0x2a6   : > { %v8463_v42 = vpop.f32.mrf.mxu1  ;;  %v2393_v36 = vpop.f32.mrf.mxu0 }
 0x2a8   : > { %v8465_v43 = vpop.f32.mrf.mxu1  ;;  %v6620_v21 = vpop.f32.mrf.mxu0 }
 0x2aa   : > { %v8467_v8 = vpop.f32.mrf.mxu1  ;;  %v2396_v63 = vpop.f32.mrf.mxu0 }
 0x2ac   : > { %v8475_v6 = vpop.f32.mrf.mxu0 }
 0x2ae   : > { %v8479_v49 = vpop.f32.mrf.mxu0 }
 0x2b0   : > { %v8483_v53 = vpop.f32.mrf.mxu0 }
 0x2b2   : > { %v8487_v31 = vpop.f32.mrf.mxu0 }
 0x2b4   : > { %v8469_v59 = vpop.f32.mrf.mxu1  ;;  %v8491_v24 = vpop.f32.mrf.mxu0 }
 0x2b6   : > { %v8471_v47 = vpop.f32.mrf.mxu1  ;;  %v8497_v9 = vpop.f32.mrf.mxu0 }
 0x2b8   : > { %v8473_v56 = vpop.f32.mrf.mxu1  ;;  %v8503_v37 = vpop.f32.mrf.mxu0 }
 0x2ba   : > { %v8477_v13 = vpop.f32.mrf.mxu1  ;;  %v8507_v40 = vpop.f32.mrf.mxu0 }
 0x2bc   : > { %v8514_v11 = vpop.f32.mrf.mxu0 }
 0x2c4   : > { %v8481_v62 = vpop.f32.mrf.mxu1 }
 0x2c6   : > { %v8485_v20 = vpop.f32.mrf.mxu1 }
 0x2c8   : > { %v8489_v45 = vpop.f32.mrf.mxu1 }
 0x2ca   : > { %v8493_v30 = vpop.f32.mrf.mxu1 }
 0x2d4   : > { %v8495_v14 = vpop.f32.mrf.mxu1 }
 0x2d6   : > { %v8499_v18 = vpop.f32.mrf.mxu1 }
 0x2d8   : > { %v8501_v7 = vpop.f32.mrf.mxu1 }
 0x2da   : > { %v8505_v12 = vpop.f32.mrf.mxu1 }
 0x2db   : > { %9172 = vst [vmem:[#allocation65_spill] sm:$0xff] %v8505_v12 }
 0x2dc   : > { %v6567_v29 = vpop.f32.mrf.mxu1 }
 0x2dd   : > { %v2144_v33 = vadd.f32 %v6567_v29, %v6519_v61 }
 0x2de   : > { %v2135_v32 = vpop.f32.mrf.mxu1 }
 0x2df   : > { %v2506_v23 = vadd.f32 %v6615_v34, %v2144_v33  ;;  %v2136_v41 = vadd.f32 %v2135_v32, %v1926_v4  ;;  %v8518_v4 = vpop.f32.mrf.mxu0 }
 0x2e0   : > { %v6568_v26 = vpop.f32.mrf.mxu1 }
 0x2e1   : > { %v2147_v35 = vadd.f32 %v6568_v26, %v6520_v22  ;;  %v2504_v19 = vadd.f32 %v2377_v51, %v2136_v41  ;;  %v2545_v3 = vadd.f32 %v8512_v58, %v2506_v23 }
 0x2e2   : > { %v2138_v60 = vpop.f32.mrf.mxu1 }
 0x2e3   : > { %v2507_v50 = vadd.f32 %v6616_v16, %v2147_v35  ;;  %v2139_v61 = vadd.f32 %v2138_v60, %v1929_v2  ;;  %v2543_v34 = vadd.f32 %v8512_v58, %v2504_v19  ;;  %v2577_v12 = vmax.f32 %v2545_v3, 0.0  ;;  %v8524_v2 = vpop.f32.mrf.mxu0 }
 0x2e4   : > { %v6571_v29 = vpop.f32.mrf.mxu1 }
 0x2e5   : > { %v2546_v54 = vadd.f32 %v8512_v58, %v2507_v50  ;;  %v2505_v33 = vadd.f32 %v2380_v17, %v2139_v61  ;;  %v2160_v32 = vadd.f32 %v6571_v29, %v6523_v38  ;;  %v2575_v50 = vmax.f32 %v2543_v34, 0.0 }
 0x2e6   : > { %v2151_v44 = vpop.f32.mrf.mxu1 }
 0x2e7   : > { %v2578_v26 = vmax.f32 %v2546_v54, 0.0  ;;  %v2544_v22 = vadd.f32 %v8512_v58, %v2505_v33  ;;  %v2152_v41 = vadd.f32 %v2151_v44, %v8439_v48  ;;  %v2510_v51 = vadd.f32 %v6619_v52, %v2160_v32 }
 0x2e8   : > { %v6572_v23 = vpop.f32.mrf.mxu1 }
 0x2e9   : > { %v2608_v35 = vpack.c.bf16 %v2578_v26, %v2577_v12  ;;  %v2163_v60 = vadd.f32 %v6572_v23, %v8441_v0  ;;  %v2508_v38 = vadd.f32 %v2393_v36, %v2152_v41  ;;  %v2576_v17 = vmax.f32 %v2544_v22, 0.0  ;;  %v7065_v0 = vld [vmem:[#allocation12 + $0xb0] sm:$0xff]   ;;  %v8530_v12 = vpop.f32.mrf.mxu0  ;;  %v7069_v41 = vld [vmem:[#allocation12 + $0xa8] sm:$0xff]  }
 0x2ea   : > { %v2154_v16 = vpop.f32.mrf.mxu1  ;;  %v2549_v54 = vadd.f32 %v8512_v58, %v2510_v51 }
 0x2eb   : > { %6206 = vst [vmem:[#allocation2 + $0x10] sm:$0xff] %v2608_v35   ;;  %v2511_v19 = vadd.f32 %v6620_v21, %v2163_v60  ;;  %v2155_v3 = vadd.f32 %v2154_v16, %v8443_v15  ;;  %v2607_v29 = vpack.c.bf16 %v2576_v17, %v2575_v50  ;;  %v2547_v36 = vadd.f32 %v8512_v58, %v2508_v38  ;;  %v8538_v51 = vpop.f32.mrf.mxu0 }
 0x2ec   : > { %v6575_v61 = vpop.f32.mrf.mxu1  ;;  %v2581_v34 = vmax.f32 %v2549_v54, 0.0 }
 0x2ed   : > { %v2550_v44 = vadd.f32 %v8512_v58, %v2511_v19  ;;  %v2509_v48 = vadd.f32 %v2396_v63, %v2155_v3  ;;  %v2176_v52 = vadd.f32 %v6575_v61, %v8445_v55  ;;  %6205 = vst [vmem:[#allocation2 + $0x8] sm:$0xff] %v2607_v29   ;;  %6661 = vmatprep.mubr.bf16.mxu1 %v2607_v29  ;;  %v2579_v23 = vmax.f32 %v2547_v36, 0.0  ;;  %v8547_v54 = vpop.f32.mrf.mxu0 }
 0x2ee   : > { %v2167_v33 = vpop.f32.mrf.mxu1  ;;  %6662 = vmatmul.mubr.bf16.vlgmr.msra.gmra.mxu1 %v2608_v35 }
 0x2ef   : > { %v2582_v21 = vmax.f32 %v2550_v44, 0.0  ;;  %v2548_v15 = vadd.f32 %v8512_v58, %v2509_v48  ;;  %v2168_v32 = vadd.f32 %v2167_v33, %v8447_v10  ;;  %v2514_v26 = vadd.f32 %v8475_v6, %v2176_v52  ;;  %6742 = vmatpush3.bf16.msra.mxu1 %v8436_v28  ;;  %v7075_v33 = vld [vmem:[#allocation12 + $0x98] sm:$0xff]  }
 0x2f0   : > { %v6576_v55 = vpop.f32.mrf.mxu1  ;;  %6743 = vmatprep.subr.bf16.mxu1 %v7065_v0 }
 0x2f1   : > { %v2179_v63 = vadd.f32 %v6576_v55, %v8449_v25  ;;  %v2580_v22 = vmax.f32 %v2548_v15, 0.0  ;;  %v2512_v60 = vadd.f32 %v8479_v49, %v2168_v32  ;;  %v2610_v38 = vpack.c.bf16 %v2582_v21, %v2581_v34  ;;  %v7072_v25 = vld [vmem:[#allocation12 + $0xa0] sm:$0xff]   ;;  %v8554_v21 = vpop.f32.mrf.mxu0 }
 0x2f2   : > { %v2170_v50 = vpop.f32.mrf.mxu1  ;;  %v2553_v6 = vadd.f32 %v8512_v58, %v2514_v26  ;;  %v7068_v61 = vld [vmem:[#allocation2 + $0x10] sm:$0xff]  }
 0x2f3   : > { %v2515_v10 = vadd.f32 %v8483_v53, %v2179_v63  ;;  %v2171_v35 = vadd.f32 %v2170_v50, %v8451_v39  ;;  %v2609_v16 = vpack.c.bf16 %v2580_v22, %v2579_v23  ;;  %6208 = vst [vmem:[#allocation2 + $0x20] sm:$0xff] %v2610_v38   ;;  %6744 = vmatpush3.bf16.msra.mxu1 %v7065_v0  ;;  %v8563_v50 = vpop.f32.mrf.mxu0 }
 0x2f4   : > { %v6579_v28 = vpop.f32.mrf.mxu1  ;;  %v7067_v49 = vld [vmem:[#allocation2 + $0x8] sm:$0xff]   ;;  %6745 = vmatprep.subr.bf16.mxu1 %v7069_v41  ;;  %v2551_v53 = vadd.f32 %v8512_v58, %v2512_v60 }
 0x2f5   : > { %v2554_v17 = vadd.f32 %v8512_v58, %v2515_v10  ;;  %v2513_v19 = vadd.f32 %v8487_v31, %v2171_v35  ;;  %v2192_v3 = vadd.f32 %v6579_v28, %v8453_v1  ;;  %6207 = vst [vmem:[#allocation2 + $0x18] sm:$0xff] %v2609_v16   ;;  %6665 = vmatprep.mubr.bf16.mxu1 %v2609_v16  ;;  %v2585_v31 = vmax.f32 %v2553_v6, 0.0 }
 0x2f6   : > { %v2183_v39 = vpop.f32.mrf.mxu1  ;;  %6666 = vmatmul.mubr.bf16.gmra.mxu1 %v2610_v38  ;;  %6710 = vmatmul.mubr.bf16.vlgmr.msra.gmra.mxu0 %v7067_v49  ;;  %v2583_v15 = vmax.f32 %v2551_v53, 0.0 }
 0x2f7   : > { %v2586_v29 = vmax.f32 %v2554_v17, 0.0  ;;  %v2552_v44 = vadd.f32 %v8512_v58, %v2513_v19  ;;  %v2184_v48 = vadd.f32 %v2183_v39, %v8455_v27  ;;  %v2518_v1 = vadd.f32 %v8491_v24, %v2192_v3  ;;  %6713 = vmatprep.mubr.bf16.mxu0 %v7068_v61  ;;  %6746 = vmatpush3.bf16.msra.mxu1 %v7069_v41  ;;  %v7081_v17 = vld [vmem:[#allocation12 + $0x88] sm:$0xff]   ;;  %v8570_v19 = vpop.f32.mrf.mxu0 }
 0x2f8   : > { %v6580_v52 = vpop.f32.mrf.mxu1  ;;  %6747 = vmatprep.subr.bf16.mxu1 %v7072_v25 }
 0x2f9   : > { %v2195_v0 = vadd.f32 %v6580_v52, %v8457_v57  ;;  %v2584_v36 = vmax.f32 %v2552_v44, 0.0  ;;  %v2516_v32 = vadd.f32 %v8497_v9, %v2184_v48  ;;  %v2612_v27 = vpack.c.bf16 %v2586_v29, %v2585_v31  ;;  %v7078_v57 = vld [vmem:[#allocation12 + $0x90] sm:$0xff]   ;;  %v2473_v52 = vpop.f32.mrf.mxu0 }
 0x2fa   : > { %v2186_v34 = vpop.f32.mrf.mxu1  ;;  %v2557_v24 = vadd.f32 %v8512_v58, %v2518_v1  ;;  %v7071_v38 = vld [vmem:[#allocation2 + $0x20] sm:$0xff]  }
 0x2fb   : > { %v2519_v26 = vadd.f32 %v8503_v37, %v2195_v0  ;;  %v2187_v55 = vadd.f32 %v2186_v34, %v8459_v46  ;;  %v2611_v22 = vpack.c.bf16 %v2584_v36, %v2583_v15  ;;  %6210 = vst [vmem:[#allocation2 + $0x30] sm:$0xff] %v2612_v27   ;;  %6748 = vmatpush3.bf16.msra.mxu1 %v7072_v25 }
 0x2fc   : > { %v6583_v63 = vpop.f32.mrf.mxu1  ;;  %v7070_v9 = vld [vmem:[#allocation2 + $0x18] sm:$0xff]   ;;  %6749 = vmatprep.subr.bf16.mxu1 %v7075_v33  ;;  %v2555_v37 = vadd.f32 %v8512_v58, %v2516_v32 }
 0x2fd   : > { %v2558_v41 = vadd.f32 %v8512_v58, %v2519_v26  ;;  %v2517_v23 = vadd.f32 %v8507_v40, %v2187_v55  ;;  %v2208_v60 = vadd.f32 %v6583_v63, %v8461_v5  ;;  %6209 = vst [vmem:[#allocation2 + $0x28] sm:$0xff] %v2611_v22   ;;  %6669 = vmatprep.mubr.bf16.mxu1 %v2611_v22  ;;  %v2589_v40 = vmax.f32 %v2557_v24, 0.0  ;;  %v6640_v26 = vpop.f32.mrf.mxu0 }
 0x2fe   : > { %v2199_v46 = vpop.f32.mrf.mxu1  ;;  %6670 = vmatmul.mubr.bf16.gmra.mxu1 %v2612_v27  ;;  %6714 = vmatmul.mubr.bf16.gmra.mxu0 %v7070_v9  ;;  %v2587_v3 = vmax.f32 %v2555_v37, 0.0 }
 0x2ff   : > { %v2590_v10 = vmax.f32 %v2558_v41, 0.0  ;;  %v2556_v35 = vadd.f32 %v8512_v58, %v2517_v23  ;;  %v2200_v6 = vadd.f32 %v2199_v46, %v8463_v42  ;;  %v2522_v5 = vadd.f32 %v8514_v11, %v2208_v60  ;;  %6717 = vmatprep.mubr.bf16.mxu0 %v7071_v38  ;;  %6750 = vmatpush3.bf16.msra.mxu1 %v7075_v33 }
 0x300   : > { %v6584_v28 = vpop.f32.mrf.mxu1  ;;  %6751 = vmatprep.subr.bf16.mxu1 %v7078_v57 }
 0x301   : > { %v2211_v16 = vadd.f32 %v6584_v28, %v8465_v43  ;;  %v2588_v25 = vmax.f32 %v2556_v35, 0.0  ;;  %v2520_v49 = vadd.f32 %v8518_v4, %v2200_v6  ;;  %v2614_v42 = vpack.c.bf16 %v2590_v10, %v2589_v40  ;;  %v7084_v43 = vld [vmem:[#allocation12 + $0x80] sm:$0xff]  }
 0x302   : > { %v2202_v53 = vpop.f32.mrf.mxu1  ;;  %v2561_v11 = vadd.f32 %v8512_v58, %v2522_v5  ;;  %v7074_v0 = vld [vmem:[#allocation2 + $0x30] sm:$0xff]  }
 0x303   : > { %v2523_v39 = vadd.f32 %v8524_v2, %v2211_v16  ;;  %v2203_v61 = vadd.f32 %v2202_v53, %v8467_v8  ;;  %v2613_v44 = vpack.c.bf16 %v2588_v25, %v2587_v3  ;;  %6212 = vst [vmem:[#allocation2 + $0x40] sm:$0xff] %v2614_v42   ;;  %6752 = vmatpush3.bf16.msra.mxu1 %v7078_v57 }
 0x304   : > { %v6587_v29 = vpop.f32.mrf.mxu1  ;;  %v7073_v4 = vld [vmem:[#allocation2 + $0x28] sm:$0xff]   ;;  %6753 = vmatprep.subr.bf16.mxu1 %v7081_v17  ;;  %v2559_v2 = vadd.f32 %v8512_v58, %v2520_v49  ;;  %v2593_v32 = vmax.f32 %v2561_v11, 0.0 }
 0x305   : > { %v2562_v48 = vadd.f32 %v8512_v58, %v2523_v39  ;;  %v2521_v31 = vadd.f32 %v8530_v12, %v2203_v61  ;;  %v2224_v1 = vadd.f32 %v6587_v29, %v8469_v59  ;;  %6211 = vst [vmem:[#allocation2 + $0x38] sm:$0xff] %v2613_v44   ;;  %6673 = vmatprep.mubr.bf16.mxu1 %v2613_v44 }
 0x306   : > { %v2215_v8 = vpop.f32.mrf.mxu1  ;;  %6674 = vmatmul.mubr.bf16.gmra.mxu1 %v2614_v42  ;;  %6718 = vmatmul.mubr.bf16.gmra.mxu0 %v7073_v4  ;;  %v2591_v55 = vmax.f32 %v2559_v2, 0.0 }
 0x307   : > { %v2594_v36 = vmax.f32 %v2562_v48, 0.0  ;;  %v2560_v33 = vadd.f32 %v8512_v58, %v2521_v31  ;;  %v2216_v15 = vadd.f32 %v2215_v8, %v8471_v47  ;;  %v2526_v12 = vadd.f32 %v8538_v51, %v2224_v1  ;;  %6721 = vmatprep.mubr.bf16.mxu0 %v7074_v0  ;;  %6754 = vmatpush3.bf16.msra.mxu1 %v7081_v17 }
 0x308   : > { %v6588_v59 = vpop.f32.mrf.mxu1  ;;  %6755 = vmatprep.subr.bf16.mxu1 %v7084_v43 }
 0x309   : > { %v2227_v34 = vadd.f32 %v6588_v59, %v8473_v56  ;;  %v2592_v27 = vmax.f32 %v2560_v33, 0.0  ;;  %v2524_v24 = vadd.f32 %v8547_v54, %v2216_v15  ;;  %v2616_v22 = vpack.c.bf16 %v2594_v36, %v2593_v32  ;;  %v2476_v54 = vpop.f32.mrf.mxu0 }
 0x30a   : > { %v2218_v63 = vpop.f32.mrf.mxu1  ;;  %v2565_v41 = vadd.f32 %v8512_v58, %v2526_v12 }
 0x30b   : > { %v2527_v47 = vadd.f32 %v8554_v21, %v2227_v34  ;;  %v2219_v57 = vadd.f32 %v2218_v63, %v8477_v13  ;;  %v2615_v23 = vpack.c.bf16 %v2592_v27, %v2591_v55  ;;  %6214 = vst [vmem:[#allocation2 + $0x50] sm:$0xff] %v2616_v22   ;;  %6756 = vmatpush3.bf16.msra.mxu1 %v7084_v43  ;;  %v7077_v13 = vld [vmem:[#allocation2 + $0x40] sm:$0xff]   ;;  %v6643_v6 = vpop.f32.mrf.mxu0  ;;  %v9174_v34 = vld [vmem:[#allocation65_spill] sm:$0xff] }
 0x30c   : > { %v6591_v51 = vpop.f32.mrf.mxu1  ;;  %v7076_v37 = vld [vmem:[#allocation2 + $0x38] sm:$0xff]   ;;  %v2563_v46 = vadd.f32 %v8512_v58, %v2524_v24  ;;  %v2597_v40 = vmax.f32 %v2565_v41, 0.0 }
 0x30d   : > { %v2566_v56 = vadd.f32 %v8512_v58, %v2527_v47  ;;  %v2525_v60 = vadd.f32 %v8563_v50, %v2219_v57  ;;  %v2240_v9 = vadd.f32 %v6591_v51, %v8481_v62  ;;  %6213 = vst [vmem:[#allocation2 + $0x48] sm:$0xff] %v2615_v23   ;;  %6677 = vmatprep.mubr.bf16.mxu1 %v2615_v23  ;;  %v2489_v42 = vpop.f32.mrf.mxu0 }
 0x30e   : > { %v2231_v21 = vpop.f32.mrf.mxu1  ;;  %6678 = vmatmul.mubr.bf16.gmra.mxu1 %v2616_v22  ;;  %6722 = vmatmul.mubr.bf16.gmra.mxu0 %v7076_v37  ;;  %v2595_v16 = vmax.f32 %v2563_v46, 0.0 }
 0x30f   : > { %v2598_v38 = vmax.f32 %v2566_v56, 0.0  ;;  %v2564_v10 = vadd.f32 %v8512_v58, %v2525_v60  ;;  %v2232_v35 = vadd.f32 %v2231_v21, %v8485_v20  ;;  %v2530_v50 = vadd.f32 %v8570_v19, %v2240_v9  ;;  %6725 = vmatprep.mubr.bf16.mxu0 %v7077_v13  ;;  %v7086_v9 = vld [vmem:[#allocation2 + $0x10] sm:$0xff]   ;;  %v7090_v21 = vld [vmem:[#allocation2 + $0x20] sm:$0xff]  }
 0x310   : > { %v6592_v62 = vpop.f32.mrf.mxu1  ;;  %v7128_v13 = vld [vmem:[%s7742_s19] sm:$0xff]  }
 0x311   : > { %v2243_v5 = vadd.f32 %v6592_v62, %v8489_v45  ;;  %v2596_v28 = vmax.f32 %v2564_v10, 0.0  ;;  %v2528_v25 = vadd.f32 %v2473_v52, %v2232_v35  ;;  %v2618_v3 = vpack.c.bf16 %v2598_v38, %v2597_v40  ;;  %v6644_v52 = vpop.f32.mrf.mxu0  ;;  %v7091_v38 = vld [vmem:[#allocation2 + $0x28] sm:$0xff]   ;;  %v7092_v10 = vld [vmem:[#allocation2 + $0x30] sm:$0xff]   ;;  %v7093_v35 = vld [vmem:[#allocation2 + $0x38] sm:$0xff]  }
 0x312   : > { %v2234_v17 = vpop.f32.mrf.mxu1  ;;  %v2569_v20 = vadd.f32 %v8512_v58, %v2530_v50  ;;  %v7080_v48 = vld [vmem:[#allocation2 + $0x50] sm:$0xff]   ;;  %v7094_v40 = vld [vmem:[#allocation2 + $0x40] sm:$0xff]   ;;  %v7105_v50 = vld [vmem:[#allocation14 + $0x38] sm:$0xff]  }
 0x313   : > { %v2531_v49 = vadd.f32 %v6640_v26, %v2243_v5  ;;  %v2235_v53 = vadd.f32 %v2234_v17, %v8493_v30  ;;  %v2617_v61 = vpack.c.bf16 %v2596_v28, %v2595_v16  ;;  %6216 = vst [vmem:[#allocation2 + $0x60] sm:$0xff] %v2618_v3   ;;  %v2567_v44 = vadd.f32 %v8512_v58, %v2528_v25  ;;  %v2492_v26 = vpop.f32.mrf.mxu0  ;;  %v7106_v5 = vld [vmem:[#allocation14 + $0x70] sm:$0xff]   ;;  %v7096_v28 = vld [vmem:[#allocation2 + $0x50] sm:$0xff]   ;;  %v7108_v17 = vld [vmem:[#allocation14 + $0x68] sm:$0xff]  }
 0x314   : > { %v6595_v39 = vpop.f32.mrf.mxu1  ;;  %v7079_v45 = vld [vmem:[#allocation2 + $0x48] sm:$0xff]   ;;  %v2601_v2 = vmax.f32 %v2569_v20, 0.0  ;;  %v7107_v16 = vld [vmem:[#allocation14 + $0x30] sm:$0xff]  }
 0x315   : > { %v2570_v19 = vadd.f32 %v8512_v58, %v2531_v49  ;;  %v2529_v11 = vadd.f32 %v2476_v54, %v2235_v53  ;;  %v2256_v29 = vadd.f32 %v6595_v39, %v8495_v14  ;;  %6215 = vst [vmem:[#allocation2 + $0x58] sm:$0xff] %v2617_v61   ;;  %6681 = vmatprep.mubr.bf16.mxu1 %v2617_v61  ;;  %v2599_v33 = vmax.f32 %v2567_v44, 0.0  ;;  %v7095_v62 = vld [vmem:[#allocation2 + $0x48] sm:$0xff]   ;;  %v7109_v49 = vld [vmem:[#allocation14 + $0x28] sm:$0xff]   ;;  %v7111_v39 = vld [vmem:[#allocation14 + $0x20] sm:$0xff]  }
 0x316   : > { %v2247_v43 = vpop.f32.mrf.mxu1  ;;  %6682 = vmatmul.mubr.bf16.gmra.mxu1 %v2618_v3  ;;  %6726 = vmatmul.mubr.bf16.gmra.mxu0 %v7079_v45  ;;  %v9175_v61 = vld [vmem:[#allocation32_spill] sm:$0xff]  ;;  %v7112_v44 = vld [vmem:[#allocation14 + $0x58] sm:$0xff]  }
 0x317   : > { %v2602_v31 = vmax.f32 %v2570_v19, 0.0  ;;  %v2568_v30 = vadd.f32 %v8512_v58, %v2529_v11  ;;  %v2534_v1 = vadd.f32 %v6643_v6, %v2256_v29  ;;  %v2248_v4 = vadd.f32 %v2247_v43, %v8499_v18  ;;  %6729 = vmatprep.mubr.bf16.mxu0 %v7080_v48  ;;  %v7104_v6 = vld [vmem:[#allocation14 + $0x78] sm:$0xff]   ;;  %v7129_v11 = vld [vmem:[%s9109_s28] sm:$0x3] }
 0x318   : > { %v6596_v8 = vpop.f32.mrf.mxu1  ;;  %6389 = vmatprep.subr.bf16.mxu1 %v7104_v6  ;;  %v667_v19 = vsub.s32 1, %v9175_v61  ;;  %v9176_v43 = vld [vmem:[#allocation34_spill] sm:$0xff] }
 0x319   : > { %v2532_v14 = vadd.f32 %v2489_v42, %v2248_v4  ;;  %v2259_v0 = vadd.f32 %v6596_v8, %v8501_v7  ;;  %v2600_v36 = vmax.f32 %v2568_v30, 0.0  ;;  %v2620_v32 = vpack.c.bf16 %v2602_v31, %v2601_v2  ;;  %v7110_v42 = vld [vmem:[#allocation14 + $0x60] sm:$0xff]   ;;  %v7113_v30 = vld [vmem:[#allocation14 + $0x18] sm:$0xff]   ;;  %v9177_v4 = vld [vmem:[#allocation33_spill] sm:$0xff] }
 0x31a   : > { %v2250_v15 = vpop.f32.mrf.mxu1  ;;  %v2573_v12 = vadd.f32 %v8512_v58, %v2534_v1  ;;  %v7083_v7 = vld [vmem:[#allocation2 + $0x60] sm:$0xff]   ;;  %v8614_v29 = vrot.slane %v7129_v11, %v667_v19  ;;  %v7114_v1 = vld [vmem:[#allocation15 + $0x38] sm:$0xff]  }
 0x31b   : > { %v2535_v59 = vadd.f32 %v6644_v52, %v2259_v0  ;;  %v2251_v27 = vadd.f32 %v2250_v15, %v9174_v34  ;;  %v2619_v18 = vpack.c.bf16 %v2600_v36, %v2599_v33  ;;  %6218 = vst [vmem:[#allocation2 + $0x70] sm:$0xff] %v2620_v32   ;;  %v2571_v55 = vadd.f32 %v8512_v58, %v2532_v14  ;;  %v7098_v3 = vld [vmem:[#allocation2 + $0x60] sm:$0xff]   ;;  %v7103_v8 = vld [vmem:[#allocation2 + $0x88] sm:$0xff]   ;;  %v7121_v34 = vld [vmem:[#allocation14 + $0x8] sm:$0xff]  }
 0x31c   : > { %v7082_v22 = vld [vmem:[#allocation2 + $0x58] sm:$0xff]   ;;  %v2605_v47 = vmax.f32 %v2573_v12, 0.0  ;;  %v888_v48 = vadd.f32 %v9176_v43, %v8614_v29  ;;  %v884_v52 = vadd.f32 %v9177_v4, %v8614_v29  ;;  %6789 = vmatprep.subr.bf16.mxu0 %v7114_v1  ;;  %v7115_v14 = vld [vmem:[#allocation15 + $0x30] sm:$0xff]   ;;  %v7119_v12 = vld [vmem:[#allocation15 + $0x20] sm:$0xff]  }
 0x31d   : > { %v2574_v24 = vadd.f32 %v8512_v58, %v2535_v59  ;;  %v2533_v63 = vadd.f32 %v2492_v26, %v2251_v27  ;;  %6217 = vst [vmem:[#allocation2 + $0x68] sm:$0xff] %v2619_v18   ;;  %6685 = vmatprep.mubr.bf16.mxu1 %v2619_v18  ;;  %v2603_v51 = vmax.f32 %v2571_v55, 0.0  ;;  %v7097_v25 = vld [vmem:[#allocation2 + $0x58] sm:$0xff]   ;;  %6790 = vmatpush3.bf16.msra.mxu0 %v7114_v1  ;;  %v7116_v36 = vld [vmem:[#allocation14 + $0x50] sm:$0xff]   ;;  %v7122_v27 = vld [vmem:[#allocation15 + $0x18] sm:$0xff]  }
 0x31e   : > { %6686 = vmatmul.mubr.bf16.gmra.mxu1 %v2620_v32  ;;  %6730 = vmatmul.mubr.bf16.gmra.mxu0 %v7082_v22  ;;  %v1043_v2 = vmax.f32 %v888_v48, 0.0  ;;  %v1041_v0 = vmax.f32 %v884_v52, 0.0  ;;  %v7117_v15 = vld [vmem:[#allocation14 + $0x10] sm:$0xff]   ;;  %v7118_v32 = vld [vmem:[#allocation15 + $0x28] sm:$0xff]   ;;  %v7124_v55 = vld [vmem:[#allocation14 + $0x40] sm:$0xff]  }
 0x31f   : > { %v2606_v57 = vmax.f32 %v2574_v24, 0.0  ;;  %v2572_v41 = vadd.f32 %v8512_v58, %v2533_v63  ;;  %6733 = vmatprep.mubr.bf16.mxu0 %v7083_v7  ;;  %v7088_v58 = vld [vmem:[#allocation2 + $0x18] sm:$0xff]   ;;  %6791 = vmatprep.subr.bf16.mxu0 %v7115_v14  ;;  %v7123_v26 = vld [vmem:[#allocation15 + $0x10] sm:$0xff]   ;;  %v7125_v24 = vld [vmem:[#allocation14] sm:$0xff]  }
 0x320   : > { %v4852_v33 = vpack.c.bf16 %v1043_v2, %v1041_v0  ;;  %v7120_v59 = vld [vmem:[#allocation14 + $0x48] sm:$0xff]   ;;  %v7127_v63 = vld [vmem:[#allocation15] sm:$0xff]   ;;  %v7131_v7 = vld [vmem:[%s7742_s19 + $0x10] sm:$0xff]  }
 0x321   : > { %v2604_v23 = vmax.f32 %v2572_v41, 0.0  ;;  %v2622_v56 = vpack.c.bf16 %v2606_v57, %v2605_v47  ;;  %6792 = vmatpush3.bf16.msra.mxu0 %v7115_v14  ;;  %v7126_v18 = vld [vmem:[#allocation15 + $0x8] sm:$0xff]   ;;  %v7132_v47 = vld [vmem:[%s7742_s19 + $0x18] sm:$0xff]   ;;  %v7133_v57 = vld [vmem:[%s7742_s19 + $0x20] sm:$0xff]  }
 0x322   : > { %v7087_v54 = vld [vmem:[#allocation2 + $0x70] sm:$0xff]   ;;  %6793 = vmatprep.subr.bf16.mxu0 %v7118_v32  ;;  %v7130_v22 = vld [vmem:[%s7742_s19 + $0x8] sm:$0xff]  }
 0x323   : > { %v2621_v60 = vpack.c.bf16 %v2604_v23, %v2603_v51  ;;  %6220 = vst [vmem:[#allocation2 + $0x80] sm:$0xff] %v2622_v56   ;;  %v7100_v20 = vld [vmem:[#allocation2 + $0x70] sm:$0xff]   ;;  %v7134_v41 = vld [vmem:[%s7742_s19 + $0x28] sm:$0xff]   ;;  %v7135_v51 = vld [vmem:[%s7742_s19 + $0x30] sm:$0xff]  }
 0x324   : > { %v7085_v37 = vld [vmem:[#allocation2 + $0x68] sm:$0xff]  }
 0x325   : > { %6219 = vst [vmem:[#allocation2 + $0x78] sm:$0xff] %v2621_v60   ;;  %6689 = vmatprep.mubr.bf16.mxu1 %v2621_v60  ;;  %v7099_v53 = vld [vmem:[#allocation2 + $0x68] sm:$0xff]   ;;  %6794 = vmatpush3.bf16.msra.mxu0 %v7118_v32  ;;  %v7138_v60 = vld [vmem:[%s7742_s19 + $0x48] sm:$0xff]  }
 0x326   : > { %6690 = vmatmul.mubr.bf16.gmra.mxu1 %v2622_v56  ;;  %6734 = vmatmul.mubr.bf16.gmra.mxu0 %v7085_v37  ;;  %v7136_v23 = vld [vmem:[%s7742_s19 + $0x38] sm:$0xff]   ;;  %v7137_v56 = vld [vmem:[%s7742_s19 + $0x40] sm:$0xff]  }
 0x327   : > { %6757 = vmatprep.mubr.bf16.mxu1 %v7086_v9  ;;  %6737 = vmatprep.mubr.bf16.mxu0 %v7087_v54  ;;  %v7139_v9 = vld [vmem:[%s7742_s19 + $0x50] sm:$0xff]   ;;  %v7140_v37 = vld [vmem:[%s7742_s19 + $0x58] sm:$0xff]   ;;  %v7141_v54 = vld [vmem:[%s7742_s19 + $0x60] sm:$0xff]  }
 0x328   : > { %6795 = vmatprep.subr.bf16.mxu0 %v7119_v12 }
 0x329   : > { %6796 = vmatpush3.bf16.msra.mxu0 %v7119_v12 }
 0x32a   : > { %v7102_v31 = vld [vmem:[#allocation2 + $0x80] sm:$0xff]   ;;  %6797 = vmatprep.subr.bf16.mxu0 %v7122_v27 }
 0x32c   : > { %v7089_v46 = vld [vmem:[#allocation2 + $0x78] sm:$0xff]  }
 0x32d   : > { %v7101_v45 = vld [vmem:[#allocation2 + $0x78] sm:$0xff]   ;;  %6798 = vmatpush3.bf16.msra.mxu0 %v7122_v27 }
 0x32e   : > { %6758 = vmatmul.mubr.bf16.vlgmr.msra.gmra.mxu1 %v7088_v58  ;;  %6738 = vmatmul.mubr.bf16.gmra.mxu0 %v7089_v46 }
 0x32f   : > { %6761 = vmatprep.mubr.bf16.mxu1 %v7090_v21  ;;  %6805 = vmatprep.mubr.bf16.mxu0 %v7128_v13  ;;  %v7142_v21 = vld [vmem:[%s7742_s19 + $0x68] sm:$0xff]   ;;  %v7143_v13 = vld [vmem:[%s7742_s19 + $0x70] sm:$0xff]  }
 0x330   : > { %6390 = vmatpush3.bf16.msra.mxu1 %v7105_v50  ;;  %6799 = vmatprep.subr.bf16.mxu0 %v7123_v26 }
 0x331   : > { %6391 = vmatprep.subr.bf16.mxu1 %v7106_v5  ;;  %6800 = vmatpush3.bf16.msra.mxu0 %v7123_v26 }
 0x332   : > { %6801 = vmatprep.subr.bf16.mxu0 %v7126_v18 }
 0x334   : > { %6392 = vmatpush3.bf16.msra.mxu1 %v7107_v16 }
 0x335   : > { %6393 = vmatprep.subr.bf16.mxu1 %v7108_v17  ;;  %6802 = vmatpush3.bf16.msra.mxu0 %v7126_v18 }
 0x336   : > { %6762 = vmatmul.mubr.bf16.gmra.mxu1 %v7091_v38  ;;  %6803 = vmatprep.subr.bf16.mxu0 %v7127_v63 }
 0x337   : > { %6765 = vmatprep.mubr.bf16.mxu1 %v7092_v10 }
 0x338   : > { %6394 = vmatpush3.bf16.msra.mxu1 %v7109_v49 }
 0x339   : > { %6395 = vmatprep.subr.bf16.mxu1 %v7110_v42  ;;  %6804 = vmatpush3.bf16.msra.mxu0 %v7127_v63 }
 0x33c   : > { %6396 = vmatpush3.bf16.msra.mxu1 %v7111_v39  ;;  %6806 = vmatmul.mubr.bf16.vlgmr.msra.gmra.mxu0 %v7130_v22 }
 0x33d   : > { %6397 = vmatprep.subr.bf16.mxu1 %v7112_v44  ;;  %6809 = vmatprep.mubr.bf16.mxu0 %v7131_v7 }
 0x33e   : > { %6766 = vmatmul.mubr.bf16.gmra.mxu1 %v7093_v35 }
 0x33f   : > { %6769 = vmatprep.mubr.bf16.mxu1 %v7094_v40 }
 0x340   : > { %6398 = vmatpush3.bf16.msra.mxu1 %v7113_v30 }
 0x341   : > { %6399 = vmatprep.subr.bf16.mxu1 %v7116_v36 }
 0x344   : > { %6400 = vmatpush3.bf16.msra.mxu1 %v7117_v15  ;;  %6810 = vmatmul.mubr.bf16.gmra.mxu0 %v7132_v47 }
 0x345   : > { %6401 = vmatprep.subr.bf16.mxu1 %v7120_v59  ;;  %6813 = vmatprep.mubr.bf16.mxu0 %v7133_v57 }
 0x346   : > { %6770 = vmatmul.mubr.bf16.gmra.mxu1 %v7095_v62  ;;  %v7144_v62 = vld [vmem:[%s7742_s19 + $0x78] sm:$0xff]  }
 0x347   : > { %6773 = vmatprep.mubr.bf16.mxu1 %v7096_v28 }
 0x348   : > { %6402 = vmatpush3.bf16.msra.mxu1 %v7121_v34 }
 0x349   : > { %6403 = vmatprep.subr.bf16.mxu1 %v7124_v55 }
 0x34c   : > { %6404 = vmatpush3.bf16.msra.mxu1 %v7125_v24  ;;  %6814 = vmatmul.mubr.bf16.gmra.mxu0 %v7134_v41 }
 0x34d   : > { %6817 = vmatprep.mubr.bf16.mxu0 %v7135_v51 }
 0x34e   : > { %6774 = vmatmul.mubr.bf16.gmra.mxu1 %v7097_v25 }
 0x34f   : > { %6777 = vmatprep.mubr.bf16.mxu1 %v7098_v3 }
 0x354   : > { %6818 = vmatmul.mubr.bf16.gmra.mxu0 %v7136_v23  ;;  %v8718_v23 = vld [vmem:[%s9182_s13] ss:$0 sm:$0xff] }
 0x355   : > { %6821 = vmatprep.mubr.bf16.mxu0 %v7137_v56 }
 0x356   : > { %6778 = vmatmul.mubr.bf16.gmra.mxu1 %v7099_v53 }
 0x357   : > { %6781 = vmatprep.mubr.bf16.mxu1 %v7100_v20 }
 0x35c   : > { %6822 = vmatmul.mubr.bf16.gmra.mxu0 %v7138_v60 }
 0x35d   : > { %6825 = vmatprep.mubr.bf16.mxu0 %v7139_v9 }
 0x35e   : > { %6782 = vmatmul.mubr.bf16.gmra.mxu1 %v7101_v45 }
 0x35f   : > { %6785 = vmatprep.mubr.bf16.mxu1 %v7102_v31 }
 0x364   : > { %6826 = vmatmul.mubr.bf16.gmra.mxu0 %v7140_v37 }
 0x365   : > { %6829 = vmatprep.mubr.bf16.mxu0 %v7141_v54 }
 0x366   : > { %6786 = vmatmul.mubr.bf16.gmra.mxu1 %v7103_v8 }
 0x367   : > { %5253 = vmatprep.mubr.bf16.mxu1 %v4852_v33 }
 0x36c   : > { %6830 = vmatmul.mubr.bf16.gmra.mxu0 %v7142_v21 }
 0x36d   : > { %6833 = vmatprep.mubr.bf16.mxu0 %v7143_v13 }
 0x374   : > { %6834 = vmatmul.mubr.bf16.gmra.mxu0 %v7144_v62 }
 0x3ae   : > { %v6663_v46 = vpop.f32.mrf.mxu1 }
 0x3b0   : > { %v3979_v58 = vpop.f32.mrf.mxu1 }
 0x3b2   : > { %v6664_v38 = vpop.f32.mrf.mxu1 }
 0x3b4   : > { %v3982_v10 = vpop.f32.mrf.mxu1 }
 0x3b6   : > { %v8634_v35 = vpop.f32.mrf.mxu1  ;;  %v6711_v6 = vpop.f32.mrf.mxu0 }
 0x3b7   : > { %v4293_v7 = vadd.f32 %v6711_v6, %v6663_v46 }
 0x3b8   : > { %v8636_v40 = vpop.f32.mrf.mxu1  ;;  %v4284_v50 = vpop.f32.mrf.mxu0 }
 0x3b9   : > { %v4285_v57 = vadd.f32 %v4284_v50, %v3979_v58  ;;  %v9183_v58 = vld [vmem:[#allocation36_spill] sm:$0xff] }
 0x3ba   : > { %v8639_v5 = vpop.f32.mrf.mxu1  ;;  %v6712_v28 = vpop.f32.mrf.mxu0  ;;  %v898_v6 = vadd.f32 %v9183_v58, %v8614_v29 }
 0x3bb   : > { %v4296_v60 = vadd.f32 %v6712_v28, %v6664_v38  ;;  %v9184_v38 = vld [vmem:[#allocation35_spill] sm:$0xff] }
 0x3bc   : > { %v8641_v16 = vpop.f32.mrf.mxu1  ;;  %v4287_v25 = vpop.f32.mrf.mxu0  ;;  %v894_v28 = vadd.f32 %v9184_v38, %v8614_v29 }
 0x3bd   : > { %v4288_v54 = vadd.f32 %v4287_v25, %v3982_v10 }
 0x3be   : > { %v8643_v17 = vpop.f32.mrf.mxu1  ;;  %v6715_v3 = vpop.f32.mrf.mxu0 }
 0x3bf   : > { %v4309_v62 = vadd.f32 %v6715_v3, %v8634_v35 }
 0x3c0   : > { %v8645_v49 = vpop.f32.mrf.mxu1  ;;  %v8647_v53 = vpop.f32.mrf.mxu0 }
 0x3c2   : > { %v8649_v42 = vpop.f32.mrf.mxu1  ;;  %v6716_v20 = vpop.f32.mrf.mxu0 }
 0x3c3   : > { %v4312_v35 = vadd.f32 %v6716_v20, %v8639_v5 }
 0x3c4   : > { %v8651_v39 = vpop.f32.mrf.mxu1  ;;  %v8655_v19 = vpop.f32.mrf.mxu0 }
 0x3c6   : > { %v8653_v61 = vpop.f32.mrf.mxu1  ;;  %v8661_v44 = vpop.f32.mrf.mxu0 }
 0x3c7   : > { %v4325_v5 = vadd.f32 %v8661_v44, %v8643_v17 }
 0x3c8   : > { %v8657_v11 = vpop.f32.mrf.mxu1  ;;  %v8667_v31 = vpop.f32.mrf.mxu0 }
 0x3ca   : > { %v8659_v45 = vpop.f32.mrf.mxu1  ;;  %v8673_v4 = vpop.f32.mrf.mxu0 }
 0x3cb   : > { %v4328_v17 = vadd.f32 %v8673_v4, %v8649_v42 }
 0x3cc   : > { %v8663_v43 = vpop.f32.mrf.mxu1  ;;  %v8679_v8 = vpop.f32.mrf.mxu0 }
 0x3ce   : > { %v8665_v48 = vpop.f32.mrf.mxu1  ;;  %v8685_v36 = vpop.f32.mrf.mxu0 }
 0x3cf   : > { %v4341_v42 = vadd.f32 %v8685_v36, %v8653_v61 }
 0x3d0   : > { %v8669_v30 = vpop.f32.mrf.mxu1  ;;  %v8691_v32 = vpop.f32.mrf.mxu0 }
 0x3d2   : > { %v8671_v1 = vpop.f32.mrf.mxu1  ;;  %v8697_v34 = vpop.f32.mrf.mxu0 }
 0x3d3   : > { %v4344_v61 = vadd.f32 %v8697_v34, %v8659_v45 }
 0x3d4   : > { %v8675_v52 = vpop.f32.mrf.mxu1  ;;  %v8703_v18 = vpop.f32.mrf.mxu0 }
 0x3d6   : > { %v8677_v2 = vpop.f32.mrf.mxu1  ;;  %v8709_v63 = vpop.f32.mrf.mxu0 }
 0x3d7   : > { %v4357_v34 = vadd.f32 %v8709_v63, %v8665_v48 }
 0x3d8   : > { %v8681_v14 = vpop.f32.mrf.mxu1  ;;  %v8713_v41 = vpop.f32.mrf.mxu0 }
 0x3da   : > { %v8683_v0 = vpop.f32.mrf.mxu1  ;;  %v8720_v21 = vpop.f32.mrf.mxu0 }
 0x3dc   : > { %v8687_v33 = vpop.f32.mrf.mxu1  ;;  %v8730_v25 = vpop.f32.mrf.mxu0 }
 0x3de   : > { %v8689_v15 = vpop.f32.mrf.mxu1 }
 0x3e0   : > { %v8693_v12 = vpop.f32.mrf.mxu1 }
 0x3e2   : > { %v8695_v59 = vpop.f32.mrf.mxu1 }
 0x3e4   : > { %v8699_v27 = vpop.f32.mrf.mxu1 }
 0x3e6   : > { %v8701_v26 = vpop.f32.mrf.mxu1 }
 0x3e7   : > { %9178 = vst [vmem:[#allocation65_spill] sm:$0xff] %v8701_v26 }
 0x3e8   : > { %v8705_v55 = vpop.f32.mrf.mxu1 }
 0x3e9   : > { %9179 = vst [vmem:[#allocation32_spill] sm:$0xff] %v8705_v55 }
 0x3ea   : > { %v8707_v24 = vpop.f32.mrf.mxu1 }
 0x3eb   : > { %9180 = vst [vmem:[#allocation34_spill] sm:$0xff] %v8707_v24 }
 0x3ec   : > { %v8711_v22 = vpop.f32.mrf.mxu1 }
 0x3ed   : > { %9181 = vst [vmem:[#allocation33_spill] sm:$0xff] %v8711_v22 }
 0x3ee   : > { %v6759_v47 = vpop.f32.mrf.mxu1 }
 0x3ef   : > { %v4735_v51 = vadd.f32 %v6759_v47, %v4293_v7 }
 0x3f0   : > { %v4606_v56 = vpop.f32.mrf.mxu1 }
 0x3f1   : > { %v4733_v9 = vadd.f32 %v4606_v56, %v4285_v57  ;;  %v4774_v13 = vadd.f32 %v8718_v23, %v4735_v51 }
 0x3f2   : > { %v6760_v37 = vpop.f32.mrf.mxu1 }
 0x3f3   : > { %v4736_v46 = vadd.f32 %v6760_v37, %v4296_v60  ;;  %v4772_v7 = vadd.f32 %v8718_v23, %v4733_v9  ;;  %v4806_v57 = vmax.f32 %v4774_v13, 0.0  ;;  %v1047_v37 = vmax.f32 %v898_v6, 0.0  ;;  %v9185_v13 = vld [vmem:[#allocation38_spill] sm:$0xff] }
 0x3f4   : > { %v4609_v50 = vpop.f32.mrf.mxu1  ;;  %v4304_v6 = vadd.f32 %v8655_v19, %v8641_v16 }
 0x3f5   : > { %v4775_v47 = vadd.f32 %v8718_v23, %v4736_v46  ;;  %v4734_v22 = vadd.f32 %v4609_v50, %v4288_v54  ;;  %v4804_v3 = vmax.f32 %v4772_v7, 0.0  ;;  %v1045_v46 = vmax.f32 %v894_v28, 0.0  ;;  %v8734_v50 = vpop.f32.mrf.mxu0  ;;  %v9186_v7 = vld [vmem:[#allocation37_spill] sm:$0xff] }
 0x3f6   : > { %v6763_v10 = vpop.f32.mrf.mxu1  ;;  %v4301_v28 = vadd.f32 %v8647_v53, %v8636_v40 }
 0x3f7   : > { %v4807_v51 = vmax.f32 %v4775_v47, 0.0  ;;  %v4773_v56 = vadd.f32 %v8718_v23, %v4734_v22  ;;  %v4739_v60 = vadd.f32 %v6763_v10, %v4309_v62  ;;  %v908_v47 = vadd.f32 %v9185_v13, %v8614_v29 }
 0x3f8   : > { %v4622_v58 = vpop.f32.mrf.mxu1  ;;  %v4853_v62 = vpack.c.bf16 %v1047_v37, %v1045_v46 }
 0x3f9   : > { %v4837_v9 = vpack.c.bf16 %v4807_v51, %v4806_v57  ;;  %v4805_v24 = vmax.f32 %v4773_v56, 0.0  ;;  %v4778_v55 = vadd.f32 %v8718_v23, %v4739_v60  ;;  %v8748_v57 = vpop.f32.mrf.mxu0  ;;  %v1051_v19 = vmax.f32 %v908_v47, 0.0 }
 0x3fa   : > { %v6764_v54 = vpop.f32.mrf.mxu1  ;;  %v4737_v44 = vadd.f32 %v4622_v58, %v4301_v28 }
 0x3fb   : > { %v4836_v38 = vpack.c.bf16 %v4805_v24, %v4804_v3  ;;  %v4740_v26 = vadd.f32 %v6764_v54, %v4312_v35  ;;  %v904_v24 = vadd.f32 %v9186_v7, %v8614_v29  ;;  %v4810_v51 = vmax.f32 %v4778_v55, 0.0  ;;  %v8754_v46 = vpop.f32.mrf.mxu0  ;;  %v9187_v54 = vld [vmem:[#allocation40_spill] sm:$0xff] }
 0x3fc   : > { %v4625_v22 = vpop.f32.mrf.mxu1  ;;  %v4776_v4 = vadd.f32 %v8718_v23, %v4737_v44 }
 0x3fd   : > { %v4779_v20 = vadd.f32 %v8718_v23, %v4740_v26  ;;  %5254 = vmatmul.mubr.bf16.vlgmr.msra.gmra.mxu1 %v4836_v38  ;;  %v4738_v60 = vadd.f32 %v4625_v22, %v4304_v6  ;;  %v1049_v35 = vmax.f32 %v904_v24, 0.0  ;;  %v918_v38 = vadd.f32 %v9187_v54, %v8614_v29  ;;  %v9188_v22 = vld [vmem:[#allocation39_spill] sm:$0xff]  ;;  %v9190_v54 = vld [vmem:[#allocation41_spill] sm:$0xff] }
 0x3fe   : > { %v6767_v10 = vpop.f32.mrf.mxu1  ;;  %5261 = vmatprep.mubr.bf16.mxu1 %v4853_v62  ;;  %v914_v62 = vadd.f32 %v9188_v22, %v8614_v29  ;;  %v4808_v36 = vmax.f32 %v4776_v4, 0.0 }
 0x3ff   : > { %v4811_v56 = vmax.f32 %v4779_v20, 0.0  ;;  %v4743_v16 = vadd.f32 %v6767_v10, %v4325_v5  ;;  %v4777_v40 = vadd.f32 %v8718_v23, %v4738_v60  ;;  %v4854_v47 = vpack.c.bf16 %v1051_v19, %v1049_v35  ;;  %v8766_v5 = vpop.f32.mrf.mxu0  ;;  %v9189_v35 = vld [vmem:[#allocation42_spill] sm:$0xff] }
 0x400   : > { %v4638_v37 = vpop.f32.mrf.mxu1  ;;  %v1055_v10 = vmax.f32 %v918_v38, 0.0  ;;  %v924_v38 = vadd.f32 %v9190_v54, %v8614_v29  ;;  %v4376_v54 = vadd.f32 %v8754_v46, %v8683_v0 }
 0x401   : > { %v8752_v26 = vpack.c.bf16 %v4811_v56, %v4810_v51  ;;  %v4782_v53 = vadd.f32 %v8718_v23, %v4743_v16  ;;  %v4809_v20 = vmax.f32 %v4777_v40, 0.0  ;;  %v8774_v16 = vpop.f32.mrf.mxu0  ;;  %v4320_v40 = vadd.f32 %v8679_v8, %v8651_v39 }
 0x402   : > { %v6768_v3 = vpop.f32.mrf.mxu1  ;;  %v4349_v39 = vadd.f32 %v8713_v41, %v8669_v30  ;;  %v4352_v41 = vadd.f32 %v8730_v25, %v8675_v52  ;;  %v9192_v52 = vld [vmem:[#allocation43_spill] sm:$0xff] }
 0x403   : > { %v4744_v55 = vadd.f32 %v6768_v3, %v4328_v17  ;;  %v4814_v7 = vmax.f32 %v4782_v53, 0.0  ;;  %v4838_v19 = vpack.c.bf16 %v4809_v20, %v4808_v36  ;;  %v928_v3 = vadd.f32 %v9189_v35, %v8614_v29  ;;  %v8792_v8 = vpop.f32.mrf.mxu0 }
 0x404   : > { %v4641_v13 = vpop.f32.mrf.mxu1  ;;  %v4360_v20 = vadd.f32 %v8720_v21, %v8671_v1  ;;  %v934_v25 = vadd.f32 %v9192_v52, %v8614_v29 }
 0x405   : > { %v4783_v58 = vadd.f32 %v8718_v23, %v4744_v55  ;;  %5262 = vmatmul.mubr.bf16.gmra.mxu1 %v4837_v9  ;;  %v1053_v9 = vmax.f32 %v914_v62, 0.0  ;;  %v1059_v63 = vmax.f32 %v928_v3, 0.0 }
 0x406   : > { %v6771_v6 = vpop.f32.mrf.mxu1  ;;  %5269 = vmatprep.mubr.bf16.mxu1 %v4854_v47  ;;  %v4317_v47 = vadd.f32 %v8667_v31, %v8645_v49 }
 0x407   : > { %v4815_v24 = vmax.f32 %v4783_v58, 0.0  ;;  %v4747_v28 = vadd.f32 %v6771_v6, %v4341_v42  ;;  %v4855_v45 = vpack.c.bf16 %v1055_v10, %v1053_v9  ;;  %v4742_v42 = vadd.f32 %v4641_v13, %v4320_v40 }
 0x408   : > { %v8768_v51 = vpop.f32.mrf.mxu1  ;;  %v4741_v62 = vadd.f32 %v4638_v37, %v4317_v47  ;;  %v1057_v13 = vmax.f32 %v924_v38, 0.0 }
 0x409   : > { %v8772_v56 = vpack.c.bf16 %v4815_v24, %v4814_v7  ;;  %v4786_v17 = vadd.f32 %v8718_v23, %v4747_v28  ;;  %v4781_v24 = vadd.f32 %v8718_v23, %v4742_v42  ;;  %v6736_v28 = vpop.f32.mrf.mxu0 }
 0x40a   : > { %v6772_v60 = vpop.f32.mrf.mxu1  ;;  %v4780_v1 = vadd.f32 %v8718_v23, %v4741_v62  ;;  %v4856_v9 = vpack.c.bf16 %v1059_v63, %v1057_v13 }
 0x40b   : > { %v4748_v44 = vadd.f32 %v6772_v60, %v4344_v61  ;;  %v4818_v58 = vmax.f32 %v4786_v17, 0.0  ;;  %v9191_v61 = vld [vmem:[#allocation44_spill] sm:$0xff]  ;;  %v4373_v60 = vadd.f32 %v8734_v50, %v8677_v2  ;;  %v4813_v35 = vmax.f32 %v4781_v24, 0.0  ;;  %v4383_v40 = vpop.f32.mrf.mxu0 }
 0x40c   : > { %v8781_v53 = vpop.f32.mrf.mxu1  ;;  %v938_v36 = vadd.f32 %v9191_v61, %v8614_v29  ;;  %v4389_v24 = vadd.f32 %v8774_v16, %v8689_v15 }
 0x40d   : > { %v4787_v55 = vadd.f32 %v8718_v23, %v4748_v44  ;;  %5270 = vmatmul.mubr.bf16.gmra.mxu1 %v4838_v19  ;;  %v4365_v44 = vadd.f32 %v8748_v57, %v8681_v14 }
 0x40e   : > { %v6775_v4 = vpop.f32.mrf.mxu1  ;;  %5277 = vmatprep.mubr.bf16.mxu1 %v4855_v45  ;;  %v1063_v50 = vmax.f32 %v938_v36, 0.0 }
 0x40f   : > { %v4819_v22 = vmax.f32 %v4787_v55, 0.0  ;;  %v4751_v48 = vadd.f32 %v6775_v4, %v4357_v34 }
 0x410   : > { %v4670_v6 = vpop.f32.mrf.mxu1 }
 0x411   : > { %v8796_v7 = vpack.c.bf16 %v4819_v22, %v4818_v58  ;;  %v4790_v49 = vadd.f32 %v8718_v23, %v4751_v48  ;;  %v4749_v31 = vadd.f32 %v4670_v6, %v4349_v39  ;;  %v1061_v39 = vmax.f32 %v934_v25, 0.0  ;;  %v6739_v48 = vpop.f32.mrf.mxu0  ;;  %v9193_v6 = vld [vmem:[#allocation46_spill] sm:$0xff] }
 0x412   : > { %v6776_v30 = vpop.f32.mrf.mxu1  ;;  %v4368_v58 = vadd.f32 %v8766_v5, %v8687_v33 }
 0x413   : > { %v4788_v10 = vadd.f32 %v8718_v23, %v4749_v31  ;;  %v4752_v37 = vadd.f32 %v6776_v30, %v4360_v20  ;;  %v4822_v45 = vmax.f32 %v4790_v49, 0.0  ;;  %v948_v20 = vadd.f32 %v9193_v6, %v8614_v29  ;;  %v9194_v30 = vld [vmem:[#allocation45_spill] sm:$0xff]  ;;  %v4396_v61 = vpop.f32.mrf.mxu0 }
 0x414   : > { %v4673_v21 = vpop.f32.mrf.mxu1  ;;  %v4336_v49 = vadd.f32 %v8703_v18, %v8663_v43  ;;  %v4857_v13 = vpack.c.bf16 %v1063_v50, %v1061_v39  ;;  %v9196_v50 = vld [vmem:[#allocation65_spill] sm:$0xff] }
 0x415   : > { %v4791_v19 = vadd.f32 %v8718_v23, %v4752_v37  ;;  %v4750_v17 = vadd.f32 %v4673_v21, %v4352_v41  ;;  %5278 = vmatmul.mubr.bf16.gmra.mxu1 %v8752_v26  ;;  %v4812_v26 = vmax.f32 %v4780_v1, 0.0  ;;  %v4820_v38 = vmax.f32 %v4788_v10, 0.0 }
 0x416   : > { %v6779_v3 = vpop.f32.mrf.mxu1  ;;  %5285 = vmatprep.mubr.bf16.mxu1 %v4856_v9  ;;  %v944_v41 = vadd.f32 %v9194_v30, %v8614_v29  ;;  %v4333_v10 = vadd.f32 %v8691_v32, %v8657_v11  ;;  %v4381_v37 = vadd.f32 %v8792_v8, %v8693_v12  ;;  %v4746_v43 = vadd.f32 %v8781_v53, %v4336_v49  ;;  %v9200_v30 = vld [vmem:[#allocation33_spill] sm:$0xff] }
 0x417   : > { %v4823_v34 = vmax.f32 %v4791_v19, 0.0  ;;  %v4789_v55 = vadd.f32 %v8718_v23, %v4750_v17  ;;  %v4755_v2 = vadd.f32 %v6779_v3, %v4373_v60  ;;  %v4840_v63 = vpack.c.bf16 %v4813_v35, %v4812_v26  ;;  %v6740_v35 = vpop.f32.mrf.mxu0 }
 0x418   : > { %v4686_v47 = vpop.f32.mrf.mxu1  ;;  %v1067_v21 = vmax.f32 %v948_v20, 0.0  ;;  %v4392_v9 = vadd.f32 %v6736_v28, %v8695_v59  ;;  %v4745_v60 = vadd.f32 %v8768_v51, %v4333_v10  ;;  %v1065_v17 = vmax.f32 %v944_v41, 0.0  ;;  %v9195_v28 = vld [vmem:[#allocation48_spill] sm:$0xff] }
 0x419   : > { %v8817_v42 = vpack.c.bf16 %v4823_v34, %v4822_v45  ;;  %v4821_v4 = vmax.f32 %v4789_v55, 0.0  ;;  %v4794_v14 = vadd.f32 %v8718_v23, %v4755_v2  ;;  %v4753_v57 = vadd.f32 %v4686_v47, %v4365_v44  ;;  %v9198_v47 = vld [vmem:[#allocation32_spill] sm:$0xff]  ;;  %v4399_v39 = vpop.f32.mrf.mxu0 }
 0x41a   : > { %v6780_v22 = vpop.f32.mrf.mxu1  ;;  %v4785_v52 = vadd.f32 %v8718_v23, %v4746_v43  ;;  %v4384_v44 = vadd.f32 %v4383_v40, %v8699_v27  ;;  %v958_v45 = vadd.f32 %v9195_v28, %v8614_v29  ;;  %v4784_v34 = vadd.f32 %v8718_v23, %v4745_v60  ;;  %v9197_v27 = vld [vmem:[#allocation47_spill] sm:$0xff]  ;;  %v9202_v60 = vld [vmem:[#allocation49_spill] sm:$0xff] }
 0x41b   : > { %v8822_v62 = vpack.c.bf16 %v4821_v4, %v4820_v38  ;;  %v4792_v0 = vadd.f32 %v8718_v23, %v4753_v57  ;;  %v4756_v46 = vadd.f32 %v6780_v22, %v4376_v54  ;;  %v4826_v36 = vmax.f32 %v4794_v14, 0.0 }
 0x41c   : > { %v4689_v31 = vpop.f32.mrf.mxu1  ;;  %v4858_v2 = vpack.c.bf16 %v1067_v21, %v1065_v17  ;;  %v4405_v54 = vadd.f32 %v6739_v48, %v9196_v50  ;;  %v954_v40 = vadd.f32 %v9197_v27, %v8614_v29  ;;  %v4397_v4 = vadd.f32 %v4396_v61, %v9198_v47 }
 0x41d   : > { %v4795_v33 = vadd.f32 %v8718_v23, %v4756_v46  ;;  %v4754_v5 = vadd.f32 %v4689_v31, %v4368_v58  ;;  %5286 = vmatmul.mubr.bf16.gmra.mxu1 %v4840_v63  ;;  %v4824_v19 = vmax.f32 %v4792_v0, 0.0  ;;  %v4817_v14 = vmax.f32 %v4785_v52, 0.0  ;;  %v9199_v46 = vld [vmem:[#allocation34_spill] sm:$0xff] }
 0x41e   : > { %v6783_v18 = vpop.f32.mrf.mxu1  ;;  %5293 = vmatprep.mubr.bf16.mxu1 %v4857_v13  ;;  %v1071_v48 = vmax.f32 %v958_v45, 0.0  ;;  %v4408_v6 = vadd.f32 %v6740_v35, %v9199_v46  ;;  %v4816_v20 = vmax.f32 %v4784_v34, 0.0  ;;  %v4400_v41 = vadd.f32 %v4399_v39, %v9200_v30  ;;  %v9204_v45 = vld [vmem:[#allocation51_spill] sm:$0xff] }
 0x41f   : > { %v4827_v15 = vmax.f32 %v4795_v33, 0.0  ;;  %v4793_v16 = vadd.f32 %v8718_v23, %v4754_v5  ;;  %v4759_v1 = vadd.f32 %v6783_v18, %v4389_v24  ;;  %v1069_v5 = vmax.f32 %v954_v40, 0.0 }
 0x420   : > { %v4702_v11 = vpop.f32.mrf.mxu1  ;;  %v974_v34 = vadd.f32 %v9204_v45, %v8614_v29 }
 0x421   : > { %v8842_v32 = vpack.c.bf16 %v4827_v15, %v4826_v36  ;;  %v4825_v12 = vmax.f32 %v4793_v16, 0.0  ;;  %v4798_v53 = vadd.f32 %v8718_v23, %v4759_v1  ;;  %v4757_v8 = vadd.f32 %v4702_v11, %v4381_v37  ;;  %v9201_v36 = vld [vmem:[#allocation50_spill] sm:$0xff] }
 0x422   : > { %v6784_v25 = vpop.f32.mrf.mxu1  ;;  %v4842_v37 = vpack.c.bf16 %v4817_v14, %v4816_v20  ;;  %v968_v15 = vadd.f32 %v9201_v36, %v8614_v29  ;;  %v4859_v1 = vpack.c.bf16 %v1071_v48, %v1069_v5  ;;  %v9208_v14 = vld [vmem:[#allocation55_spill] sm:$0xff] }
 0x423   : > { %v8847_v3 = vpack.c.bf16 %v4825_v12, %v4824_v19  ;;  %v4796_v59 = vadd.f32 %v8718_v23, %v4757_v8  ;;  %v4760_v51 = vadd.f32 %v6784_v25, %v4392_v9  ;;  %v4830_v58 = vmax.f32 %v4798_v53, 0.0 }
 0x424   : > { %v4705_v55 = vpop.f32.mrf.mxu1  ;;  %v964_v19 = vadd.f32 %v9202_v60, %v8614_v29  ;;  %v1075_v8 = vmax.f32 %v968_v15, 0.0  ;;  %v9216_v15 = vld [vmem:[#allocation63_spill] sm:$0xff] }
 0x425   : > { %v4799_v26 = vadd.f32 %v8718_v23, %v4760_v51  ;;  %v4758_v38 = vadd.f32 %v4705_v55, %v4384_v44  ;;  %5294 = vmatmul.mubr.bf16.gmra.mxu1 %v8772_v56  ;;  %v4828_v49 = vmax.f32 %v4796_v59, 0.0  ;;  %v9203_v59 = vld [vmem:[#allocation52_spill] sm:$0xff] }
 0x426   : > { %v6787_v57 = vpop.f32.mrf.mxu1  ;;  %5301 = vmatprep.mubr.bf16.mxu1 %v4858_v2  ;;  %v1073_v44 = vmax.f32 %v964_v19, 0.0  ;;  %v978_v51 = vadd.f32 %v9203_v59, %v8614_v29  ;;  %v1077_v2 = vmax.f32 %v974_v34, 0.0 }
 0x427   : > { %v4831_v22 = vmax.f32 %v4799_v26, 0.0  ;;  %v4797_v63 = vadd.f32 %v8718_v23, %v4758_v38  ;;  %v4763_v0 = vadd.f32 %v6787_v57, %v4405_v54  ;;  %v9206_v26 = vld [vmem:[#allocation53_spill] sm:$0xff]  ;;  %v994_v57 = vadd.f32 %v9208_v14, %v8614_v29 }
 0x428   : > { %v4718_v56 = vpop.f32.mrf.mxu1  ;;  %v4860_v28 = vpack.c.bf16 %v1075_v8, %v1073_v44  ;;  %v1079_v55 = vmax.f32 %v978_v51, 0.0  ;;  %v984_v38 = vadd.f32 %v9206_v26, %v8614_v29 }
 0x429   : > { %v8861_v31 = vpack.c.bf16 %v4831_v22, %v4830_v58  ;;  %v4829_v13 = vmax.f32 %v4797_v63, 0.0  ;;  %v4802_v24 = vadd.f32 %v8718_v23, %v4763_v0  ;;  %v4761_v33 = vadd.f32 %v4718_v56, %v4397_v4  ;;  %v9210_v0 = vld [vmem:[#allocation57_spill] sm:$0xff]  ;;  %v9212_v56 = vld [vmem:[#allocation59_spill] sm:$0xff] }
 0x42a   : > { %v6788_v10 = vpop.f32.mrf.mxu1  ;;  %v4861_v54 = vpack.c.bf16 %v1079_v55, %v1077_v2  ;;  %v1081_v40 = vmax.f32 %v984_v38, 0.0  ;;  %v1085_v58 = vmax.f32 %v994_v57, 0.0  ;;  %v1004_v48 = vadd.f32 %v9210_v0, %v8614_v29 }
 0x42b   : > { %v4848_v43 = vpack.c.bf16 %v4829_v13, %v4828_v49  ;;  %v4800_v18 = vadd.f32 %v8718_v23, %v4761_v33  ;;  %v4764_v61 = vadd.f32 %v6788_v10, %v4408_v6  ;;  %v4834_v11 = vmax.f32 %v4802_v24, 0.0 }
 0x42c   : > { %v4721_v16 = vpop.f32.mrf.mxu1  ;;  %v1089_v6 = vmax.f32 %v1004_v48, 0.0  ;;  %v1014_v13 = vadd.f32 %v9212_v56, %v8614_v29 }
 0x42d   : > { %v4803_v21 = vadd.f32 %v8718_v23, %v4764_v61  ;;  %v4762_v9 = vadd.f32 %v4721_v16, %v4400_v41  ;;  %5302 = vmatmul.mubr.bf16.gmra.mxu1 %v4842_v37  ;;  %v4832_v17 = vmax.f32 %v4800_v18, 0.0  ;;  %v9214_v41 = vld [vmem:[#allocation61_spill] sm:$0xff]  ;;  %v9215_v61 = vld [vmem:[#allocation64_spill] sm:$0xff]  ;;  %v1034_v16 = vadd.f32 %v9216_v15, %v8614_v29 }
 0x42e   : > { %5309 = vmatprep.mubr.bf16.mxu1 %v4859_v1  ;;  %v1093_v33 = vmax.f32 %v1014_v13, 0.0  ;;  %v1024_v10 = vadd.f32 %v9214_v41, %v8614_v29 }
 0x42f   : > { %v4835_v12 = vmax.f32 %v4803_v21, 0.0  ;;  %v4801_v53 = vadd.f32 %v8718_v23, %v4762_v9  ;;  %v9205_v23 = vld [vmem:[#allocation54_spill] sm:$0xff]  ;;  %v1101_v21 = vmax.f32 %v1034_v16, 0.0  ;;  %v6807_v9 = vpop.f32.mrf.mxu0 }
 0x430   : > { %v988_v50 = vadd.f32 %v9205_v23, %v8614_v29  ;;  %v1097_v18 = vmax.f32 %v1024_v10, 0.0 }
 0x431   : > { %v4851_v52 = vpack.c.bf16 %v4835_v12, %v4834_v11  ;;  %v4833_v25 = vmax.f32 %v4801_v53, 0.0  ;;  %v4998_v60 = vpop.f32.mrf.mxu0 }
 0x432   : > { %v1083_v27 = vmax.f32 %v988_v50, 0.0 }
 0x433   : > { %v4850_v35 = vpack.c.bf16 %v4833_v25, %v4832_v17  ;;  %v6808_v12 = vpop.f32.mrf.mxu0 }
 0x434   : > { %v4862_v4 = vpack.c.bf16 %v1083_v27, %v1081_v40 }
 0x435   : > { %5310 = vmatmul.mubr.bf16.gmra.mxu1 %v8796_v7  ;;  %v9207_v7 = vld [vmem:[#allocation56_spill] sm:$0xff]  ;;  %v5001_v25 = vpop.f32.mrf.mxu0 }
 0x436   : > { %5317 = vmatprep.mubr.bf16.mxu1 %v4860_v28  ;;  %v998_v47 = vadd.f32 %v9207_v7, %v8614_v29 }
 0x437   : > { %v6811_v45 = vpop.f32.mrf.mxu0 }
 0x438   : > { %v1087_v39 = vmax.f32 %v998_v47, 0.0 }
 0x439   : > { %v5014_v26 = vpop.f32.mrf.mxu0 }
 0x43a   : > { %v4863_v63 = vpack.c.bf16 %v1087_v39, %v1085_v58 }
 0x43b   : > { %v6812_v14 = vpop.f32.mrf.mxu0 }
 0x43d   : > { %5318 = vmatmul.mubr.bf16.gmra.mxu1 %v8822_v62  ;;  %v9209_v62 = vld [vmem:[#allocation58_spill] sm:$0xff]  ;;  %v5017_v0 = vpop.f32.mrf.mxu0 }
 0x43e   : > { %5325 = vmatprep.mubr.bf16.mxu1 %v4861_v54  ;;  %v1008_v22 = vadd.f32 %v9209_v62, %v8614_v29 }
 0x43f   : > { %v6815_v56 = vpop.f32.mrf.mxu0 }
 0x440   : > { %v1091_v46 = vmax.f32 %v1008_v22, 0.0 }
 0x441   : > { %v5030_v41 = vpop.f32.mrf.mxu0 }
 0x442   : > { %v4864_v49 = vpack.c.bf16 %v1091_v46, %v1089_v6 }
 0x443   : > { %v6816_v15 = vpop.f32.mrf.mxu0 }
 0x445   : > { %5326 = vmatmul.mubr.bf16.gmra.mxu1 %v8817_v42  ;;  %v9211_v42 = vld [vmem:[#allocation60_spill] sm:$0xff] }
 0x446   : > { %5333 = vmatprep.mubr.bf16.mxu1 %v4862_v4  ;;  %v1018_v20 = vadd.f32 %v9211_v42, %v8614_v29 }
 0x448   : > { %v1095_v24 = vmax.f32 %v1018_v20, 0.0 }
 0x44a   : > { %v4865_v30 = vpack.c.bf16 %v1095_v24, %v1093_v33 }
 0x44d   : > { %5334 = vmatmul.mubr.bf16.gmra.mxu1 %v8847_v3  ;;  %v9213_v3 = vld [vmem:[#allocation62_spill] sm:$0xff] }
 0x44e   : > { %5341 = vmatprep.mubr.bf16.mxu1 %v4863_v63  ;;  %v1028_v5 = vadd.f32 %v9213_v3, %v8614_v29 }
 0x450   : > { %v1099_v37 = vmax.f32 %v1028_v5, 0.0 }
 0x452   : > { %v4866_v36 = vpack.c.bf16 %v1099_v37, %v1097_v18 }
 0x455   : > { %5342 = vmatmul.mubr.bf16.gmra.mxu1 %v8842_v32  ;;  %v1038_v32 = vadd.f32 %v9215_v61, %v8614_v29 }
 0x456   : > { %5349 = vmatprep.mubr.bf16.mxu1 %v4864_v49 }
 0x457   : > { %v1103_v1 = vmax.f32 %v1038_v32, 0.0 }
 0x45d   : > { %5350 = vmatmul.mubr.bf16.gmra.mxu1 %v4848_v43  ;;  %v4867_v43 = vpack.c.bf16 %v1103_v1, %v1101_v21 }
 0x45e   : > { %5357 = vmatprep.mubr.bf16.mxu1 %v4865_v30 }
 0x465   : > { %5358 = vmatmul.mubr.bf16.gmra.mxu1 %v8861_v31  ;;  %v8909_v31 = vld [vmem:[%s9217_s6] ss:$0 sm:$0xff] }
 0x466   : > { %5365 = vmatprep.mubr.bf16.mxu1 %v4866_v36 }
 0x46d   : > { %5366 = vmatmul.mubr.bf16.gmra.mxu1 %v4850_v35 }
 0x46e   : > { %5373 = vmatprep.mubr.bf16.mxu1 %v4867_v43 }
 0x475   : > { %5374 = vmatmul.mubr.bf16.gmra.mxu1 %v4851_v52 }
 0x4bd   : > { %v6405_v19 = vpop.f32.mrf.mxu1 }
 0x4bf   : > { %v6406_v11 = vpop.f32.mrf.mxu1 }
 0x4c0   : > { %v6407_v53 = vadd.f32 %v6406_v11, %v6405_v19  ;;  %v5033_v19 = vpop.f32.mrf.mxu0 }
 0x4c1   : > { %v6408_v29 = vpop.f32.mrf.mxu1 }
 0x4c2   : > { %v5256_v8 = vadd.f32 %v6407_v53, %v4998_v60 }
 0x4c3   : > { %v6409_v17 = vpop.f32.mrf.mxu1 }
 0x4c4   : > { %v5389_v44 = vadd.f32 %v8909_v31, %v5256_v8  ;;  %v6410_v35 = vadd.f32 %v6409_v17, %v6408_v29 }
 0x4c5   : > { %v6411_v52 = vpop.f32.mrf.mxu1 }
 0x4c6   : > { %v5421_v59 = vmax.f32 %v5389_v44, 0.0  ;;  %v5259_v51 = vadd.f32 %v6410_v35, %v5001_v25  ;;  %v6819_v25 = vpop.f32.mrf.mxu0 }
 0x4c7   : > { %v6412_v28 = vpop.f32.mrf.mxu1 }
 0x4c8   : > { %5453 = vst [vmem:[%s8913_s20] sm:$0xff] %v5421_v59  ;;  %v5390_v34 = vadd.f32 %v8909_v31, %v5259_v51  ;;  %v6413_v55 = vadd.f32 %v6412_v28, %v6411_v52 }
 0x4c9   : > { %v6414_v2 = vpop.f32.mrf.mxu1 }
 0x4ca   : > { %v5422_v23 = vmax.f32 %v5390_v34, 0.0  ;;  %v5264_v50 = vadd.f32 %v6807_v9, %v6413_v55 }
 0x4cb   : > { %v6415_v54 = vpop.f32.mrf.mxu1 }
 0x4cc   : > { %5454 = vst [vmem:[%s8913_s20 + $0x8] sm:$0xff] %v5422_v23  ;;  %v5391_v38 = vadd.f32 %v8909_v31, %v5264_v50  ;;  %v6416_v27 = vadd.f32 %v6415_v54, %v6414_v2 }
 0x4cd   : > { %v6417_v40 = vpop.f32.mrf.mxu1 }
 0x4ce   : > { %v5423_v7 = vmax.f32 %v5391_v38, 0.0  ;;  %v5267_v47 = vadd.f32 %v6808_v12, %v6416_v27 }
 0x4cf   : > { %v6418_v4 = vpop.f32.mrf.mxu1 }
 0x4d0   : > { %5455 = vst [vmem:[%s8913_s20 + $0x10] sm:$0xff] %v5423_v7  ;;  %v5392_v57 = vadd.f32 %v8909_v31, %v5267_v47  ;;  %v6419_v39 = vadd.f32 %v6418_v4, %v6417_v40 }
 0x4d1   : > { %v6420_v58 = vpop.f32.mrf.mxu1 }
 0x4d2   : > { %v5424_v62 = vmax.f32 %v5392_v57, 0.0  ;;  %v5272_v22 = vadd.f32 %v6419_v39, %v5014_v26 }
 0x4d3   : > { %v6421_v63 = vpop.f32.mrf.mxu1 }
 0x4d4   : > { %5456 = vst [vmem:[%s8913_s20 + $0x18] sm:$0xff] %v5424_v62  ;;  %v5393_v48 = vadd.f32 %v8909_v31, %v5272_v22  ;;  %v6422_v46 = vadd.f32 %v6421_v63, %v6420_v58 }
 0x4d5   : > { %v6423_v6 = vpop.f32.mrf.mxu1 }
 0x4d6   : > { %v5425_v42 = vmax.f32 %v5393_v48, 0.0  ;;  %v5275_v20 = vadd.f32 %v6422_v46, %v5017_v0 }
 0x4d7   : > { %v6424_v49 = vpop.f32.mrf.mxu1 }
 0x4d8   : > { %5457 = vst [vmem:[%s8913_s20 + $0x20] sm:$0xff] %v5425_v42  ;;  %v5394_v13 = vadd.f32 %v8909_v31, %v5275_v20  ;;  %v6425_v24 = vadd.f32 %v6424_v49, %v6423_v6 }
 0x4d9   : > { %v6426_v33 = vpop.f32.mrf.mxu1 }
 0x4da   : > { %v5426_v3 = vmax.f32 %v5394_v13, 0.0  ;;  %v5280_v5 = vadd.f32 %v6811_v45, %v6425_v24  ;;  %v5046_v45 = vpop.f32.mrf.mxu0 }
 0x4db   : > { %v6427_v30 = vpop.f32.mrf.mxu1 }
 0x4dc   : > { %5458 = vst [vmem:[%s8913_s20 + $0x28] sm:$0xff] %v5426_v3  ;;  %v5395_v10 = vadd.f32 %v8909_v31, %v5280_v5  ;;  %v6428_v37 = vadd.f32 %v6427_v30, %v6426_v33  ;;  %v6820_v26 = vpop.f32.mrf.mxu0 }
 0x4dd   : > { %v6429_v18 = vpop.f32.mrf.mxu1 }
 0x4de   : > { %v5427_v61 = vmax.f32 %v5395_v10, 0.0  ;;  %v5283_v32 = vadd.f32 %v6812_v14, %v6428_v37  ;;  %v5049_v14 = vpop.f32.mrf.mxu0 }
 0x4df   : > { %v6430_v36 = vpop.f32.mrf.mxu1 }
 0x4e0   : > { %5459 = vst [vmem:[%s8913_s20 + $0x30] sm:$0xff] %v5427_v61  ;;  %v5396_v16 = vadd.f32 %v8909_v31, %v5283_v32  ;;  %v6431_v1 = vadd.f32 %v6430_v36, %v6429_v18  ;;  %v6823_v0 = vpop.f32.mrf.mxu0 }
 0x4e1   : > { %v6432_v21 = vpop.f32.mrf.mxu1 }
 0x4e2   : > { %v5428_v43 = vmax.f32 %v5396_v16, 0.0  ;;  %v5288_v9 = vadd.f32 %v6431_v1, %v5030_v41 }
 0x4e3   : > { %v6433_v60 = vpop.f32.mrf.mxu1 }
 0x4e4   : > { %5460 = vst [vmem:[%s8913_s20 + $0x38] sm:$0xff] %v5428_v43  ;;  %v5397_v11 = vadd.f32 %v8909_v31, %v5288_v9  ;;  %v6434_v12 = vadd.f32 %v6433_v60, %v6432_v21 }
 0x4e5   : > { %v6435_v53 = vpop.f32.mrf.mxu1 }
 0x4e6   : > { %v5429_v29 = vmax.f32 %v5397_v11, 0.0  ;;  %v5291_v8 = vadd.f32 %v6434_v12, %v5033_v19 }
 0x4e7   : > { %v6436_v17 = vpop.f32.mrf.mxu1 }
 0x4e8   : > { %5461 = vst [vmem:[%s8913_s20 + $0x40] sm:$0xff] %v5429_v29  ;;  %v5398_v44 = vadd.f32 %v8909_v31, %v5291_v8  ;;  %v6437_v35 = vadd.f32 %v6436_v17, %v6435_v53 }
 0x4e9   : > { %v6438_v52 = vpop.f32.mrf.mxu1 }
 0x4ea   : > { %v5430_v59 = vmax.f32 %v5398_v44, 0.0  ;;  %v5296_v51 = vadd.f32 %v6815_v56, %v6437_v35  ;;  %v5062_v56 = vpop.f32.mrf.mxu0 }
 0x4eb   : > { %v6439_v28 = vpop.f32.mrf.mxu1 }
 0x4ec   : > { %5462 = vst [vmem:[%s8913_s20 + $0x48] sm:$0xff] %v5430_v59  ;;  %v5399_v34 = vadd.f32 %v8909_v31, %v5296_v51  ;;  %v6440_v55 = vadd.f32 %v6439_v28, %v6438_v52  ;;  %v6824_v41 = vpop.f32.mrf.mxu0 }
 0x4ed   : > { %v6441_v2 = vpop.f32.mrf.mxu1 }
 0x4ee   : > { %v5431_v23 = vmax.f32 %v5399_v34, 0.0  ;;  %v5299_v50 = vadd.f32 %v6816_v15, %v6440_v55  ;;  %v5065_v15 = vpop.f32.mrf.mxu0 }
 0x4ef   : > { %v6442_v54 = vpop.f32.mrf.mxu1 }
 0x4f0   : > { %5463 = vst [vmem:[%s8913_s20 + $0x50] sm:$0xff] %v5431_v23  ;;  %v5400_v38 = vadd.f32 %v8909_v31, %v5299_v50  ;;  %v6443_v27 = vadd.f32 %v6442_v54, %v6441_v2  ;;  %v6827_v19 = vpop.f32.mrf.mxu0 }
 0x4f1   : > { %v6444_v40 = vpop.f32.mrf.mxu1 }
 0x4f2   : > { %v5432_v7 = vmax.f32 %v5400_v38, 0.0  ;;  %v5304_v47 = vadd.f32 %v6443_v27, %v5046_v45 }
 0x4f3   : > { %v6445_v4 = vpop.f32.mrf.mxu1 }
 0x4f4   : > { %5464 = vst [vmem:[%s8913_s20 + $0x58] sm:$0xff] %v5432_v7  ;;  %v5401_v57 = vadd.f32 %v8909_v31, %v5304_v47  ;;  %v6446_v39 = vadd.f32 %v6445_v4, %v6444_v40 }
 0x4f5   : > { %v6447_v58 = vpop.f32.mrf.mxu1 }
 0x4f6   : > { %v5433_v62 = vmax.f32 %v5401_v57, 0.0  ;;  %v5307_v22 = vadd.f32 %v6446_v39, %v5049_v14 }
 0x4f7   : > { %v6448_v63 = vpop.f32.mrf.mxu1 }
 0x4f8   : > { %5465 = vst [vmem:[%s8913_s20 + $0x60] sm:$0xff] %v5433_v62  ;;  %v5402_v48 = vadd.f32 %v8909_v31, %v5307_v22  ;;  %v6449_v46 = vadd.f32 %v6448_v63, %v6447_v58 }
 0x4f9   : > { %v6450_v6 = vpop.f32.mrf.mxu1 }
 0x4fa   : > { %v5434_v42 = vmax.f32 %v5402_v48, 0.0  ;;  %v5312_v20 = vadd.f32 %v6819_v25, %v6449_v46  ;;  %v5078_v25 = vpop.f32.mrf.mxu0 }
 0x4fb   : > { %v6451_v49 = vpop.f32.mrf.mxu1 }
 0x4fc   : > { %5466 = vst [vmem:[%s8913_s20 + $0x68] sm:$0xff] %v5434_v42  ;;  %v5403_v13 = vadd.f32 %v8909_v31, %v5312_v20  ;;  %v6452_v24 = vadd.f32 %v6451_v49, %v6450_v6  ;;  %v6828_v45 = vpop.f32.mrf.mxu0 }
 0x4fd   : > { %v6453_v33 = vpop.f32.mrf.mxu1 }
 0x4fe   : > { %v5435_v3 = vmax.f32 %v5403_v13, 0.0  ;;  %v5315_v5 = vadd.f32 %v6820_v26, %v6452_v24  ;;  %v5081_v26 = vpop.f32.mrf.mxu0 }
 0x4ff   : > { %v6454_v30 = vpop.f32.mrf.mxu1 }
 0x500   : > { %5467 = vst [vmem:[%s8913_s20 + $0x70] sm:$0xff] %v5435_v3  ;;  %v5404_v10 = vadd.f32 %v8909_v31, %v5315_v5  ;;  %v6455_v37 = vadd.f32 %v6454_v30, %v6453_v33  ;;  %v6831_v14 = vpop.f32.mrf.mxu0 }
 0x501   : > { %v6456_v18 = vpop.f32.mrf.mxu1 }
 0x502   : > { %v5436_v61 = vmax.f32 %v5404_v10, 0.0  ;;  %v5320_v32 = vadd.f32 %v6455_v37, %v5062_v56 }
 0x503   : > { %v6457_v36 = vpop.f32.mrf.mxu1 }
 0x504   : > { %5468 = vst [vmem:[%s8913_s20 + $0x78] sm:$0xff] %v5436_v61  ;;  %v5405_v16 = vadd.f32 %v8909_v31, %v5320_v32  ;;  %v6458_v1 = vadd.f32 %v6457_v36, %v6456_v18 }
 0x505   : > { %v6459_v21 = vpop.f32.mrf.mxu1 }
 0x506   : > { %v5437_v43 = vmax.f32 %v5405_v16, 0.0  ;;  %v5323_v9 = vadd.f32 %v6458_v1, %v5065_v15 }
 0x507   : > { %v6460_v60 = vpop.f32.mrf.mxu1 }
 0x508   : > { %5469 = vst [vmem:[%s8913_s20 + $0x80] sm:$0xff] %v5437_v43  ;;  %v5406_v11 = vadd.f32 %v8909_v31, %v5323_v9  ;;  %v6461_v12 = vadd.f32 %v6460_v60, %v6459_v21 }
 0x509   : > { %v6462_v53 = vpop.f32.mrf.mxu1 }
 0x50a   : > { %v5438_v29 = vmax.f32 %v5406_v11, 0.0  ;;  %v5328_v8 = vadd.f32 %v6823_v0, %v6461_v12  ;;  %v5094_v0 = vpop.f32.mrf.mxu0 }
 0x50b   : > { %v6463_v17 = vpop.f32.mrf.mxu1 }
 0x50c   : > { %5470 = vst [vmem:[%s8913_s20 + $0x88] sm:$0xff] %v5438_v29  ;;  %v5407_v44 = vadd.f32 %v8909_v31, %v5328_v8  ;;  %v6464_v35 = vadd.f32 %v6463_v17, %v6462_v53  ;;  %v6832_v56 = vpop.f32.mrf.mxu0 }
 0x50d   : > { %v6465_v52 = vpop.f32.mrf.mxu1 }
 0x50e   : > { %v5439_v59 = vmax.f32 %v5407_v44, 0.0  ;;  %v5331_v51 = vadd.f32 %v6824_v41, %v6464_v35  ;;  %v5097_v41 = vpop.f32.mrf.mxu0 }
 0x50f   : > { %v6466_v28 = vpop.f32.mrf.mxu1 }
 0x510   : > { %5471 = vst [vmem:[%s8913_s20 + $0x90] sm:$0xff] %v5439_v59  ;;  %v5408_v34 = vadd.f32 %v8909_v31, %v5331_v51  ;;  %v6467_v55 = vadd.f32 %v6466_v28, %v6465_v52  ;;  %v6835_v15 = vpop.f32.mrf.mxu0 }
 0x511   : > { %v6468_v2 = vpop.f32.mrf.mxu1 }
 0x512   : > { %v5440_v23 = vmax.f32 %v5408_v34, 0.0  ;;  %v5336_v50 = vadd.f32 %v6467_v55, %v5078_v25 }
 0x513   : > { %v6469_v54 = vpop.f32.mrf.mxu1 }
 0x514   : > { %5472 = vst [vmem:[%s8913_s20 + $0x98] sm:$0xff] %v5440_v23  ;;  %v5409_v38 = vadd.f32 %v8909_v31, %v5336_v50  ;;  %v6470_v27 = vadd.f32 %v6469_v54, %v6468_v2 }
 0x515   : > { %v6471_v40 = vpop.f32.mrf.mxu1 }
 0x516   : > { %v5441_v7 = vmax.f32 %v5409_v38, 0.0  ;;  %v5339_v47 = vadd.f32 %v6470_v27, %v5081_v26 }
 0x517   : > { %v6472_v4 = vpop.f32.mrf.mxu1 }
 0x518   : > { %5473 = vst [vmem:[%s8913_s20 + $0xa0] sm:$0xff] %v5441_v7  ;;  %v5410_v57 = vadd.f32 %v8909_v31, %v5339_v47  ;;  %v6473_v39 = vadd.f32 %v6472_v4, %v6471_v40 }
 0x519   : > { %v6474_v58 = vpop.f32.mrf.mxu1 }
 0x51a   : > { %v5442_v62 = vmax.f32 %v5410_v57, 0.0  ;;  %v5344_v22 = vadd.f32 %v6827_v19, %v6473_v39  ;;  %v5110_v19 = vpop.f32.mrf.mxu0 }
 0x51b   : > { %v6475_v63 = vpop.f32.mrf.mxu1 }
 0x51c   : > { %5474 = vst [vmem:[%s8913_s20 + $0xa8] sm:$0xff] %v5442_v62  ;;  %v5411_v48 = vadd.f32 %v8909_v31, %v5344_v22  ;;  %v6476_v46 = vadd.f32 %v6475_v63, %v6474_v58  ;;  %v6836_v25 = vpop.f32.mrf.mxu0 }
 0x51d   : > { %v6477_v6 = vpop.f32.mrf.mxu1 }
 0x51e   : > { %v5443_v42 = vmax.f32 %v5411_v48, 0.0  ;;  %v5347_v20 = vadd.f32 %v6828_v45, %v6476_v46  ;;  %v5113_v45 = vpop.f32.mrf.mxu0 }
 0x51f   : > { %v6478_v49 = vpop.f32.mrf.mxu1 }
 0x520   : > { %5475 = vst [vmem:[%s8913_s20 + $0xb0] sm:$0xff] %v5443_v42  ;;  %v5412_v13 = vadd.f32 %v8909_v31, %v5347_v20  ;;  %v6479_v24 = vadd.f32 %v6478_v49, %v6477_v6 }
 0x521   : > { %v6480_v33 = vpop.f32.mrf.mxu1 }
 0x522   : > { %v5444_v3 = vmax.f32 %v5412_v13, 0.0  ;;  %v5352_v5 = vadd.f32 %v6479_v24, %v5094_v0 }
 0x523   : > { %v6481_v30 = vpop.f32.mrf.mxu1 }
 0x524   : > { %5476 = vst [vmem:[%s8913_s20 + $0xb8] sm:$0xff] %v5444_v3  ;;  %v5413_v10 = vadd.f32 %v8909_v31, %v5352_v5  ;;  %v6482_v37 = vadd.f32 %v6481_v30, %v6480_v33 }
 0x525   : > { %v6483_v18 = vpop.f32.mrf.mxu1 }
 0x526   : > { %v5445_v61 = vmax.f32 %v5413_v10, 0.0  ;;  %v5355_v32 = vadd.f32 %v6482_v37, %v5097_v41 }
 0x527   : > { %v6484_v36 = vpop.f32.mrf.mxu1 }
 0x528   : > { %5477 = vst [vmem:[%s8913_s20 + $0xc0] sm:$0xff] %v5445_v61  ;;  %v5414_v16 = vadd.f32 %v8909_v31, %v5355_v32  ;;  %v6485_v1 = vadd.f32 %v6484_v36, %v6483_v18 }
 0x529   : > { %v6486_v21 = vpop.f32.mrf.mxu1 }
 0x52a   : > { %v5446_v43 = vmax.f32 %v5414_v16, 0.0  ;;  %v5360_v9 = vadd.f32 %v6831_v14, %v6485_v1 }
 0x52b   : > { %v6487_v60 = vpop.f32.mrf.mxu1 }
 0x52c   : > { %5478 = vst [vmem:[%s8913_s20 + $0xc8] sm:$0xff] %v5446_v43  ;;  %v5415_v11 = vadd.f32 %v8909_v31, %v5360_v9  ;;  %v6488_v12 = vadd.f32 %v6487_v60, %v6486_v21 }
 0x52d   : > { %v6489_v53 = vpop.f32.mrf.mxu1 }
 0x52e   : > { %v5447_v29 = vmax.f32 %v5415_v11, 0.0  ;;  %v5363_v8 = vadd.f32 %v6832_v56, %v6488_v12 }
 0x52f   : > { %v6490_v17 = vpop.f32.mrf.mxu1 }
 0x530   : > { %5479 = vst [vmem:[%s8913_s20 + $0xd0] sm:$0xff] %v5447_v29  ;;  %v5416_v44 = vadd.f32 %v8909_v31, %v5363_v8  ;;  %v6491_v35 = vadd.f32 %v6490_v17, %v6489_v53 }
 0x531   : > { %v6492_v52 = vpop.f32.mrf.mxu1 }
 0x532   : > { %v5448_v59 = vmax.f32 %v5416_v44, 0.0  ;;  %v5368_v51 = vadd.f32 %v6491_v35, %v5110_v19 }
 0x533   : > { %v6493_v28 = vpop.f32.mrf.mxu1 }
 0x534   : > { %5480 = vst [vmem:[%s8913_s20 + $0xd8] sm:$0xff] %v5448_v59  ;;  %v5417_v34 = vadd.f32 %v8909_v31, %v5368_v51  ;;  %v6494_v55 = vadd.f32 %v6493_v28, %v6492_v52 }
 0x535   : > { %v6495_v2 = vpop.f32.mrf.mxu1 }
 0x536   : > { %v5449_v23 = vmax.f32 %v5417_v34, 0.0  ;;  %v5371_v50 = vadd.f32 %v6494_v55, %v5113_v45 }
 0x537   : > { %v6496_v54 = vpop.f32.mrf.mxu1 }
 0x538   : > { %5481 = vst [vmem:[%s8913_s20 + $0xe0] sm:$0xff] %v5449_v23  ;;  %v5418_v26 = vadd.f32 %v8909_v31, %v5371_v50  ;;  %v6497_v38 = vadd.f32 %v6496_v54, %v6495_v2 }
 0x539   : > { %v6498_v27 = vpop.f32.mrf.mxu1 }
 0x53a   : > { %v5450_v40 = vmax.f32 %v5418_v26, 0.0  ;;  %v5376_v7 = vadd.f32 %v6835_v15, %v6497_v38 }
 0x53b   : > { %v6499_v47 = vpop.f32.mrf.mxu1 }
 0x53c   : > { %5482 = vst [vmem:[%s8913_s20 + $0xe8] sm:$0xff] %v5450_v40  ;;  %v5419_v4 = vadd.f32 %v8909_v31, %v5376_v7  ;;  %v6500_v14 = vadd.f32 %v6499_v47, %v6498_v27 }
 0x53e   : > { %v5451_v57 = vmax.f32 %v5419_v4, 0.0  ;;  %v5379_v39 = vadd.f32 %v6836_v25, %v6500_v14 }
 0x540   : > { %5483 = vst [vmem:[%s8913_s20 + $0xf0] sm:$0xff] %v5451_v57  ;;  %v5420_v58 = vadd.f32 %v8909_v31, %v5379_v39 }
 0x542   : > { %v5452_v62 = vmax.f32 %v5420_v58, 0.0 }
 0x544   : > { %5484 = vst [vmem:[%s8913_s20 + $0xf8] sm:$0xff] %v5452_v62 }
 0x545   : > { %7372 = shalt.err (!%p7369_p1)
}
 0x546   : > { %s7373_s15 = scalar_lea.hbm %s8982_s8, 4096  ;;  %s7377_s13 = scalar_lea.hbm %s9220_s7, 8192 }
 0x547   : > { %p7374_p6 = scmp.ne.s32.totalorder %s8982_s8, %s7373_s15  ;;  %p7378_p4 = scmp.lt.s32.totalorder %s8982_s8, %s9220_s7 }
 0x548   : > { %p7379_p11 = scmp.lt.s32.totalorder %s7377_s13, %s7373_s15 }
 0x549   : > { %p7375_p10 = pnand %p7374_p6, %p7632_p9 }
 0x54a   : > { %p7380_p0 = por %p7379_p11, %p7378_p4 }
 0x54b   : > { %p7376_p12 = pneg %p7375_p10 }
 0x54d   : > { %p7381_p3 = pnand %p7380_p0, %p7376_p12 }
 0x54f   : > { %7384 = shalt.err (!%p7381_p3)
}
 0x550   : > { %s7472_s6 = smov 128   ;;  %s7473_s17 = smov 8  }
 0x551   : > { %6879 = dma.vmem_to_hbm [thread:$0]  (%p7632_p9), %s8984_s21, 4096, %s8982_s8, %s5486_s27, %s7472_s6, %s7472_s6, %s7473_s17  }
 0x552 PF: > { %s9221_s20 = sld [smem:[#allocation24_spill]] }
 0x553   : > { %s9222_s26 = sld [smem:[#allocation31_spill]] }
 0x554   : > { %s9223_s23 = sld [smem:[#allocation27_spill]] }
 0x558   : > { %s5516_s19 = sand.u32 1, %s9221_s20  }
 0x559   : > { %p9224_p8 = scmp.ne.s32.totalorder %s9222_s26, 0  ;;  %s5517_s1 = scalar_lea.sflag [#allocation5], %s5516_s19 }
 0x55a   : > { %p9225_p13 = scmp.ge.s32.totalorder %s9223_s23, 2 }
 0x55c   : > { %p6908_p5 = pnand %p9225_p13, %p9224_p8 }
 0x55e   : > { %p6909_p2 = pneg %p6908_p5 }
 0x560   : > { %7430 = dma.done.wait (%p6909_p2), %s5517_s1, 4096  }
 0x561   : > { %7432 = vsyncadd (%p6909_p2), %s5517_s1, 4294963200  ;;  %s34_s26 = sadd.s32 1, %s9223_s23   ;;  %s9226_s30 = sld [smem:[#allocation25_spill]] }
 0x562   : > { %p31_p7 = scmp.ge.s32.totalorder %s34_s26, 4   ;;  %s9227_s23 = sld [smem:[#allocation30_spill]] }
 0x563   : > { %s9228_s16 = sld [smem:[#allocation28_spill]]  ;;  %s9229_s21 = smov %s7439_s22 }
 0x564   : > { %s9231_s24 = smov %s7451_s25 }
 0x565   :  { %33 = sbr.rel (!%p31_p7) target bundleno = 20 (0x14), region = 177 }
 0x567   : > { %s9230_s22 = smov %s9226_s30 }
 0x569   : > { %s9232_s25 = smov %s9228_s16 }
 0x56a   :  { %5522 = vsyncpa [#allocation4], 1 }
 0x56b   :  { %5524 = vsyncpa [#allocation4 + $0x1], 1 }
 0x56c   :  { %5525 = vsyncpa [#allocation7], 1 }
 0x56d   :  { %5527 = vsyncpa [#allocation7 + $0x1], 1 }
 0x56e   :  { %5528 = vsyncpa [#allocation10], 1 }
 0x56f   :  { %5529 = vsyncpa [#allocation13], 1 }
 0x570   :  { %5530 = vsyncpa [#allocation16], 1 }
 0x571   :  { %5531 = vsyncpa [#allocation5], 1 }
 0x572   :  { %5533 = vsyncpa [#allocation5 + $0x1], 1 }

</bundles_post_ra>
